<compile_context>
chip_gen: v6e
topology: v6e:2x2x1
jax: 0.10.0
libtpu: 0.0.40
codegen_flags: <defaults>
</compile_context>

<pallas_src>
import functools

import jax
import jax.numpy as jnp
from jax.experimental import pallas as pl
from jax.experimental.pallas import tpu as pltpu


MATMUL_DTYPE = jnp.float32   # jnp.bfloat16 -> bf16 MXU operands (v6e/v7x), f32 accum
_BATCH_BLOCK = 8             # sublane-aligned batch tile; also the parallel grid unit


# ---------------------------------------------------------------------------
# Fused kernel: conv stack (BN folded, ReLU) + reversed multi-layer LSTM.
# All activations stay in VMEM / vregs; rows are time-major: row = t*BB + b.
# ---------------------------------------------------------------------------
def _fused_encoder_kernel(*refs, seq_len, kernel_size, hidden_size, num_layers,
                          batch_block):
    if num_layers > 1:
        (x_ref, w1_ref, w2_ref, w3_ref, cb1_ref, cb2_ref, cb3_ref,
         wih0_ref, wihr_ref, whh_ref, b_ref, o_ref, g0_scr) = refs
    else:
        (x_ref, w1_ref, w2_ref, w3_ref, cb1_ref, cb2_ref, cb3_ref,
         wih0_ref, whh_ref, b_ref, o_ref, g0_scr) = refs
        wihr_ref = None

    L, K, H, BB = seq_len, kernel_size, hidden_size, batch_block
    rows = L * BB
    G = 4 * H

    # ----------------- conv stack (zero padding via shift-with-zeros) ------------
    def shift_rows(a, s):
        # out[r] := a[r + s*BB]  (i.e. x at time t+s), zeros where t+s is out of range.
        n = abs(s) * BB
        z = jnp.zeros((n, a.shape[1]), a.dtype)
        if s > 0:
            return jnp.concatenate([a[n:], z], axis=0)
        return jnp.concatenate([z, a[:rows - n]], axis=0)

    h = x_ref[...]
    for w_ref, cb_ref in ((w1_ref, cb1_ref), (w2_ref, cb2_ref), (w3_ref, cb3_ref)):
        w = w_ref[...].astype(MATMUL_DTYPE)                 # (K, Cin, Cout), BN-scaled
        hm = h.astype(MATMUL_DTYPE)
        acc = jnp.dot(hm, w[K // 2], preferred_element_type=jnp.float32)   # center tap
        for k in range(K):
            if k == K // 2:
                continue
            acc = acc + jnp.dot(shift_rows(hm, k - K // 2), w[k],
                                preferred_element_type=jnp.float32)
        h = jnp.maximum(acc + cb_ref[...], 0.0)             # folded BN shift + ReLU

    # ----------------- LSTM: hoisted layer-0 input projection --------------------
    gates0 = jnp.dot(h.astype(MATMUL_DTYPE), wih0_ref[...].astype(MATMUL_DTYPE),
                     preferred_element_type=jnp.float32) + b_ref[0]   # (rows, 4H)
    g0_scr[...] = gates0                                    # keep slab in VMEM scratch

    whh = [whh_ref[l].astype(MATMUL_DTYPE) for l in range(num_layers)]
    wih = [None] + [wihr_ref[l - 1].astype(MATMUL_DTYPE)
                    for l in range(1, num_layers)]
    bias = [None] + [jnp.broadcast_to(b_ref[l], (BB, G))    # hoisted broadcasts
                     for l in range(1, num_layers)]

    hs = [jnp.zeros((BB, H), jnp.float32) for _ in range(num_layers)]
    cs = [jnp.zeros((BB, H), jnp.float32) for _ in range(num_layers)]

    def cell(gates, c_prev):
        # PyTorch gate order i, f, g, o.  One full (BB,4H) sigmoid pass.
        sig = jax.nn.sigmoid(gates)
        g_g = jnp.tanh(gates[:, 2 * H:3 * H])
        c_new = sig[:, H:2 * H] * c_prev + sig[:, :H] * g_g
        h_new = sig[:, 3 * H:] * jnp.tanh(c_new)
        return h_new, c_new

    outs = []                                               # top-layer h per step
    for step in range(L):                                   # fully unrolled, reversed
        t = L - 1 - step
        gates = g0_scr[t * BB:(t + 1) * BB, :] + jnp.dot(
            hs[0].astype(MATMUL_DTYPE), whh[0], preferred_element_type=jnp.float32)
        hs[0], cs[0] = cell(gates, cs[0])
        inp = hs[0]
        for layer in range(1, num_layers):
            gates = (jnp.dot(inp.astype(MATMUL_DTYPE), wih[layer],
                             preferred_element_type=jnp.float32)
                     + jnp.dot(hs[layer].astype(MATMUL_DTYPE), whh[layer],
                               preferred_element_type=jnp.float32)
                     + bias[layer])
            hs[layer], cs[layer] = cell(gates, cs[layer])
            inp = hs[layer]
        outs.append(inp)                                    # h at time t

    # Single lane-dense (BB, L*H) store; outs[step] is time L-1-step -> reverse order.
    o_ref[...] = jnp.concatenate(outs[::-1], axis=1).astype(o_ref.dtype)


# ---------------------------------------------------------------------------
# Parameter setup & full forward
# ---------------------------------------------------------------------------
class Configs:
    input_channels = 4
    final_out_channels = 16
    hidden_size = 32
    n_layers = 2
    kernel_size = 3
    stride = 1
    dropout = 0.1       # inactive (eval semantics)


def init_params(cfg, key):
    ks = jax.random.split(key, 8)
    H, F = cfg.hidden_size, cfg.final_out_channels

    def u(k, shape, fan_in):
        bound = 1.0 / jnp.sqrt(jnp.float32(fan_in))
        return jax.random.uniform(k, shape, jnp.float32, -bound, bound)

    p = {}
    # Conv weights in PyTorch layout (Cout, Cin, K); BN params at default init.
    p["conv_ws"] = [
        u(ks[0], (32, cfg.input_channels, cfg.kernel_size),
          cfg.input_channels * cfg.kernel_size),
        u(ks[1], (64, 32, cfg.kernel_size), 32 * cfg.kernel_size),
        u(ks[2], (F, 64, cfg.kernel_size), 64 * cfg.kernel_size),
    ]
    p["bn"] = [(jnp.ones((c,), jnp.float32), jnp.zeros((c,), jnp.float32),
                jnp.zeros((c,), jnp.float32), jnp.ones((c,), jnp.float32))
               for c in (32, 64, F)]

    # LSTM weights generated in PyTorch layout, packed fused-gate (in_dim, 4H).
    wih_l, whh_l, b_l = [], [], []
    for layer in range(cfg.n_layers):
        in_dim = F if layer == 0 else H
        k0, k1, k2, k3 = jax.random.split(ks[3 + layer], 4)
        w_ih = u(k0, (4 * H, in_dim), H)
        w_hh = u(k1, (4 * H, H), H)
        b_ih = u(k2, (4 * H,), H)
        b_hh = u(k3, (4 * H,), H)
        wih_l.append(jnp.transpose(w_ih))               # (in_dim, 4H), gates i,f,g,o
        whh_l.append(jnp.transpose(w_hh))               # (H, 4H)
        b_l.append((b_ih + b_hh).reshape(1, 4 * H))     # pre-folded bias
    p["lstm_wih0"] = wih_l[0]                                           # (F, 4H)
    p["lstm_wihr"] = jnp.stack(wih_l[1:]) if cfg.n_layers > 1 else None # (nl-1, H, 4H)
    p["lstm_whh"] = jnp.stack(whh_l)                                    # (nl, H, 4H)
    p["lstm_b"] = jnp.stack(b_l)                                        # (nl, 1, 4H)
    return p


def lstm_encoder_forward(x_in, params, cfg):
    """x_in: (B, T, C_in) -- the tensor PyTorch's forward receives (it permutes to NCL
    for Conv1d; our conv is channels-last so that permute is a no-op here)."""
    B, T, Cin = x_in.shape
    H, K, nl = cfg.hidden_size, cfg.kernel_size, cfg.n_layers
    # TODO(synk): fused kernel assumes stride == 1 and odd kernel_size (module defaults);
    # general stride would need an output resampling step.
    assert cfg.stride == 1 and K % 2 == 1
    BB = _BATCH_BLOCK
    Bp = pl.cdiv(B, BB) * BB
    nt = Bp // BB
    xp = jnp.pad(x_in, ((0, Bp - B), (0, 0), (0, 0))).astype(jnp.float32)
    # Tile-contiguous, time-major rows: row = tile*(T*BB) + t*BB + b  (~2 KB transpose).
    x_rows = jnp.transpose(xp.reshape(nt, BB, T, Cin), (0, 2, 1, 3)).reshape(
        nt * T * BB, Cin)

    # Fold BatchNorm (eval) into the conv tap weights / per-channel bias.
    taps, cbias = [], []
    for w, (gamma, beta, mean, var) in zip(params["conv_ws"], params["bn"]):
        inv = gamma / jnp.sqrt(var + 1e-5)                       # (Cout,)
        taps.append((jnp.transpose(w, (2, 1, 0)) * inv[None, None, :])
                    .astype(jnp.float32))                        # (K, Cin, Cout)
        cbias.append((beta - mean * inv).reshape(1, -1).astype(jnp.float32))

    def full(a):
        return pl.BlockSpec(a.shape, lambda i, _nd=a.ndim: (0,) * _nd)

    args = [x_rows, taps[0], taps[1], taps[2], cbias[0], cbias[1], cbias[2],
            params["lstm_wih0"]]
    in_specs = [pl.BlockSpec((T * BB, Cin), lambda i: (i, 0)),
                full(taps[0]), full(taps[1]), full(taps[2]),
                full(cbias[0]), full(cbias[1]), full(cbias[2]),
                full(params["lstm_wih0"])]
    if nl > 1:
        args.append(params["lstm_wihr"])
        in_specs.append(full(params["lstm_wihr"]))
    args += [params["lstm_whh"], params["lstm_b"]]
    in_specs += [full(params["lstm_whh"]), full(params["lstm_b"])]

    kernel = functools.partial(_fused_encoder_kernel, seq_len=T, kernel_size=K,
                               hidden_size=H, num_layers=nl, batch_block=BB)
    out = pl.pallas_call(
        kernel,
        out_shape=jax.ShapeDtypeStruct((Bp, T * H), jnp.float32),
        grid=(nt,),
        in_specs=in_specs,
        out_specs=pl.BlockSpec((BB, T * H), lambda i: (i, 0)),      # lane-dense (8, 512)
        scratch_shapes=[pltpu.VMEM((T * BB, 4 * H), jnp.float32)],  # layer-0 gate slab
        compiler_params=pltpu.CompilerParams(dimension_semantics=("parallel",)),
    )(*args)

    # (B, T*H) row-major == (B*T, H) row-major -> free reshape, no transpose.
    return out[:B].reshape(B * T, H)


if __name__ == "__main__":
    cfg = Configs()
    B, T = 2, 16
    key = jax.random.PRNGKey(0)
    k_x, k_p = jax.random.split(key)
    x_in = jax.random.normal(k_x, (B, T, cfg.input_channels), jnp.float32)
    params = init_params(cfg, k_p)

    fwd = jax.jit(functools.partial(lstm_encoder_forward, cfg=cfg))
    out = fwd(x_in, params)
    jax.block_until_ready(out)
    assert out.shape == (B * T, cfg.hidden_size), out.shape
    print("KERNEL_OK")
</pallas_src>

<mosaic_0001>
module attributes {stable_mosaic.version = 11 : i64} {
  func.func @_fused_encoder_kernel(%arg0: i32, %arg1: memref<128x4xf32, #tpu.memory_space<vmem>>, %arg2: memref<3x4x32xf32, #tpu.memory_space<vmem>>, %arg3: memref<3x32x64xf32, #tpu.memory_space<vmem>>, %arg4: memref<3x64x16xf32, #tpu.memory_space<vmem>>, %arg5: memref<1x32xf32, #tpu.memory_space<vmem>>, %arg6: memref<1x64xf32, #tpu.memory_space<vmem>>, %arg7: memref<1x16xf32, #tpu.memory_space<vmem>>, %arg8: memref<16x128xf32, #tpu.memory_space<vmem>>, %arg9: memref<1x32x128xf32, #tpu.memory_space<vmem>>, %arg10: memref<2x32x128xf32, #tpu.memory_space<vmem>>, %arg11: memref<2x1x128xf32, #tpu.memory_space<vmem>>, %arg12: memref<8x512xf32, #tpu.memory_space<vmem>>, %arg13: memref<128x128xf32, #tpu.memory_space<vmem>>) attributes {dimension_semantics = [#tpu.dimension_semantics<parallel>], iteration_bounds = array<i64: 1>, scalar_prefetch = 0 : i64, scratch_operands = 1 : i64, tpu.core_type = #tpu.core_type<tc>, window_params = [{transform_indices = @transform_0, window_bounds = array<i64: 128, 4>}, {pipeline_mode = #tpu.pipeline_mode<synchronous>, transform_indices = @transform_1, window_bounds = array<i64: 3, 4, 32>}, {pipeline_mode = #tpu.pipeline_mode<synchronous>, transform_indices = @transform_2, window_bounds = array<i64: 3, 32, 64>}, {pipeline_mode = #tpu.pipeline_mode<synchronous>, transform_indices = @transform_3, window_bounds = array<i64: 3, 64, 16>}, {pipeline_mode = #tpu.pipeline_mode<synchronous>, transform_indices = @transform_4, window_bounds = array<i64: 1, 32>}, {pipeline_mode = #tpu.pipeline_mode<synchronous>, transform_indices = @transform_5, window_bounds = array<i64: 1, 64>}, {pipeline_mode = #tpu.pipeline_mode<synchronous>, transform_indices = @transform_6, window_bounds = array<i64: 1, 16>}, {pipeline_mode = #tpu.pipeline_mode<synchronous>, transform_indices = @transform_7, window_bounds = array<i64: 16, 128>}, {pipeline_mode = #tpu.pipeline_mode<synchronous>, transform_indices = @transform_8, window_bounds = array<i64: 1, 32, 128>}, {pipeline_mode = #tpu.pipeline_mode<synchronous>, transform_indices = @transform_9, window_bounds = array<i64: 2, 32, 128>}, {pipeline_mode = #tpu.pipeline_mode<synchronous>, transform_indices = @transform_10, window_bounds = array<i64: 2, 1, 128>}, {transform_indices = @transform_11, window_bounds = array<i64: 8, 512>}]} {
    %c0 = arith.constant 0 : index
    %c0_0 = arith.constant 0 : index
    %0 = vector.load %arg1[%c0, %c0_0] : memref<128x4xf32, #tpu.memory_space<vmem>>, vector<128x4xf32>
    %c0_1 = arith.constant 0 : index
    %c0_2 = arith.constant 0 : index
    %c0_3 = arith.constant 0 : index
    %1 = vector.load %arg2[%c0_1, %c0_2, %c0_3] : memref<3x4x32xf32, #tpu.memory_space<vmem>>, vector<3x4x32xf32>
    %2 = vector.extract_strided_slice %1 {offsets = [1, 0, 0], sizes = [1, 4, 32], strides = [1, 1, 1]} : vector<3x4x32xf32> to vector<1x4x32xf32>
    %3 = vector.shape_cast %2 : vector<1x4x32xf32> to vector<4x32xf32>
    %cst = arith.constant dense<0.000000e+00> : vector<128x32xf32>
    %4 = tpu.matmul %0, %3, %cst {dimension_numbers = #tpu.dot_dimension_numbers<[1], [0], [0], [1], [0, 0, 1, 1], [], []>} : vector<128x4xf32>, vector<4x32xf32>, vector<128x32xf32> -> vector<128x32xf32>
    %cst_4 = arith.constant 0.000000e+00 : f32
    %5 = vector.broadcast %cst_4 : f32 to vector<8x4xf32>
    %6 = vector.extract_strided_slice %0 {offsets = [0, 0], sizes = [120, 4], strides = [1, 1]} : vector<128x4xf32> to vector<120x4xf32>
    %7 = tpu.concatenate %5, %6 in 0 : vector<8x4xf32>, vector<120x4xf32> -> vector<128x4xf32>
    %8 = vector.extract_strided_slice %1 {offsets = [0, 0, 0], sizes = [1, 4, 32], strides = [1, 1, 1]} : vector<3x4x32xf32> to vector<1x4x32xf32>
    %9 = vector.shape_cast %8 : vector<1x4x32xf32> to vector<4x32xf32>
    %cst_5 = arith.constant dense<0.000000e+00> : vector<128x32xf32>
    %10 = tpu.matmul %7, %9, %cst_5 {dimension_numbers = #tpu.dot_dimension_numbers<[1], [0], [0], [1], [0, 0, 1, 1], [], []>} : vector<128x4xf32>, vector<4x32xf32>, vector<128x32xf32> -> vector<128x32xf32>
    %11 = arith.addf %4, %10 : vector<128x32xf32>
    %cst_6 = arith.constant 0.000000e+00 : f32
    %12 = vector.broadcast %cst_6 : f32 to vector<8x4xf32>
    %13 = vector.extract_strided_slice %0 {offsets = [8, 0], sizes = [120, 4], strides = [1, 1]} : vector<128x4xf32> to vector<120x4xf32>
    %14 = tpu.concatenate %13, %12 in 0 : vector<120x4xf32>, vector<8x4xf32> -> vector<128x4xf32>
    %15 = vector.extract_strided_slice %1 {offsets = [2, 0, 0], sizes = [1, 4, 32], strides = [1, 1, 1]} : vector<3x4x32xf32> to vector<1x4x32xf32>
    %16 = vector.shape_cast %15 : vector<1x4x32xf32> to vector<4x32xf32>
    %cst_7 = arith.constant dense<0.000000e+00> : vector<128x32xf32>
    %17 = tpu.matmul %14, %16, %cst_7 {dimension_numbers = #tpu.dot_dimension_numbers<[1], [0], [0], [1], [0, 0, 1, 1], [], []>} : vector<128x4xf32>, vector<4x32xf32>, vector<128x32xf32> -> vector<128x32xf32>
    %18 = arith.addf %11, %17 : vector<128x32xf32>
    %c0_8 = arith.constant 0 : index
    %c0_9 = arith.constant 0 : index
    %19 = vector.load %arg5[%c0_8, %c0_9] : memref<1x32xf32, #tpu.memory_space<vmem>>, vector<1x32xf32>
    %20 = vector.broadcast %19 : vector<1x32xf32> to vector<128x32xf32>
    %21 = arith.addf %18, %20 : vector<128x32xf32>
    %cst_10 = arith.constant 0.000000e+00 : f32
    %22 = vector.broadcast %cst_10 : f32 to vector<128x32xf32>
    %23 = arith.maximumf %21, %22 : vector<128x32xf32>
    %c0_11 = arith.constant 0 : index
    %c0_12 = arith.constant 0 : index
    %c0_13 = arith.constant 0 : index
    %24 = vector.load %arg3[%c0_11, %c0_12, %c0_13] : memref<3x32x64xf32, #tpu.memory_space<vmem>>, vector<3x32x64xf32>
    %25 = vector.extract_strided_slice %24 {offsets = [1, 0, 0], sizes = [1, 32, 64], strides = [1, 1, 1]} : vector<3x32x64xf32> to vector<1x32x64xf32>
    %26 = vector.shape_cast %25 : vector<1x32x64xf32> to vector<32x64xf32>
    %cst_14 = arith.constant dense<0.000000e+00> : vector<128x64xf32>
    %27 = tpu.matmul %23, %26, %cst_14 {dimension_numbers = #tpu.dot_dimension_numbers<[1], [0], [0], [1], [0, 0, 1, 1], [], []>} : vector<128x32xf32>, vector<32x64xf32>, vector<128x64xf32> -> vector<128x64xf32>
    %cst_15 = arith.constant 0.000000e+00 : f32
    %28 = vector.broadcast %cst_15 : f32 to vector<8x32xf32>
    %29 = vector.extract_strided_slice %23 {offsets = [0, 0], sizes = [120, 32], strides = [1, 1]} : vector<128x32xf32> to vector<120x32xf32>
    %30 = tpu.concatenate %28, %29 in 0 : vector<8x32xf32>, vector<120x32xf32> -> vector<128x32xf32>
    %31 = vector.extract_strided_slice %24 {offsets = [0, 0, 0], sizes = [1, 32, 64], strides = [1, 1, 1]} : vector<3x32x64xf32> to vector<1x32x64xf32>
    %32 = vector.shape_cast %31 : vector<1x32x64xf32> to vector<32x64xf32>
    %cst_16 = arith.constant dense<0.000000e+00> : vector<128x64xf32>
    %33 = tpu.matmul %30, %32, %cst_16 {dimension_numbers = #tpu.dot_dimension_numbers<[1], [0], [0], [1], [0, 0, 1, 1], [], []>} : vector<128x32xf32>, vector<32x64xf32>, vector<128x64xf32> -> vector<128x64xf32>
    %34 = arith.addf %27, %33 : vector<128x64xf32>
    %cst_17 = arith.constant 0.000000e+00 : f32
    %35 = vector.broadcast %cst_17 : f32 to vector<8x32xf32>
    %36 = vector.extract_strided_slice %23 {offsets = [8, 0], sizes = [120, 32], strides = [1, 1]} : vector<128x32xf32> to vector<120x32xf32>
    %37 = tpu.concatenate %36, %35 in 0 : vector<120x32xf32>, vector<8x32xf32> -> vector<128x32xf32>
    %38 = vector.extract_strided_slice %24 {offsets = [2, 0, 0], sizes = [1, 32, 64], strides = [1, 1, 1]} : vector<3x32x64xf32> to vector<1x32x64xf32>
    %39 = vector.shape_cast %38 : vector<1x32x64xf32> to vector<32x64xf32>
    %cst_18 = arith.constant dense<0.000000e+00> : vector<128x64xf32>
    %40 = tpu.matmul %37, %39, %cst_18 {dimension_numbers = #tpu.dot_dimension_numbers<[1], [0], [0], [1], [0, 0, 1, 1], [], []>} : vector<128x32xf32>, vector<32x64xf32>, vector<128x64xf32> -> vector<128x64xf32>
    %41 = arith.addf %34, %40 : vector<128x64xf32>
    %c0_19 = arith.constant 0 : index
    %c0_20 = arith.constant 0 : index
    %42 = vector.load %arg6[%c0_19, %c0_20] : memref<1x64xf32, #tpu.memory_space<vmem>>, vector<1x64xf32>
    %43 = vector.broadcast %42 : vector<1x64xf32> to vector<128x64xf32>
    %44 = arith.addf %41, %43 : vector<128x64xf32>
    %cst_21 = arith.constant 0.000000e+00 : f32
    %45 = vector.broadcast %cst_21 : f32 to vector<128x64xf32>
    %46 = arith.maximumf %44, %45 : vector<128x64xf32>
    %c0_22 = arith.constant 0 : index
    %c0_23 = arith.constant 0 : index
    %c0_24 = arith.constant 0 : index
    %47 = vector.load %arg4[%c0_22, %c0_23, %c0_24] : memref<3x64x16xf32, #tpu.memory_space<vmem>>, vector<3x64x16xf32>
    %48 = vector.extract_strided_slice %47 {offsets = [1, 0, 0], sizes = [1, 64, 16], strides = [1, 1, 1]} : vector<3x64x16xf32> to vector<1x64x16xf32>
    %49 = vector.shape_cast %48 : vector<1x64x16xf32> to vector<64x16xf32>
    %cst_25 = arith.constant dense<0.000000e+00> : vector<128x16xf32>
    %50 = tpu.matmul %46, %49, %cst_25 {dimension_numbers = #tpu.dot_dimension_numbers<[1], [0], [0], [1], [0, 0, 1, 1], [], []>} : vector<128x64xf32>, vector<64x16xf32>, vector<128x16xf32> -> vector<128x16xf32>
    %cst_26 = arith.constant 0.000000e+00 : f32
    %51 = vector.broadcast %cst_26 : f32 to vector<8x64xf32>
    %52 = vector.extract_strided_slice %46 {offsets = [0, 0], sizes = [120, 64], strides = [1, 1]} : vector<128x64xf32> to vector<120x64xf32>
    %53 = tpu.concatenate %51, %52 in 0 : vector<8x64xf32>, vector<120x64xf32> -> vector<128x64xf32>
    %54 = vector.extract_strided_slice %47 {offsets = [0, 0, 0], sizes = [1, 64, 16], strides = [1, 1, 1]} : vector<3x64x16xf32> to vector<1x64x16xf32>
    %55 = vector.shape_cast %54 : vector<1x64x16xf32> to vector<64x16xf32>
    %cst_27 = arith.constant dense<0.000000e+00> : vector<128x16xf32>
    %56 = tpu.matmul %53, %55, %cst_27 {dimension_numbers = #tpu.dot_dimension_numbers<[1], [0], [0], [1], [0, 0, 1, 1], [], []>} : vector<128x64xf32>, vector<64x16xf32>, vector<128x16xf32> -> vector<128x16xf32>
    %57 = arith.addf %50, %56 : vector<128x16xf32>
    %cst_28 = arith.constant 0.000000e+00 : f32
    %58 = vector.broadcast %cst_28 : f32 to vector<8x64xf32>
    %59 = vector.extract_strided_slice %46 {offsets = [8, 0], sizes = [120, 64], strides = [1, 1]} : vector<128x64xf32> to vector<120x64xf32>
    %60 = tpu.concatenate %59, %58 in 0 : vector<120x64xf32>, vector<8x64xf32> -> vector<128x64xf32>
    %61 = vector.extract_strided_slice %47 {offsets = [2, 0, 0], sizes = [1, 64, 16], strides = [1, 1, 1]} : vector<3x64x16xf32> to vector<1x64x16xf32>
    %62 = vector.shape_cast %61 : vector<1x64x16xf32> to vector<64x16xf32>
    %cst_29 = arith.constant dense<0.000000e+00> : vector<128x16xf32>
    %63 = tpu.matmul %60, %62, %cst_29 {dimension_numbers = #tpu.dot_dimension_numbers<[1], [0], [0], [1], [0, 0, 1, 1], [], []>} : vector<128x64xf32>, vector<64x16xf32>, vector<128x16xf32> -> vector<128x16xf32>
    %64 = arith.addf %57, %63 : vector<128x16xf32>
    %c0_30 = arith.constant 0 : index
    %c0_31 = arith.constant 0 : index
    %65 = vector.load %arg7[%c0_30, %c0_31] : memref<1x16xf32, #tpu.memory_space<vmem>>, vector<1x16xf32>
    %66 = vector.broadcast %65 : vector<1x16xf32> to vector<128x16xf32>
    %67 = arith.addf %64, %66 : vector<128x16xf32>
    %cst_32 = arith.constant 0.000000e+00 : f32
    %68 = vector.broadcast %cst_32 : f32 to vector<128x16xf32>
    %69 = arith.maximumf %67, %68 : vector<128x16xf32>
    %c0_33 = arith.constant 0 : index
    %c0_34 = arith.constant 0 : index
    %70 = vector.load %arg8[%c0_33, %c0_34] : memref<16x128xf32, #tpu.memory_space<vmem>>, vector<16x128xf32>
    %cst_35 = arith.constant dense<0.000000e+00> : vector<128x128xf32>
    %71 = tpu.matmul %69, %70, %cst_35 {dimension_numbers = #tpu.dot_dimension_numbers<[1], [0], [0], [1], [0, 0, 1, 1], [], []>} : vector<128x16xf32>, vector<16x128xf32>, vector<128x128xf32> -> vector<128x128xf32>
    %c0_36 = arith.constant 0 : index
    %c0_37 = arith.constant 0 : index
    %c0_38 = arith.constant 0 : index
    %72 = vector.load %arg11[%c0_36, %c0_37, %c0_38] : memref<2x1x128xf32, #tpu.memory_space<vmem>>, vector<1x1x128xf32>
    %73 = vector.shape_cast %72 : vector<1x1x128xf32> to vector<1x128xf32>
    %74 = vector.broadcast %73 : vector<1x128xf32> to vector<128x128xf32>
    %75 = arith.addf %71, %74 : vector<128x128xf32>
    %c0_39 = arith.constant 0 : index
    %c0_40 = arith.constant 0 : index
    %76 = vector.load %arg13[%c0_39, %c0_40] : memref<128x128xf32, #tpu.memory_space<vmem>>, vector<128x128xf32>
    tpu.vector_store %arg13[%c0_39, %c0_40], %75 {strides = array<i32>} : memref<128x128xf32, #tpu.memory_space<vmem>>, vector<128x128xf32>,
    %c0_41 = arith.constant 0 : index
    %c0_42 = arith.constant 0 : index
    %c0_43 = arith.constant 0 : index
    %77 = vector.load %arg10[%c0_41, %c0_42, %c0_43] : memref<2x32x128xf32, #tpu.memory_space<vmem>>, vector<1x32x128xf32>
    %78 = vector.shape_cast %77 : vector<1x32x128xf32> to vector<32x128xf32>
    %c1 = arith.constant 1 : index
    %c0_44 = arith.constant 0 : index
    %c0_45 = arith.constant 0 : index
    %79 = vector.load %arg10[%c1, %c0_44, %c0_45] : memref<2x32x128xf32, #tpu.memory_space<vmem>>, vector<1x32x128xf32>
    %80 = vector.shape_cast %79 : vector<1x32x128xf32> to vector<32x128xf32>
    %c0_46 = arith.constant 0 : index
    %c0_47 = arith.constant 0 : index
    %c0_48 = arith.constant 0 : index
    %81 = vector.load %arg9[%c0_46, %c0_47, %c0_48] : memref<1x32x128xf32, #tpu.memory_space<vmem>>, vector<1x32x128xf32>
    %82 = vector.shape_cast %81 : vector<1x32x128xf32> to vector<32x128xf32>
    %c1_49 = arith.constant 1 : index
    %c0_50 = arith.constant 0 : index
    %c0_51 = arith.constant 0 : index
    %83 = vector.load %arg11[%c1_49, %c0_50, %c0_51] : memref<2x1x128xf32, #tpu.memory_space<vmem>>, vector<1x1x128xf32>
    %84 = vector.shape_cast %83 : vector<1x1x128xf32> to vector<1x128xf32>
    %85 = vector.shape_cast %84 : vector<1x128xf32> to vector<1x128xf32>
    %86 = vector.broadcast %85 : vector<1x128xf32> to vector<8x128xf32>
    %cst_52 = arith.constant 0.000000e+00 : f32
    %87 = vector.broadcast %cst_52 : f32 to vector<8x32xf32>
    %cst_53 = arith.constant 0.000000e+00 : f32
    %88 = vector.broadcast %cst_53 : f32 to vector<8x32xf32>
    %cst_54 = arith.constant 0.000000e+00 : f32
    %89 = vector.broadcast %cst_54 : f32 to vector<8x32xf32>
    %cst_55 = arith.constant 0.000000e+00 : f32
    %90 = vector.broadcast %cst_55 : f32 to vector<8x32xf32>
    %c120 = arith.constant 120 : index
    %c0_56 = arith.constant 0 : index
    %91 = vector.load %arg13[%c120, %c0_56] : memref<128x128xf32, #tpu.memory_space<vmem>>, vector<8x128xf32>
    %cst_57 = arith.constant dense<0.000000e+00> : vector<8x128xf32>
    %92 = tpu.matmul %87, %78, %cst_57 {dimension_numbers = #tpu.dot_dimension_numbers<[1], [0], [0], [1], [0, 0, 1, 1], [], []>} : vector<8x32xf32>, vector<32x128xf32>, vector<8x128xf32> -> vector<8x128xf32>
    %93 = arith.addf %91, %92 : vector<8x128xf32>
    %94 = arith.negf %93 : vector<8x128xf32>
    %95 = math.exp %94 : vector<8x128xf32>
    %cst_58 = arith.constant 1.000000e+00 : f32
    %96 = vector.broadcast %cst_58 : f32 to vector<8x128xf32>
    %97 = arith.addf %96, %95 : vector<8x128xf32>
    %98 = arith.divf %96, %97 : vector<8x128xf32>
    %99 = vector.extract_strided_slice %93 {offsets = [0, 64], sizes = [8, 32], strides = [1, 1]} : vector<8x128xf32> to vector<8x32xf32>
    %100 = math.tanh %99 : vector<8x32xf32>
    %101 = vector.extract_strided_slice %98 {offsets = [0, 32], sizes = [8, 32], strides = [1, 1]} : vector<8x128xf32> to vector<8x32xf32>
    %102 = arith.mulf %101, %89 : vector<8x32xf32>
    %103 = vector.extract_strided_slice %98 {offsets = [0, 0], sizes = [8, 32], strides = [1, 1]} : vector<8x128xf32> to vector<8x32xf32>
    %104 = arith.mulf %103, %100 : vector<8x32xf32>
    %105 = arith.addf %102, %104 : vector<8x32xf32>
    %106 = vector.extract_strided_slice %98 {offsets = [0, 96], sizes = [8, 32], strides = [1, 1]} : vector<8x128xf32> to vector<8x32xf32>
    %107 = math.tanh %105 : vector<8x32xf32>
    %108 = arith.mulf %106, %107 : vector<8x32xf32>
    %cst_59 = arith.constant dense<0.000000e+00> : vector<8x128xf32>
    %109 = tpu.matmul %108, %82, %cst_59 {dimension_numbers = #tpu.dot_dimension_numbers<[1], [0], [0], [1], [0, 0, 1, 1], [], []>} : vector<8x32xf32>, vector<32x128xf32>, vector<8x128xf32> -> vector<8x128xf32>
    %cst_60 = arith.constant dense<0.000000e+00> : vector<8x128xf32>
    %110 = tpu.matmul %88, %80, %cst_60 {dimension_numbers = #tpu.dot_dimension_numbers<[1], [0], [0], [1], [0, 0, 1, 1], [], []>} : vector<8x32xf32>, vector<32x128xf32>, vector<8x128xf32> -> vector<8x128xf32>
    %111 = arith.addf %109, %110 : vector<8x128xf32>
    %112 = arith.addf %111, %86 : vector<8x128xf32>
    %113 = arith.negf %112 : vector<8x128xf32>
    %114 = math.exp %113 : vector<8x128xf32>
    %cst_61 = arith.constant 1.000000e+00 : f32
    %115 = vector.broadcast %cst_61 : f32 to vector<8x128xf32>
    %116 = arith.addf %115, %114 : vector<8x128xf32>
    %117 = arith.divf %115, %116 : vector<8x128xf32>
    %118 = vector.extract_strided_slice %112 {offsets = [0, 64], sizes = [8, 32], strides = [1, 1]} : vector<8x128xf32> to vector<8x32xf32>
    %119 = math.tanh %118 : vector<8x32xf32>
    %120 = vector.extract_strided_slice %117 {offsets = [0, 32], sizes = [8, 32], strides = [1, 1]} : vector<8x128xf32> to vector<8x32xf32>
    %121 = arith.mulf %120, %90 : vector<8x32xf32>
    %122 = vector.extract_strided_slice %117 {offsets = [0, 0], sizes = [8, 32], strides = [1, 1]} : vector<8x128xf32> to vector<8x32xf32>
    %123 = arith.mulf %122, %119 : vector<8x32xf32>
    %124 = arith.addf %121, %123 : vector<8x32xf32>
    %125 = vector.extract_strided_slice %117 {offsets = [0, 96], sizes = [8, 32], strides = [1, 1]} : vector<8x128xf32> to vector<8x32xf32>
    %126 = math.tanh %124 : vector<8x32xf32>
    %127 = arith.mulf %125, %126 : vector<8x32xf32>
    %c112 = arith.constant 112 : index
    %c0_62 = arith.constant 0 : index
    %128 = vector.load %arg13[%c112, %c0_62] : memref<128x128xf32, #tpu.memory_space<vmem>>, vector<8x128xf32>
    %cst_63 = arith.constant dense<0.000000e+00> : vector<8x128xf32>
    %129 = tpu.matmul %108, %78, %cst_63 {dimension_numbers = #tpu.dot_dimension_numbers<[1], [0], [0], [1], [0, 0, 1, 1], [], []>} : vector<8x32xf32>, vector<32x128xf32>, vector<8x128xf32> -> vector<8x128xf32>
    %130 = arith.addf %128, %129 : vector<8x128xf32>
    %131 = arith.negf %130 : vector<8x128xf32>
    %132 = math.exp %131 : vector<8x128xf32>
    %cst_64 = arith.constant 1.000000e+00 : f32
    %133 = vector.broadcast %cst_64 : f32 to vector<8x128xf32>
    %134 = arith.addf %133, %132 : vector<8x128xf32>
    %135 = arith.divf %133, %134 : vector<8x128xf32>
    %136 = vector.extract_strided_slice %130 {offsets = [0, 64], sizes = [8, 32], strides = [1, 1]} : vector<8x128xf32> to vector<8x32xf32>
    %137 = math.tanh %136 : vector<8x32xf32>
    %138 = vector.extract_strided_slice %135 {offsets = [0, 32], sizes = [8, 32], strides = [1, 1]} : vector<8x128xf32> to vector<8x32xf32>
    %139 = arith.mulf %138, %105 : vector<8x32xf32>
    %140 = vector.extract_strided_slice %135 {offsets = [0, 0], sizes = [8, 32], strides = [1, 1]} : vector<8x128xf32> to vector<8x32xf32>
    %141 = arith.mulf %140, %137 : vector<8x32xf32>
    %142 = arith.addf %139, %141 : vector<8x32xf32>
    %143 = vector.extract_strided_slice %135 {offsets = [0, 96], sizes = [8, 32], strides = [1, 1]} : vector<8x128xf32> to vector<8x32xf32>
    %144 = math.tanh %142 : vector<8x32xf32>
    %145 = arith.mulf %143, %144 : vector<8x32xf32>
    %cst_65 = arith.constant dense<0.000000e+00> : vector<8x128xf32>
    %146 = tpu.matmul %145, %82, %cst_65 {dimension_numbers = #tpu.dot_dimension_numbers<[1], [0], [0], [1], [0, 0, 1, 1], [], []>} : vector<8x32xf32>, vector<32x128xf32>, vector<8x128xf32> -> vector<8x128xf32>
    %cst_66 = arith.constant dense<0.000000e+00> : vector<8x128xf32>
    %147 = tpu.matmul %127, %80, %cst_66 {dimension_numbers = #tpu.dot_dimension_numbers<[1], [0], [0], [1], [0, 0, 1, 1], [], []>} : vector<8x32xf32>, vector<32x128xf32>, vector<8x128xf32> -> vector<8x128xf32>
    %148 = arith.addf %146, %147 : vector<8x128xf32>
    %149 = arith.addf %148, %86 : vector<8x128xf32>
    %150 = arith.negf %149 : vector<8x128xf32>
    %151 = math.exp %150 : vector<8x128xf32>
    %cst_67 = arith.constant 1.000000e+00 : f32
    %152 = vector.broadcast %cst_67 : f32 to vector<8x128xf32>
    %153 = arith.addf %152, %151 : vector<8x128xf32>
    %154 = arith.divf %152, %153 : vector<8x128xf32>
    %155 = vector.extract_strided_slice %149 {offsets = [0, 64], sizes = [8, 32], strides = [1, 1]} : vector<8x128xf32> to vector<8x32xf32>
    %156 = math.tanh %155 : vector<8x32xf32>
    %157 = vector.extract_strided_slice %154 {offsets = [0, 32], sizes = [8, 32], strides = [1, 1]} : vector<8x128xf32> to vector<8x32xf32>
    %158 = arith.mulf %157, %124 : vector<8x32xf32>
    %159 = vector.extract_strided_slice %154 {offsets = [0, 0], sizes = [8, 32], strides = [1, 1]} : vector<8x128xf32> to vector<8x32xf32>
    %160 = arith.mulf %159, %156 : vector<8x32xf32>
    %161 = arith.addf %158, %160 : vector<8x32xf32>
    %162 = vector.extract_strided_slice %154 {offsets = [0, 96], sizes = [8, 32], strides = [1, 1]} : vector<8x128xf32> to vector<8x32xf32>
    %163 = math.tanh %161 : vector<8x32xf32>
    %164 = arith.mulf %162, %163 : vector<8x32xf32>
    %c104 = arith.constant 104 : index
    %c0_68 = arith.constant 0 : index
    %165 = vector.load %arg13[%c104, %c0_68] : memref<128x128xf32, #tpu.memory_space<vmem>>, vector<8x128xf32>
    %cst_69 = arith.constant dense<0.000000e+00> : vector<8x128xf32>
    %166 = tpu.matmul %145, %78, %cst_69 {dimension_numbers = #tpu.dot_dimension_numbers<[1], [0], [0], [1], [0, 0, 1, 1], [], []>} : vector<8x32xf32>, vector<32x128xf32>, vector<8x128xf32> -> vector<8x128xf32>
    %167 = arith.addf %165, %166 : vector<8x128xf32>
    %168 = arith.negf %167 : vector<8x128xf32>
    %169 = math.exp %168 : vector<8x128xf32>
    %cst_70 = arith.constant 1.000000e+00 : f32
    %170 = vector.broadcast %cst_70 : f32 to vector<8x128xf32>
    %171 = arith.addf %170, %169 : vector<8x128xf32>
    %172 = arith.divf %170, %171 : vector<8x128xf32>
    %173 = vector.extract_strided_slice %167 {offsets = [0, 64], sizes = [8, 32], strides = [1, 1]} : vector<8x128xf32> to vector<8x32xf32>
    %174 = math.tanh %173 : vector<8x32xf32>
    %175 = vector.extract_strided_slice %172 {offsets = [0, 32], sizes = [8, 32], strides = [1, 1]} : vector<8x128xf32> to vector<8x32xf32>
    %176 = arith.mulf %175, %142 : vector<8x32xf32>
    %177 = vector.extract_strided_slice %172 {offsets = [0, 0], sizes = [8, 32], strides = [1, 1]} : vector<8x128xf32> to vector<8x32xf32>
    %178 = arith.mulf %177, %174 : vector<8x32xf32>
    %179 = arith.addf %176, %178 : vector<8x32xf32>
    %180 = vector.extract_strided_slice %172 {offsets = [0, 96], sizes = [8, 32], strides = [1, 1]} : vector<8x128xf32> to vector<8x32xf32>
    %181 = math.tanh %179 : vector<8x32xf32>
    %182 = arith.mulf %180, %181 : vector<8x32xf32>
    %cst_71 = arith.constant dense<0.000000e+00> : vector<8x128xf32>
    %183 = tpu.matmul %182, %82, %cst_71 {dimension_numbers = #tpu.dot_dimension_numbers<[1], [0], [0], [1], [0, 0, 1, 1], [], []>} : vector<8x32xf32>, vector<32x128xf32>, vector<8x128xf32> -> vector<8x128xf32>
    %cst_72 = arith.constant dense<0.000000e+00> : vector<8x128xf32>
    %184 = tpu.matmul %164, %80, %cst_72 {dimension_numbers = #tpu.dot_dimension_numbers<[1], [0], [0], [1], [0, 0, 1, 1], [], []>} : vector<8x32xf32>, vector<32x128xf32>, vector<8x128xf32> -> vector<8x128xf32>
    %185 = arith.addf %183, %184 : vector<8x128xf32>
    %186 = arith.addf %185, %86 : vector<8x128xf32>
    %187 = arith.negf %186 : vector<8x128xf32>
    %188 = math.exp %187 : vector<8x128xf32>
    %cst_73 = arith.constant 1.000000e+00 : f32
    %189 = vector.broadcast %cst_73 : f32 to vector<8x128xf32>
    %190 = arith.addf %189, %188 : vector<8x128xf32>
    %191 = arith.divf %189, %190 : vector<8x128xf32>
    %192 = vector.extract_strided_slice %186 {offsets = [0, 64], sizes = [8, 32], strides = [1, 1]} : vector<8x128xf32> to vector<8x32xf32>
    %193 = math.tanh %192 : vector<8x32xf32>
    %194 = vector.extract_strided_slice %191 {offsets = [0, 32], sizes = [8, 32], strides = [1, 1]} : vector<8x128xf32> to vector<8x32xf32>
    %195 = arith.mulf %194, %161 : vector<8x32xf32>
    %196 = vector.extract_strided_slice %191 {offsets = [0, 0], sizes = [8, 32], strides = [1, 1]} : vector<8x128xf32> to vector<8x32xf32>
    %197 = arith.mulf %196, %193 : vector<8x32xf32>
    %198 = arith.addf %195, %197 : vector<8x32xf32>
    %199 = vector.extract_strided_slice %191 {offsets = [0, 96], sizes = [8, 32], strides = [1, 1]} : vector<8x128xf32> to vector<8x32xf32>
    %200 = math.tanh %198 : vector<8x32xf32>
    %201 = arith.mulf %199, %200 : vector<8x32xf32>
    %c96 = arith.constant 96 : index
    %c0_74 = arith.constant 0 : index
    %202 = vector.load %arg13[%c96, %c0_74] : memref<128x128xf32, #tpu.memory_space<vmem>>, vector<8x128xf32>
    %cst_75 = arith.constant dense<0.000000e+00> : vector<8x128xf32>
    %203 = tpu.matmul %182, %78, %cst_75 {dimension_numbers = #tpu.dot_dimension_numbers<[1], [0], [0], [1], [0, 0, 1, 1], [], []>} : vector<8x32xf32>, vector<32x128xf32>, vector<8x128xf32> -> vector<8x128xf32>
    %204 = arith.addf %202, %203 : vector<8x128xf32>
    %205 = arith.negf %204 : vector<8x128xf32>
    %206 = math.exp %205 : vector<8x128xf32>
    %cst_76 = arith.constant 1.000000e+00 : f32
    %207 = vector.broadcast %cst_76 : f32 to vector<8x128xf32>
    %208 = arith.addf %207, %206 : vector<8x128xf32>
    %209 = arith.divf %207, %208 : vector<8x128xf32>
    %210 = vector.extract_strided_slice %204 {offsets = [0, 64], sizes = [8, 32], strides = [1, 1]} : vector<8x128xf32> to vector<8x32xf32>
    %211 = math.tanh %210 : vector<8x32xf32>
    %212 = vector.extract_strided_slice %209 {offsets = [0, 32], sizes = [8, 32], strides = [1, 1]} : vector<8x128xf32> to vector<8x32xf32>
    %213 = arith.mulf %212, %179 : vector<8x32xf32>
    %214 = vector.extract_strided_slice %209 {offsets = [0, 0], sizes = [8, 32], strides = [1, 1]} : vector<8x128xf32> to vector<8x32xf32>
    %215 = arith.mulf %214, %211 : vector<8x32xf32>
    %216 = arith.addf %213, %215 : vector<8x32xf32>
    %217 = vector.extract_strided_slice %209 {offsets = [0, 96], sizes = [8, 32], strides = [1, 1]} : vector<8x128xf32> to vector<8x32xf32>
    %218 = math.tanh %216 : vector<8x32xf32>
    %219 = arith.mulf %217, %218 : vector<8x32xf32>
    %cst_77 = arith.constant dense<0.000000e+00> : vector<8x128xf32>
    %220 = tpu.matmul %219, %82, %cst_77 {dimension_numbers = #tpu.dot_dimension_numbers<[1], [0], [0], [1], [0, 0, 1, 1], [], []>} : vector<8x32xf32>, vector<32x128xf32>, vector<8x128xf32> -> vector<8x128xf32>
    %cst_78 = arith.constant dense<0.000000e+00> : vector<8x128xf32>
    %221 = tpu.matmul %201, %80, %cst_78 {dimension_numbers = #tpu.dot_dimension_numbers<[1], [0], [0], [1], [0, 0, 1, 1], [], []>} : vector<8x32xf32>, vector<32x128xf32>, vector<8x128xf32> -> vector<8x128xf32>
    %222 = arith.addf %220, %221 : vector<8x128xf32>
    %223 = arith.addf %222, %86 : vector<8x128xf32>
    %224 = arith.negf %223 : vector<8x128xf32>
    %225 = math.exp %224 : vector<8x128xf32>
    %cst_79 = arith.constant 1.000000e+00 : f32
    %226 = vector.broadcast %cst_79 : f32 to vector<8x128xf32>
    %227 = arith.addf %226, %225 : vector<8x128xf32>
    %228 = arith.divf %226, %227 : vector<8x128xf32>
    %229 = vector.extract_strided_slice %223 {offsets = [0, 64], sizes = [8, 32], strides = [1, 1]} : vector<8x128xf32> to vector<8x32xf32>
    %230 = math.tanh %229 : vector<8x32xf32>
    %231 = vector.extract_strided_slice %228 {offsets = [0, 32], sizes = [8, 32], strides = [1, 1]} : vector<8x128xf32> to vector<8x32xf32>
    %232 = arith.mulf %231, %198 : vector<8x32xf32>
    %233 = vector.extract_strided_slice %228 {offsets = [0, 0], sizes = [8, 32], strides = [1, 1]} : vector<8x128xf32> to vector<8x32xf32>
    %234 = arith.mulf %233, %230 : vector<8x32xf32>
    %235 = arith.addf %232, %234 : vector<8x32xf32>
    %236 = vector.extract_strided_slice %228 {offsets = [0, 96], sizes = [8, 32], strides = [1, 1]} : vector<8x128xf32> to vector<8x32xf32>
    %237 = math.tanh %235 : vector<8x32xf32>
    %238 = arith.mulf %236, %237 : vector<8x32xf32>
    %c88 = arith.constant 88 : index
    %c0_80 = arith.constant 0 : index
    %239 = vector.load %arg13[%c88, %c0_80] : memref<128x128xf32, #tpu.memory_space<vmem>>, vector<8x128xf32>
    %cst_81 = arith.constant dense<0.000000e+00> : vector<8x128xf32>
    %240 = tpu.matmul %219, %78, %cst_81 {dimension_numbers = #tpu.dot_dimension_numbers<[1], [0], [0], [1], [0, 0, 1, 1], [], []>} : vector<8x32xf32>, vector<32x128xf32>, vector<8x128xf32> -> vector<8x128xf32>
    %241 = arith.addf %239, %240 : vector<8x128xf32>
    %242 = arith.negf %241 : vector<8x128xf32>
    %243 = math.exp %242 : vector<8x128xf32>
    %cst_82 = arith.constant 1.000000e+00 : f32
    %244 = vector.broadcast %cst_82 : f32 to vector<8x128xf32>
    %245 = arith.addf %244, %243 : vector<8x128xf32>
    %246 = arith.divf %244, %245 : vector<8x128xf32>
    %247 = vector.extract_strided_slice %241 {offsets = [0, 64], sizes = [8, 32], strides = [1, 1]} : vector<8x128xf32> to vector<8x32xf32>
    %248 = math.tanh %247 : vector<8x32xf32>
    %249 = vector.extract_strided_slice %246 {offsets = [0, 32], sizes = [8, 32], strides = [1, 1]} : vector<8x128xf32> to vector<8x32xf32>
    %250 = arith.mulf %249, %216 : vector<8x32xf32>
    %251 = vector.extract_strided_slice %246 {offsets = [0, 0], sizes = [8, 32], strides = [1, 1]} : vector<8x128xf32> to vector<8x32xf32>
    %252 = arith.mulf %251, %248 : vector<8x32xf32>
    %253 = arith.addf %250, %252 : vector<8x32xf32>
    %254 = vector.extract_strided_slice %246 {offsets = [0, 96], sizes = [8, 32], strides = [1, 1]} : vector<8x128xf32> to vector<8x32xf32>
    %255 = math.tanh %253 : vector<8x32xf32>
    %256 = arith.mulf %254, %255 : vector<8x32xf32>
    %cst_83 = arith.constant dense<0.000000e+00> : vector<8x128xf32>
    %257 = tpu.matmul %256, %82, %cst_83 {dimension_numbers = #tpu.dot_dimension_numbers<[1], [0], [0], [1], [0, 0, 1, 1], [], []>} : vector<8x32xf32>, vector<32x128xf32>, vector<8x128xf32> -> vector<8x128xf32>
    %cst_84 = arith.constant dense<0.000000e+00> : vector<8x128xf32>
    %258 = tpu.matmul %238, %80, %cst_84 {dimension_numbers = #tpu.dot_dimension_numbers<[1], [0], [0], [1], [0, 0, 1, 1], [], []>} : vector<8x32xf32>, vector<32x128xf32>, vector<8x128xf32> -> vector<8x128xf32>
    %259 = arith.addf %257, %258 : vector<8x128xf32>
    %260 = arith.addf %259, %86 : vector<8x128xf32>
    %261 = arith.negf %260 : vector<8x128xf32>
    %262 = math.exp %261 : vector<8x128xf32>
    %cst_85 = arith.constant 1.000000e+00 : f32
    %263 = vector.broadcast %cst_85 : f32 to vector<8x128xf32>
    %264 = arith.addf %263, %262 : vector<8x128xf32>
    %265 = arith.divf %263, %264 : vector<8x128xf32>
    %266 = vector.extract_strided_slice %260 {offsets = [0, 64], sizes = [8, 32], strides = [1, 1]} : vector<8x128xf32> to vector<8x32xf32>
    %267 = math.tanh %266 : vector<8x32xf32>
    %268 = vector.extract_strided_slice %265 {offsets = [0, 32], sizes = [8, 32], strides = [1, 1]} : vector<8x128xf32> to vector<8x32xf32>
    %269 = arith.mulf %268, %235 : vector<8x32xf32>
    %270 = vector.extract_strided_slice %265 {offsets = [0, 0], sizes = [8, 32], strides = [1, 1]} : vector<8x128xf32> to vector<8x32xf32>
    %271 = arith.mulf %270, %267 : vector<8x32xf32>
    %272 = arith.addf %269, %271 : vector<8x32xf32>
    %273 = vector.extract_strided_slice %265 {offsets = [0, 96], sizes = [8, 32], strides = [1, 1]} : vector<8x128xf32> to vector<8x32xf32>
    %274 = math.tanh %272 : vector<8x32xf32>
    %275 = arith.mulf %273, %274 : vector<8x32xf32>
    %c80 = arith.constant 80 : index
    %c0_86 = arith.constant 0 : index
    %276 = vector.load %arg13[%c80, %c0_86] : memref<128x128xf32, #tpu.memory_space<vmem>>, vector<8x128xf32>
    %cst_87 = arith.constant dense<0.000000e+00> : vector<8x128xf32>
    %277 = tpu.matmul %256, %78, %cst_87 {dimension_numbers = #tpu.dot_dimension_numbers<[1], [0], [0], [1], [0, 0, 1, 1], [], []>} : vector<8x32xf32>, vector<32x128xf32>, vector<8x128xf32> -> vector<8x128xf32>
    %278 = arith.addf %276, %277 : vector<8x128xf32>
    %279 = arith.negf %278 : vector<8x128xf32>
    %280 = math.exp %279 : vector<8x128xf32>
    %cst_88 = arith.constant 1.000000e+00 : f32
    %281 = vector.broadcast %cst_88 : f32 to vector<8x128xf32>
    %282 = arith.addf %281, %280 : vector<8x128xf32>
    %283 = arith.divf %281, %282 : vector<8x128xf32>
    %284 = vector.extract_strided_slice %278 {offsets = [0, 64], sizes = [8, 32], strides = [1, 1]} : vector<8x128xf32> to vector<8x32xf32>
    %285 = math.tanh %284 : vector<8x32xf32>
    %286 = vector.extract_strided_slice %283 {offsets = [0, 32], sizes = [8, 32], strides = [1, 1]} : vector<8x128xf32> to vector<8x32xf32>
    %287 = arith.mulf %286, %253 : vector<8x32xf32>
    %288 = vector.extract_strided_slice %283 {offsets = [0, 0], sizes = [8, 32], strides = [1, 1]} : vector<8x128xf32> to vector<8x32xf32>
    %289 = arith.mulf %288, %285 : vector<8x32xf32>
    %290 = arith.addf %287, %289 : vector<8x32xf32>
    %291 = vector.extract_strided_slice %283 {offsets = [0, 96], sizes = [8, 32], strides = [1, 1]} : vector<8x128xf32> to vector<8x32xf32>
    %292 = math.tanh %290 : vector<8x32xf32>
    %293 = arith.mulf %291, %292 : vector<8x32xf32>
    %cst_89 = arith.constant dense<0.000000e+00> : vector<8x128xf32>
    %294 = tpu.matmul %293, %82, %cst_89 {dimension_numbers = #tpu.dot_dimension_numbers<[1], [0], [0], [1], [0, 0, 1, 1], [], []>} : vector<8x32xf32>, vector<32x128xf32>, vector<8x128xf32> -> vector<8x128xf32>
    %cst_90 = arith.constant dense<0.000000e+00> : vector<8x128xf32>
    %295 = tpu.matmul %275, %80, %cst_90 {dimension_numbers = #tpu.dot_dimension_numbers<[1], [0], [0], [1], [0, 0, 1, 1], [], []>} : vector<8x32xf32>, vector<32x128xf32>, vector<8x128xf32> -> vector<8x128xf32>
    %296 = arith.addf %294, %295 : vector<8x128xf32>
    %297 = arith.addf %296, %86 : vector<8x128xf32>
    %298 = arith.negf %297 : vector<8x128xf32>
    %299 = math.exp %298 : vector<8x128xf32>
    %cst_91 = arith.constant 1.000000e+00 : f32
    %300 = vector.broadcast %cst_91 : f32 to vector<8x128xf32>
    %301 = arith.addf %300, %299 : vector<8x128xf32>
    %302 = arith.divf %300, %301 : vector<8x128xf32>
    %303 = vector.extract_strided_slice %297 {offsets = [0, 64], sizes = [8, 32], strides = [1, 1]} : vector<8x128xf32> to vector<8x32xf32>
    %304 = math.tanh %303 : vector<8x32xf32>
    %305 = vector.extract_strided_slice %302 {offsets = [0, 32], sizes = [8, 32], strides = [1, 1]} : vector<8x128xf32> to vector<8x32xf32>
    %306 = arith.mulf %305, %272 : vector<8x32xf32>
    %307 = vector.extract_strided_slice %302 {offsets = [0, 0], sizes = [8, 32], strides = [1, 1]} : vector<8x128xf32> to vector<8x32xf32>
    %308 = arith.mulf %307, %304 : vector<8x32xf32>
    %309 = arith.addf %306, %308 : vector<8x32xf32>
    %310 = vector.extract_strided_slice %302 {offsets = [0, 96], sizes = [8, 32], strides = [1, 1]} : vector<8x128xf32> to vector<8x32xf32>
    %311 = math.tanh %309 : vector<8x32xf32>
    %312 = arith.mulf %310, %311 : vector<8x32xf32>
    %c72 = arith.constant 72 : index
    %c0_92 = arith.constant 0 : index
    %313 = vector.load %arg13[%c72, %c0_92] : memref<128x128xf32, #tpu.memory_space<vmem>>, vector<8x128xf32>
    %cst_93 = arith.constant dense<0.000000e+00> : vector<8x128xf32>
    %314 = tpu.matmul %293, %78, %cst_93 {dimension_numbers = #tpu.dot_dimension_numbers<[1], [0], [0], [1], [0, 0, 1, 1], [], []>} : vector<8x32xf32>, vector<32x128xf32>, vector<8x128xf32> -> vector<8x128xf32>
    %315 = arith.addf %313, %314 : vector<8x128xf32>
    %316 = arith.negf %315 : vector<8x128xf32>
    %317 = math.exp %316 : vector<8x128xf32>
    %cst_94 = arith.constant 1.000000e+00 : f32
    %318 = vector.broadcast %cst_94 : f32 to vector<8x128xf32>
    %319 = arith.addf %318, %317 : vector<8x128xf32>
    %320 = arith.divf %318, %319 : vector<8x128xf32>
    %321 = vector.extract_strided_slice %315 {offsets = [0, 64], sizes = [8, 32], strides = [1, 1]} : vector<8x128xf32> to vector<8x32xf32>
    %322 = math.tanh %321 : vector<8x32xf32>
    %323 = vector.extract_strided_slice %320 {offsets = [0, 32], sizes = [8, 32], strides = [1, 1]} : vector<8x128xf32> to vector<8x32xf32>
    %324 = arith.mulf %323, %290 : vector<8x32xf32>
    %325 = vector.extract_strided_slice %320 {offsets = [0, 0], sizes = [8, 32], strides = [1, 1]} : vector<8x128xf32> to vector<8x32xf32>
    %326 = arith.mulf %325, %322 : vector<8x32xf32>
    %327 = arith.addf %324, %326 : vector<8x32xf32>
    %328 = vector.extract_strided_slice %320 {offsets = [0, 96], sizes = [8, 32], strides = [1, 1]} : vector<8x128xf32> to vector<8x32xf32>
    %329 = math.tanh %327 : vector<8x32xf32>
    %330 = arith.mulf %328, %329 : vector<8x32xf32>
    %cst_95 = arith.constant dense<0.000000e+00> : vector<8x128xf32>
    %331 = tpu.matmul %330, %82, %cst_95 {dimension_numbers = #tpu.dot_dimension_numbers<[1], [0], [0], [1], [0, 0, 1, 1], [], []>} : vector<8x32xf32>, vector<32x128xf32>, vector<8x128xf32> -> vector<8x128xf32>
    %cst_96 = arith.constant dense<0.000000e+00> : vector<8x128xf32>
    %332 = tpu.matmul %312, %80, %cst_96 {dimension_numbers = #tpu.dot_dimension_numbers<[1], [0], [0], [1], [0, 0, 1, 1], [], []>} : vector<8x32xf32>, vector<32x128xf32>, vector<8x128xf32> -> vector<8x128xf32>
    %333 = arith.addf %331, %332 : vector<8x128xf32>
    %334 = arith.addf %333, %86 : vector<8x128xf32>
    %335 = arith.negf %334 : vector<8x128xf32>
    %336 = math.exp %335 : vector<8x128xf32>
    %cst_97 = arith.constant 1.000000e+00 : f32
    %337 = vector.broadcast %cst_97 : f32 to vector<8x128xf32>
    %338 = arith.addf %337, %336 : vector<8x128xf32>
    %339 = arith.divf %337, %338 : vector<8x128xf32>
    %340 = vector.extract_strided_slice %334 {offsets = [0, 64], sizes = [8, 32], strides = [1, 1]} : vector<8x128xf32> to vector<8x32xf32>
    %341 = math.tanh %340 : vector<8x32xf32>
    %342 = vector.extract_strided_slice %339 {offsets = [0, 32], sizes = [8, 32], strides = [1, 1]} : vector<8x128xf32> to vector<8x32xf32>
    %343 = arith.mulf %342, %309 : vector<8x32xf32>
    %344 = vector.extract_strided_slice %339 {offsets = [0, 0], sizes = [8, 32], strides = [1, 1]} : vector<8x128xf32> to vector<8x32xf32>
    %345 = arith.mulf %344, %341 : vector<8x32xf32>
    %346 = arith.addf %343, %345 : vector<8x32xf32>
    %347 = vector.extract_strided_slice %339 {offsets = [0, 96], sizes = [8, 32], strides = [1, 1]} : vector<8x128xf32> to vector<8x32xf32>
    %348 = math.tanh %346 : vector<8x32xf32>
    %349 = arith.mulf %347, %348 : vector<8x32xf32>
    %c64 = arith.constant 64 : index
    %c0_98 = arith.constant 0 : index
    %350 = vector.load %arg13[%c64, %c0_98] : memref<128x128xf32, #tpu.memory_space<vmem>>, vector<8x128xf32>
    %cst_99 = arith.constant dense<0.000000e+00> : vector<8x128xf32>
    %351 = tpu.matmul %330, %78, %cst_99 {dimension_numbers = #tpu.dot_dimension_numbers<[1], [0], [0], [1], [0, 0, 1, 1], [], []>} : vector<8x32xf32>, vector<32x128xf32>, vector<8x128xf32> -> vector<8x128xf32>
    %352 = arith.addf %350, %351 : vector<8x128xf32>
    %353 = arith.negf %352 : vector<8x128xf32>
    %354 = math.exp %353 : vector<8x128xf32>
    %cst_100 = arith.constant 1.000000e+00 : f32
    %355 = vector.broadcast %cst_100 : f32 to vector<8x128xf32>
    %356 = arith.addf %355, %354 : vector<8x128xf32>
    %357 = arith.divf %355, %356 : vector<8x128xf32>
    %358 = vector.extract_strided_slice %352 {offsets = [0, 64], sizes = [8, 32], strides = [1, 1]} : vector<8x128xf32> to vector<8x32xf32>
    %359 = math.tanh %358 : vector<8x32xf32>
    %360 = vector.extract_strided_slice %357 {offsets = [0, 32], sizes = [8, 32], strides = [1, 1]} : vector<8x128xf32> to vector<8x32xf32>
    %361 = arith.mulf %360, %327 : vector<8x32xf32>
    %362 = vector.extract_strided_slice %357 {offsets = [0, 0], sizes = [8, 32], strides = [1, 1]} : vector<8x128xf32> to vector<8x32xf32>
    %363 = arith.mulf %362, %359 : vector<8x32xf32>
    %364 = arith.addf %361, %363 : vector<8x32xf32>
    %365 = vector.extract_strided_slice %357 {offsets = [0, 96], sizes = [8, 32], strides = [1, 1]} : vector<8x128xf32> to vector<8x32xf32>
    %366 = math.tanh %364 : vector<8x32xf32>
    %367 = arith.mulf %365, %366 : vector<8x32xf32>
    %cst_101 = arith.constant dense<0.000000e+00> : vector<8x128xf32>
    %368 = tpu.matmul %367, %82, %cst_101 {dimension_numbers = #tpu.dot_dimension_numbers<[1], [0], [0], [1], [0, 0, 1, 1], [], []>} : vector<8x32xf32>, vector<32x128xf32>, vector<8x128xf32> -> vector<8x128xf32>
    %cst_102 = arith.constant dense<0.000000e+00> : vector<8x128xf32>
    %369 = tpu.matmul %349, %80, %cst_102 {dimension_numbers = #tpu.dot_dimension_numbers<[1], [0], [0], [1], [0, 0, 1, 1], [], []>} : vector<8x32xf32>, vector<32x128xf32>, vector<8x128xf32> -> vector<8x128xf32>
    %370 = arith.addf %368, %369 : vector<8x128xf32>
    %371 = arith.addf %370, %86 : vector<8x128xf32>
    %372 = arith.negf %371 : vector<8x128xf32>
    %373 = math.exp %372 : vector<8x128xf32>
    %cst_103 = arith.constant 1.000000e+00 : f32
    %374 = vector.broadcast %cst_103 : f32 to vector<8x128xf32>
    %375 = arith.addf %374, %373 : vector<8x128xf32>
    %376 = arith.divf %374, %375 : vector<8x128xf32>
    %377 = vector.extract_strided_slice %371 {offsets = [0, 64], sizes = [8, 32], strides = [1, 1]} : vector<8x128xf32> to vector<8x32xf32>
    %378 = math.tanh %377 : vector<8x32xf32>
    %379 = vector.extract_strided_slice %376 {offsets = [0, 32], sizes = [8, 32], strides = [1, 1]} : vector<8x128xf32> to vector<8x32xf32>
    %380 = arith.mulf %379, %346 : vector<8x32xf32>
    %381 = vector.extract_strided_slice %376 {offsets = [0, 0], sizes = [8, 32], strides = [1, 1]} : vector<8x128xf32> to vector<8x32xf32>
    %382 = arith.mulf %381, %378 : vector<8x32xf32>
    %383 = arith.addf %380, %382 : vector<8x32xf32>
    %384 = vector.extract_strided_slice %376 {offsets = [0, 96], sizes = [8, 32], strides = [1, 1]} : vector<8x128xf32> to vector<8x32xf32>
    %385 = math.tanh %383 : vector<8x32xf32>
    %386 = arith.mulf %384, %385 : vector<8x32xf32>
    %c56 = arith.constant 56 : index
    %c0_104 = arith.constant 0 : index
    %387 = vector.load %arg13[%c56, %c0_104] : memref<128x128xf32, #tpu.memory_space<vmem>>, vector<8x128xf32>
    %cst_105 = arith.constant dense<0.000000e+00> : vector<8x128xf32>
    %388 = tpu.matmul %367, %78, %cst_105 {dimension_numbers = #tpu.dot_dimension_numbers<[1], [0], [0], [1], [0, 0, 1, 1], [], []>} : vector<8x32xf32>, vector<32x128xf32>, vector<8x128xf32> -> vector<8x128xf32>
    %389 = arith.addf %387, %388 : vector<8x128xf32>
    %390 = arith.negf %389 : vector<8x128xf32>
    %391 = math.exp %390 : vector<8x128xf32>
    %cst_106 = arith.constant 1.000000e+00 : f32
    %392 = vector.broadcast %cst_106 : f32 to vector<8x128xf32>
    %393 = arith.addf %392, %391 : vector<8x128xf32>
    %394 = arith.divf %392, %393 : vector<8x128xf32>
    %395 = vector.extract_strided_slice %389 {offsets = [0, 64], sizes = [8, 32], strides = [1, 1]} : vector<8x128xf32> to vector<8x32xf32>
    %396 = math.tanh %395 : vector<8x32xf32>
    %397 = vector.extract_strided_slice %394 {offsets = [0, 32], sizes = [8, 32], strides = [1, 1]} : vector<8x128xf32> to vector<8x32xf32>
    %398 = arith.mulf %397, %364 : vector<8x32xf32>
    %399 = vector.extract_strided_slice %394 {offsets = [0, 0], sizes = [8, 32], strides = [1, 1]} : vector<8x128xf32> to vector<8x32xf32>
    %400 = arith.mulf %399, %396 : vector<8x32xf32>
    %401 = arith.addf %398, %400 : vector<8x32xf32>
    %402 = vector.extract_strided_slice %394 {offsets = [0, 96], sizes = [8, 32], strides = [1, 1]} : vector<8x128xf32> to vector<8x32xf32>
    %403 = math.tanh %401 : vector<8x32xf32>
    %404 = arith.mulf %402, %403 : vector<8x32xf32>
    %cst_107 = arith.constant dense<0.000000e+00> : vector<8x128xf32>
    %405 = tpu.matmul %404, %82, %cst_107 {dimension_numbers = #tpu.dot_dimension_numbers<[1], [0], [0], [1], [0, 0, 1, 1], [], []>} : vector<8x32xf32>, vector<32x128xf32>, vector<8x128xf32> -> vector<8x128xf32>
    %cst_108 = arith.constant dense<0.000000e+00> : vector<8x128xf32>
    %406 = tpu.matmul %386, %80, %cst_108 {dimension_numbers = #tpu.dot_dimension_numbers<[1], [0], [0], [1], [0, 0, 1, 1], [], []>} : vector<8x32xf32>, vector<32x128xf32>, vector<8x128xf32> -> vector<8x128xf32>
    %407 = arith.addf %405, %406 : vector<8x128xf32>
    %408 = arith.addf %407, %86 : vector<8x128xf32>
    %409 = arith.negf %408 : vector<8x128xf32>
    %410 = math.exp %409 : vector<8x128xf32>
    %cst_109 = arith.constant 1.000000e+00 : f32
    %411 = vector.broadcast %cst_109 : f32 to vector<8x128xf32>
    %412 = arith.addf %411, %410 : vector<8x128xf32>
    %413 = arith.divf %411, %412 : vector<8x128xf32>
    %414 = vector.extract_strided_slice %408 {offsets = [0, 64], sizes = [8, 32], strides = [1, 1]} : vector<8x128xf32> to vector<8x32xf32>
    %415 = math.tanh %414 : vector<8x32xf32>
    %416 = vector.extract_strided_slice %413 {offsets = [0, 32], sizes = [8, 32], strides = [1, 1]} : vector<8x128xf32> to vector<8x32xf32>
    %417 = arith.mulf %416, %383 : vector<8x32xf32>
    %418 = vector.extract_strided_slice %413 {offsets = [0, 0], sizes = [8, 32], strides = [1, 1]} : vector<8x128xf32> to vector<8x32xf32>
    %419 = arith.mulf %418, %415 : vector<8x32xf32>
    %420 = arith.addf %417, %419 : vector<8x32xf32>
    %421 = vector.extract_strided_slice %413 {offsets = [0, 96], sizes = [8, 32], strides = [1, 1]} : vector<8x128xf32> to vector<8x32xf32>
    %422 = math.tanh %420 : vector<8x32xf32>
    %423 = arith.mulf %421, %422 : vector<8x32xf32>
    %c48 = arith.constant 48 : index
    %c0_110 = arith.constant 0 : index
    %424 = vector.load %arg13[%c48, %c0_110] : memref<128x128xf32, #tpu.memory_space<vmem>>, vector<8x128xf32>
    %cst_111 = arith.constant dense<0.000000e+00> : vector<8x128xf32>
    %425 = tpu.matmul %404, %78, %cst_111 {dimension_numbers = #tpu.dot_dimension_numbers<[1], [0], [0], [1], [0, 0, 1, 1], [], []>} : vector<8x32xf32>, vector<32x128xf32>, vector<8x128xf32> -> vector<8x128xf32>
    %426 = arith.addf %424, %425 : vector<8x128xf32>
    %427 = arith.negf %426 : vector<8x128xf32>
    %428 = math.exp %427 : vector<8x128xf32>
    %cst_112 = arith.constant 1.000000e+00 : f32
    %429 = vector.broadcast %cst_112 : f32 to vector<8x128xf32>
    %430 = arith.addf %429, %428 : vector<8x128xf32>
    %431 = arith.divf %429, %430 : vector<8x128xf32>
    %432 = vector.extract_strided_slice %426 {offsets = [0, 64], sizes = [8, 32], strides = [1, 1]} : vector<8x128xf32> to vector<8x32xf32>
    %433 = math.tanh %432 : vector<8x32xf32>
    %434 = vector.extract_strided_slice %431 {offsets = [0, 32], sizes = [8, 32], strides = [1, 1]} : vector<8x128xf32> to vector<8x32xf32>
    %435 = arith.mulf %434, %401 : vector<8x32xf32>
    %436 = vector.extract_strided_slice %431 {offsets = [0, 0], sizes = [8, 32], strides = [1, 1]} : vector<8x128xf32> to vector<8x32xf32>
    %437 = arith.mulf %436, %433 : vector<8x32xf32>
    %438 = arith.addf %435, %437 : vector<8x32xf32>
    %439 = vector.extract_strided_slice %431 {offsets = [0, 96], sizes = [8, 32], strides = [1, 1]} : vector<8x128xf32> to vector<8x32xf32>
    %440 = math.tanh %438 : vector<8x32xf32>
    %441 = arith.mulf %439, %440 : vector<8x32xf32>
    %cst_113 = arith.constant dense<0.000000e+00> : vector<8x128xf32>
    %442 = tpu.matmul %441, %82, %cst_113 {dimension_numbers = #tpu.dot_dimension_numbers<[1], [0], [0], [1], [0, 0, 1, 1], [], []>} : vector<8x32xf32>, vector<32x128xf32>, vector<8x128xf32> -> vector<8x128xf32>
    %cst_114 = arith.constant dense<0.000000e+00> : vector<8x128xf32>
    %443 = tpu.matmul %423, %80, %cst_114 {dimension_numbers = #tpu.dot_dimension_numbers<[1], [0], [0], [1], [0, 0, 1, 1], [], []>} : vector<8x32xf32>, vector<32x128xf32>, vector<8x128xf32> -> vector<8x128xf32>
    %444 = arith.addf %442, %443 : vector<8x128xf32>
    %445 = arith.addf %444, %86 : vector<8x128xf32>
    %446 = arith.negf %445 : vector<8x128xf32>
    %447 = math.exp %446 : vector<8x128xf32>
    %cst_115 = arith.constant 1.000000e+00 : f32
    %448 = vector.broadcast %cst_115 : f32 to vector<8x128xf32>
    %449 = arith.addf %448, %447 : vector<8x128xf32>
    %450 = arith.divf %448, %449 : vector<8x128xf32>
    %451 = vector.extract_strided_slice %445 {offsets = [0, 64], sizes = [8, 32], strides = [1, 1]} : vector<8x128xf32> to vector<8x32xf32>
    %452 = math.tanh %451 : vector<8x32xf32>
    %453 = vector.extract_strided_slice %450 {offsets = [0, 32], sizes = [8, 32], strides = [1, 1]} : vector<8x128xf32> to vector<8x32xf32>
    %454 = arith.mulf %453, %420 : vector<8x32xf32>
    %455 = vector.extract_strided_slice %450 {offsets = [0, 0], sizes = [8, 32], strides = [1, 1]} : vector<8x128xf32> to vector<8x32xf32>
    %456 = arith.mulf %455, %452 : vector<8x32xf32>
    %457 = arith.addf %454, %456 : vector<8x32xf32>
    %458 = vector.extract_strided_slice %450 {offsets = [0, 96], sizes = [8, 32], strides = [1, 1]} : vector<8x128xf32> to vector<8x32xf32>
    %459 = math.tanh %457 : vector<8x32xf32>
    %460 = arith.mulf %458, %459 : vector<8x32xf32>
    %c40 = arith.constant 40 : index
    %c0_116 = arith.constant 0 : index
    %461 = vector.load %arg13[%c40, %c0_116] : memref<128x128xf32, #tpu.memory_space<vmem>>, vector<8x128xf32>
    %cst_117 = arith.constant dense<0.000000e+00> : vector<8x128xf32>
    %462 = tpu.matmul %441, %78, %cst_117 {dimension_numbers = #tpu.dot_dimension_numbers<[1], [0], [0], [1], [0, 0, 1, 1], [], []>} : vector<8x32xf32>, vector<32x128xf32>, vector<8x128xf32> -> vector<8x128xf32>
    %463 = arith.addf %461, %462 : vector<8x128xf32>
    %464 = arith.negf %463 : vector<8x128xf32>
    %465 = math.exp %464 : vector<8x128xf32>
    %cst_118 = arith.constant 1.000000e+00 : f32
    %466 = vector.broadcast %cst_118 : f32 to vector<8x128xf32>
    %467 = arith.addf %466, %465 : vector<8x128xf32>
    %468 = arith.divf %466, %467 : vector<8x128xf32>
    %469 = vector.extract_strided_slice %463 {offsets = [0, 64], sizes = [8, 32], strides = [1, 1]} : vector<8x128xf32> to vector<8x32xf32>
    %470 = math.tanh %469 : vector<8x32xf32>
    %471 = vector.extract_strided_slice %468 {offsets = [0, 32], sizes = [8, 32], strides = [1, 1]} : vector<8x128xf32> to vector<8x32xf32>
    %472 = arith.mulf %471, %438 : vector<8x32xf32>
    %473 = vector.extract_strided_slice %468 {offsets = [0, 0], sizes = [8, 32], strides = [1, 1]} : vector<8x128xf32> to vector<8x32xf32>
    %474 = arith.mulf %473, %470 : vector<8x32xf32>
    %475 = arith.addf %472, %474 : vector<8x32xf32>
    %476 = vector.extract_strided_slice %468 {offsets = [0, 96], sizes = [8, 32], strides = [1, 1]} : vector<8x128xf32> to vector<8x32xf32>
    %477 = math.tanh %475 : vector<8x32xf32>
    %478 = arith.mulf %476, %477 : vector<8x32xf32>
    %cst_119 = arith.constant dense<0.000000e+00> : vector<8x128xf32>
    %479 = tpu.matmul %478, %82, %cst_119 {dimension_numbers = #tpu.dot_dimension_numbers<[1], [0], [0], [1], [0, 0, 1, 1], [], []>} : vector<8x32xf32>, vector<32x128xf32>, vector<8x128xf32> -> vector<8x128xf32>
    %cst_120 = arith.constant dense<0.000000e+00> : vector<8x128xf32>
    %480 = tpu.matmul %460, %80, %cst_120 {dimension_numbers = #tpu.dot_dimension_numbers<[1], [0], [0], [1], [0, 0, 1, 1], [], []>} : vector<8x32xf32>, vector<32x128xf32>, vector<8x128xf32> -> vector<8x128xf32>
    %481 = arith.addf %479, %480 : vector<8x128xf32>
    %482 = arith.addf %481, %86 : vector<8x128xf32>
    %483 = arith.negf %482 : vector<8x128xf32>
    %484 = math.exp %483 : vector<8x128xf32>
    %cst_121 = arith.constant 1.000000e+00 : f32
    %485 = vector.broadcast %cst_121 : f32 to vector<8x128xf32>
    %486 = arith.addf %485, %484 : vector<8x128xf32>
    %487 = arith.divf %485, %486 : vector<8x128xf32>
    %488 = vector.extract_strided_slice %482 {offsets = [0, 64], sizes = [8, 32], strides = [1, 1]} : vector<8x128xf32> to vector<8x32xf32>
    %489 = math.tanh %488 : vector<8x32xf32>
    %490 = vector.extract_strided_slice %487 {offsets = [0, 32], sizes = [8, 32], strides = [1, 1]} : vector<8x128xf32> to vector<8x32xf32>
    %491 = arith.mulf %490, %457 : vector<8x32xf32>
    %492 = vector.extract_strided_slice %487 {offsets = [0, 0], sizes = [8, 32], strides = [1, 1]} : vector<8x128xf32> to vector<8x32xf32>
    %493 = arith.mulf %492, %489 : vector<8x32xf32>
    %494 = arith.addf %491, %493 : vector<8x32xf32>
    %495 = vector.extract_strided_slice %487 {offsets = [0, 96], sizes = [8, 32], strides = [1, 1]} : vector<8x128xf32> to vector<8x32xf32>
    %496 = math.tanh %494 : vector<8x32xf32>
    %497 = arith.mulf %495, %496 : vector<8x32xf32>
    %c32 = arith.constant 32 : index
    %c0_122 = arith.constant 0 : index
    %498 = vector.load %arg13[%c32, %c0_122] : memref<128x128xf32, #tpu.memory_space<vmem>>, vector<8x128xf32>
    %cst_123 = arith.constant dense<0.000000e+00> : vector<8x128xf32>
    %499 = tpu.matmul %478, %78, %cst_123 {dimension_numbers = #tpu.dot_dimension_numbers<[1], [0], [0], [1], [0, 0, 1, 1], [], []>} : vector<8x32xf32>, vector<32x128xf32>, vector<8x128xf32> -> vector<8x128xf32>
    %500 = arith.addf %498, %499 : vector<8x128xf32>
    %501 = arith.negf %500 : vector<8x128xf32>
    %502 = math.exp %501 : vector<8x128xf32>
    %cst_124 = arith.constant 1.000000e+00 : f32
    %503 = vector.broadcast %cst_124 : f32 to vector<8x128xf32>
    %504 = arith.addf %503, %502 : vector<8x128xf32>
    %505 = arith.divf %503, %504 : vector<8x128xf32>
    %506 = vector.extract_strided_slice %500 {offsets = [0, 64], sizes = [8, 32], strides = [1, 1]} : vector<8x128xf32> to vector<8x32xf32>
    %507 = math.tanh %506 : vector<8x32xf32>
    %508 = vector.extract_strided_slice %505 {offsets = [0, 32], sizes = [8, 32], strides = [1, 1]} : vector<8x128xf32> to vector<8x32xf32>
    %509 = arith.mulf %508, %475 : vector<8x32xf32>
    %510 = vector.extract_strided_slice %505 {offsets = [0, 0], sizes = [8, 32], strides = [1, 1]} : vector<8x128xf32> to vector<8x32xf32>
    %511 = arith.mulf %510, %507 : vector<8x32xf32>
    %512 = arith.addf %509, %511 : vector<8x32xf32>
    %513 = vector.extract_strided_slice %505 {offsets = [0, 96], sizes = [8, 32], strides = [1, 1]} : vector<8x128xf32> to vector<8x32xf32>
    %514 = math.tanh %512 : vector<8x32xf32>
    %515 = arith.mulf %513, %514 : vector<8x32xf32>
    %cst_125 = arith.constant dense<0.000000e+00> : vector<8x128xf32>
    %516 = tpu.matmul %515, %82, %cst_125 {dimension_numbers = #tpu.dot_dimension_numbers<[1], [0], [0], [1], [0, 0, 1, 1], [], []>} : vector<8x32xf32>, vector<32x128xf32>, vector<8x128xf32> -> vector<8x128xf32>
    %cst_126 = arith.constant dense<0.000000e+00> : vector<8x128xf32>
    %517 = tpu.matmul %497, %80, %cst_126 {dimension_numbers = #tpu.dot_dimension_numbers<[1], [0], [0], [1], [0, 0, 1, 1], [], []>} : vector<8x32xf32>, vector<32x128xf32>, vector<8x128xf32> -> vector<8x128xf32>
    %518 = arith.addf %516, %517 : vector<8x128xf32>
    %519 = arith.addf %518, %86 : vector<8x128xf32>
    %520 = arith.negf %519 : vector<8x128xf32>
    %521 = math.exp %520 : vector<8x128xf32>
    %cst_127 = arith.constant 1.000000e+00 : f32
    %522 = vector.broadcast %cst_127 : f32 to vector<8x128xf32>
    %523 = arith.addf %522, %521 : vector<8x128xf32>
    %524 = arith.divf %522, %523 : vector<8x128xf32>
    %525 = vector.extract_strided_slice %519 {offsets = [0, 64], sizes = [8, 32], strides = [1, 1]} : vector<8x128xf32> to vector<8x32xf32>
    %526 = math.tanh %525 : vector<8x32xf32>
    %527 = vector.extract_strided_slice %524 {offsets = [0, 32], sizes = [8, 32], strides = [1, 1]} : vector<8x128xf32> to vector<8x32xf32>
    %528 = arith.mulf %527, %494 : vector<8x32xf32>
    %529 = vector.extract_strided_slice %524 {offsets = [0, 0], sizes = [8, 32], strides = [1, 1]} : vector<8x128xf32> to vector<8x32xf32>
    %530 = arith.mulf %529, %526 : vector<8x32xf32>
    %531 = arith.addf %528, %530 : vector<8x32xf32>
    %532 = vector.extract_strided_slice %524 {offsets = [0, 96], sizes = [8, 32], strides = [1, 1]} : vector<8x128xf32> to vector<8x32xf32>
    %533 = math.tanh %531 : vector<8x32xf32>
    %534 = arith.mulf %532, %533 : vector<8x32xf32>
    %c24 = arith.constant 24 : index
    %c0_128 = arith.constant 0 : index
    %535 = vector.load %arg13[%c24, %c0_128] : memref<128x128xf32, #tpu.memory_space<vmem>>, vector<8x128xf32>
    %cst_129 = arith.constant dense<0.000000e+00> : vector<8x128xf32>
    %536 = tpu.matmul %515, %78, %cst_129 {dimension_numbers = #tpu.dot_dimension_numbers<[1], [0], [0], [1], [0, 0, 1, 1], [], []>} : vector<8x32xf32>, vector<32x128xf32>, vector<8x128xf32> -> vector<8x128xf32>
    %537 = arith.addf %535, %536 : vector<8x128xf32>
    %538 = arith.negf %537 : vector<8x128xf32>
    %539 = math.exp %538 : vector<8x128xf32>
    %cst_130 = arith.constant 1.000000e+00 : f32
    %540 = vector.broadcast %cst_130 : f32 to vector<8x128xf32>
    %541 = arith.addf %540, %539 : vector<8x128xf32>
    %542 = arith.divf %540, %541 : vector<8x128xf32>
    %543 = vector.extract_strided_slice %537 {offsets = [0, 64], sizes = [8, 32], strides = [1, 1]} : vector<8x128xf32> to vector<8x32xf32>
    %544 = math.tanh %543 : vector<8x32xf32>
    %545 = vector.extract_strided_slice %542 {offsets = [0, 32], sizes = [8, 32], strides = [1, 1]} : vector<8x128xf32> to vector<8x32xf32>
    %546 = arith.mulf %545, %512 : vector<8x32xf32>
    %547 = vector.extract_strided_slice %542 {offsets = [0, 0], sizes = [8, 32], strides = [1, 1]} : vector<8x128xf32> to vector<8x32xf32>
    %548 = arith.mulf %547, %544 : vector<8x32xf32>
    %549 = arith.addf %546, %548 : vector<8x32xf32>
    %550 = vector.extract_strided_slice %542 {offsets = [0, 96], sizes = [8, 32], strides = [1, 1]} : vector<8x128xf32> to vector<8x32xf32>
    %551 = math.tanh %549 : vector<8x32xf32>
    %552 = arith.mulf %550, %551 : vector<8x32xf32>
    %cst_131 = arith.constant dense<0.000000e+00> : vector<8x128xf32>
    %553 = tpu.matmul %552, %82, %cst_131 {dimension_numbers = #tpu.dot_dimension_numbers<[1], [0], [0], [1], [0, 0, 1, 1], [], []>} : vector<8x32xf32>, vector<32x128xf32>, vector<8x128xf32> -> vector<8x128xf32>
    %cst_132 = arith.constant dense<0.000000e+00> : vector<8x128xf32>
    %554 = tpu.matmul %534, %80, %cst_132 {dimension_numbers = #tpu.dot_dimension_numbers<[1], [0], [0], [1], [0, 0, 1, 1], [], []>} : vector<8x32xf32>, vector<32x128xf32>, vector<8x128xf32> -> vector<8x128xf32>
    %555 = arith.addf %553, %554 : vector<8x128xf32>
    %556 = arith.addf %555, %86 : vector<8x128xf32>
    %557 = arith.negf %556 : vector<8x128xf32>
    %558 = math.exp %557 : vector<8x128xf32>
    %cst_133 = arith.constant 1.000000e+00 : f32
    %559 = vector.broadcast %cst_133 : f32 to vector<8x128xf32>
    %560 = arith.addf %559, %558 : vector<8x128xf32>
    %561 = arith.divf %559, %560 : vector<8x128xf32>
    %562 = vector.extract_strided_slice %556 {offsets = [0, 64], sizes = [8, 32], strides = [1, 1]} : vector<8x128xf32> to vector<8x32xf32>
    %563 = math.tanh %562 : vector<8x32xf32>
    %564 = vector.extract_strided_slice %561 {offsets = [0, 32], sizes = [8, 32], strides = [1, 1]} : vector<8x128xf32> to vector<8x32xf32>
    %565 = arith.mulf %564, %531 : vector<8x32xf32>
    %566 = vector.extract_strided_slice %561 {offsets = [0, 0], sizes = [8, 32], strides = [1, 1]} : vector<8x128xf32> to vector<8x32xf32>
    %567 = arith.mulf %566, %563 : vector<8x32xf32>
    %568 = arith.addf %565, %567 : vector<8x32xf32>
    %569 = vector.extract_strided_slice %561 {offsets = [0, 96], sizes = [8, 32], strides = [1, 1]} : vector<8x128xf32> to vector<8x32xf32>
    %570 = math.tanh %568 : vector<8x32xf32>
    %571 = arith.mulf %569, %570 : vector<8x32xf32>
    %c16 = arith.constant 16 : index
    %c0_134 = arith.constant 0 : index
    %572 = vector.load %arg13[%c16, %c0_134] : memref<128x128xf32, #tpu.memory_space<vmem>>, vector<8x128xf32>
    %cst_135 = arith.constant dense<0.000000e+00> : vector<8x128xf32>
    %573 = tpu.matmul %552, %78, %cst_135 {dimension_numbers = #tpu.dot_dimension_numbers<[1], [0], [0], [1], [0, 0, 1, 1], [], []>} : vector<8x32xf32>, vector<32x128xf32>, vector<8x128xf32> -> vector<8x128xf32>
    %574 = arith.addf %572, %573 : vector<8x128xf32>
    %575 = arith.negf %574 : vector<8x128xf32>
    %576 = math.exp %575 : vector<8x128xf32>
    %cst_136 = arith.constant 1.000000e+00 : f32
    %577 = vector.broadcast %cst_136 : f32 to vector<8x128xf32>
    %578 = arith.addf %577, %576 : vector<8x128xf32>
    %579 = arith.divf %577, %578 : vector<8x128xf32>
    %580 = vector.extract_strided_slice %574 {offsets = [0, 64], sizes = [8, 32], strides = [1, 1]} : vector<8x128xf32> to vector<8x32xf32>
    %581 = math.tanh %580 : vector<8x32xf32>
    %582 = vector.extract_strided_slice %579 {offsets = [0, 32], sizes = [8, 32], strides = [1, 1]} : vector<8x128xf32> to vector<8x32xf32>
    %583 = arith.mulf %582, %549 : vector<8x32xf32>
    %584 = vector.extract_strided_slice %579 {offsets = [0, 0], sizes = [8, 32], strides = [1, 1]} : vector<8x128xf32> to vector<8x32xf32>
    %585 = arith.mulf %584, %581 : vector<8x32xf32>
    %586 = arith.addf %583, %585 : vector<8x32xf32>
    %587 = vector.extract_strided_slice %579 {offsets = [0, 96], sizes = [8, 32], strides = [1, 1]} : vector<8x128xf32> to vector<8x32xf32>
    %588 = math.tanh %586 : vector<8x32xf32>
    %589 = arith.mulf %587, %588 : vector<8x32xf32>
    %cst_137 = arith.constant dense<0.000000e+00> : vector<8x128xf32>
    %590 = tpu.matmul %589, %82, %cst_137 {dimension_numbers = #tpu.dot_dimension_numbers<[1], [0], [0], [1], [0, 0, 1, 1], [], []>} : vector<8x32xf32>, vector<32x128xf32>, vector<8x128xf32> -> vector<8x128xf32>
    %cst_138 = arith.constant dense<0.000000e+00> : vector<8x128xf32>
    %591 = tpu.matmul %571, %80, %cst_138 {dimension_numbers = #tpu.dot_dimension_numbers<[1], [0], [0], [1], [0, 0, 1, 1], [], []>} : vector<8x32xf32>, vector<32x128xf32>, vector<8x128xf32> -> vector<8x128xf32>
    %592 = arith.addf %590, %591 : vector<8x128xf32>
    %593 = arith.addf %592, %86 : vector<8x128xf32>
    %594 = arith.negf %593 : vector<8x128xf32>
    %595 = math.exp %594 : vector<8x128xf32>
    %cst_139 = arith.constant 1.000000e+00 : f32
    %596 = vector.broadcast %cst_139 : f32 to vector<8x128xf32>
    %597 = arith.addf %596, %595 : vector<8x128xf32>
    %598 = arith.divf %596, %597 : vector<8x128xf32>
    %599 = vector.extract_strided_slice %593 {offsets = [0, 64], sizes = [8, 32], strides = [1, 1]} : vector<8x128xf32> to vector<8x32xf32>
    %600 = math.tanh %599 : vector<8x32xf32>
    %601 = vector.extract_strided_slice %598 {offsets = [0, 32], sizes = [8, 32], strides = [1, 1]} : vector<8x128xf32> to vector<8x32xf32>
    %602 = arith.mulf %601, %568 : vector<8x32xf32>
    %603 = vector.extract_strided_slice %598 {offsets = [0, 0], sizes = [8, 32], strides = [1, 1]} : vector<8x128xf32> to vector<8x32xf32>
    %604 = arith.mulf %603, %600 : vector<8x32xf32>
    %605 = arith.addf %602, %604 : vector<8x32xf32>
    %606 = vector.extract_strided_slice %598 {offsets = [0, 96], sizes = [8, 32], strides = [1, 1]} : vector<8x128xf32> to vector<8x32xf32>
    %607 = math.tanh %605 : vector<8x32xf32>
    %608 = arith.mulf %606, %607 : vector<8x32xf32>
    %c8 = arith.constant 8 : index
    %c0_140 = arith.constant 0 : index
    %609 = vector.load %arg13[%c8, %c0_140] : memref<128x128xf32, #tpu.memory_space<vmem>>, vector<8x128xf32>
    %cst_141 = arith.constant dense<0.000000e+00> : vector<8x128xf32>
    %610 = tpu.matmul %589, %78, %cst_141 {dimension_numbers = #tpu.dot_dimension_numbers<[1], [0], [0], [1], [0, 0, 1, 1], [], []>} : vector<8x32xf32>, vector<32x128xf32>, vector<8x128xf32> -> vector<8x128xf32>
    %611 = arith.addf %609, %610 : vector<8x128xf32>
    %612 = arith.negf %611 : vector<8x128xf32>
    %613 = math.exp %612 : vector<8x128xf32>
    %cst_142 = arith.constant 1.000000e+00 : f32
    %614 = vector.broadcast %cst_142 : f32 to vector<8x128xf32>
    %615 = arith.addf %614, %613 : vector<8x128xf32>
    %616 = arith.divf %614, %615 : vector<8x128xf32>
    %617 = vector.extract_strided_slice %611 {offsets = [0, 64], sizes = [8, 32], strides = [1, 1]} : vector<8x128xf32> to vector<8x32xf32>
    %618 = math.tanh %617 : vector<8x32xf32>
    %619 = vector.extract_strided_slice %616 {offsets = [0, 32], sizes = [8, 32], strides = [1, 1]} : vector<8x128xf32> to vector<8x32xf32>
    %620 = arith.mulf %619, %586 : vector<8x32xf32>
    %621 = vector.extract_strided_slice %616 {offsets = [0, 0], sizes = [8, 32], strides = [1, 1]} : vector<8x128xf32> to vector<8x32xf32>
    %622 = arith.mulf %621, %618 : vector<8x32xf32>
    %623 = arith.addf %620, %622 : vector<8x32xf32>
    %624 = vector.extract_strided_slice %616 {offsets = [0, 96], sizes = [8, 32], strides = [1, 1]} : vector<8x128xf32> to vector<8x32xf32>
    %625 = math.tanh %623 : vector<8x32xf32>
    %626 = arith.mulf %624, %625 : vector<8x32xf32>
    %cst_143 = arith.constant dense<0.000000e+00> : vector<8x128xf32>
    %627 = tpu.matmul %626, %82, %cst_143 {dimension_numbers = #tpu.dot_dimension_numbers<[1], [0], [0], [1], [0, 0, 1, 1], [], []>} : vector<8x32xf32>, vector<32x128xf32>, vector<8x128xf32> -> vector<8x128xf32>
    %cst_144 = arith.constant dense<0.000000e+00> : vector<8x128xf32>
    %628 = tpu.matmul %608, %80, %cst_144 {dimension_numbers = #tpu.dot_dimension_numbers<[1], [0], [0], [1], [0, 0, 1, 1], [], []>} : vector<8x32xf32>, vector<32x128xf32>, vector<8x128xf32> -> vector<8x128xf32>
    %629 = arith.addf %627, %628 : vector<8x128xf32>
    %630 = arith.addf %629, %86 : vector<8x128xf32>
    %631 = arith.negf %630 : vector<8x128xf32>
    %632 = math.exp %631 : vector<8x128xf32>
    %cst_145 = arith.constant 1.000000e+00 : f32
    %633 = vector.broadcast %cst_145 : f32 to vector<8x128xf32>
    %634 = arith.addf %633, %632 : vector<8x128xf32>
    %635 = arith.divf %633, %634 : vector<8x128xf32>
    %636 = vector.extract_strided_slice %630 {offsets = [0, 64], sizes = [8, 32], strides = [1, 1]} : vector<8x128xf32> to vector<8x32xf32>
    %637 = math.tanh %636 : vector<8x32xf32>
    %638 = vector.extract_strided_slice %635 {offsets = [0, 32], sizes = [8, 32], strides = [1, 1]} : vector<8x128xf32> to vector<8x32xf32>
    %639 = arith.mulf %638, %605 : vector<8x32xf32>
    %640 = vector.extract_strided_slice %635 {offsets = [0, 0], sizes = [8, 32], strides = [1, 1]} : vector<8x128xf32> to vector<8x32xf32>
    %641 = arith.mulf %640, %637 : vector<8x32xf32>
    %642 = arith.addf %639, %641 : vector<8x32xf32>
    %643 = vector.extract_strided_slice %635 {offsets = [0, 96], sizes = [8, 32], strides = [1, 1]} : vector<8x128xf32> to vector<8x32xf32>
    %644 = math.tanh %642 : vector<8x32xf32>
    %645 = arith.mulf %643, %644 : vector<8x32xf32>
    %c0_146 = arith.constant 0 : index
    %c0_147 = arith.constant 0 : index
    %646 = vector.load %arg13[%c0_146, %c0_147] : memref<128x128xf32, #tpu.memory_space<vmem>>, vector<8x128xf32>
    %cst_148 = arith.constant dense<0.000000e+00> : vector<8x128xf32>
    %647 = tpu.matmul %626, %78, %cst_148 {dimension_numbers = #tpu.dot_dimension_numbers<[1], [0], [0], [1], [0, 0, 1, 1], [], []>} : vector<8x32xf32>, vector<32x128xf32>, vector<8x128xf32> -> vector<8x128xf32>
    %648 = arith.addf %646, %647 : vector<8x128xf32>
    %649 = arith.negf %648 : vector<8x128xf32>
    %650 = math.exp %649 : vector<8x128xf32>
    %cst_149 = arith.constant 1.000000e+00 : f32
    %651 = vector.broadcast %cst_149 : f32 to vector<8x128xf32>
    %652 = arith.addf %651, %650 : vector<8x128xf32>
    %653 = arith.divf %651, %652 : vector<8x128xf32>
    %654 = vector.extract_strided_slice %648 {offsets = [0, 64], sizes = [8, 32], strides = [1, 1]} : vector<8x128xf32> to vector<8x32xf32>
    %655 = math.tanh %654 : vector<8x32xf32>
    %656 = vector.extract_strided_slice %653 {offsets = [0, 32], sizes = [8, 32], strides = [1, 1]} : vector<8x128xf32> to vector<8x32xf32>
    %657 = arith.mulf %656, %623 : vector<8x32xf32>
    %658 = vector.extract_strided_slice %653 {offsets = [0, 0], sizes = [8, 32], strides = [1, 1]} : vector<8x128xf32> to vector<8x32xf32>
    %659 = arith.mulf %658, %655 : vector<8x32xf32>
    %660 = arith.addf %657, %659 : vector<8x32xf32>
    %661 = vector.extract_strided_slice %653 {offsets = [0, 96], sizes = [8, 32], strides = [1, 1]} : vector<8x128xf32> to vector<8x32xf32>
    %662 = math.tanh %660 : vector<8x32xf32>
    %663 = arith.mulf %661, %662 : vector<8x32xf32>
    %cst_150 = arith.constant dense<0.000000e+00> : vector<8x128xf32>
    %664 = tpu.matmul %663, %82, %cst_150 {dimension_numbers = #tpu.dot_dimension_numbers<[1], [0], [0], [1], [0, 0, 1, 1], [], []>} : vector<8x32xf32>, vector<32x128xf32>, vector<8x128xf32> -> vector<8x128xf32>
    %cst_151 = arith.constant dense<0.000000e+00> : vector<8x128xf32>
    %665 = tpu.matmul %645, %80, %cst_151 {dimension_numbers = #tpu.dot_dimension_numbers<[1], [0], [0], [1], [0, 0, 1, 1], [], []>} : vector<8x32xf32>, vector<32x128xf32>, vector<8x128xf32> -> vector<8x128xf32>
    %666 = arith.addf %664, %665 : vector<8x128xf32>
    %667 = arith.addf %666, %86 : vector<8x128xf32>
    %668 = arith.negf %667 : vector<8x128xf32>
    %669 = math.exp %668 : vector<8x128xf32>
    %cst_152 = arith.constant 1.000000e+00 : f32
    %670 = vector.broadcast %cst_152 : f32 to vector<8x128xf32>
    %671 = arith.addf %670, %669 : vector<8x128xf32>
    %672 = arith.divf %670, %671 : vector<8x128xf32>
    %673 = vector.extract_strided_slice %667 {offsets = [0, 64], sizes = [8, 32], strides = [1, 1]} : vector<8x128xf32> to vector<8x32xf32>
    %674 = math.tanh %673 : vector<8x32xf32>
    %675 = vector.extract_strided_slice %672 {offsets = [0, 32], sizes = [8, 32], strides = [1, 1]} : vector<8x128xf32> to vector<8x32xf32>
    %676 = arith.mulf %675, %642 : vector<8x32xf32>
    %677 = vector.extract_strided_slice %672 {offsets = [0, 0], sizes = [8, 32], strides = [1, 1]} : vector<8x128xf32> to vector<8x32xf32>
    %678 = arith.mulf %677, %674 : vector<8x32xf32>
    %679 = arith.addf %676, %678 : vector<8x32xf32>
    %680 = vector.extract_strided_slice %672 {offsets = [0, 96], sizes = [8, 32], strides = [1, 1]} : vector<8x128xf32> to vector<8x32xf32>
    %681 = math.tanh %679 : vector<8x32xf32>
    %682 = arith.mulf %680, %681 : vector<8x32xf32>
    %683 = tpu.concatenate %682, %645, %608, %571, %534, %497, %460, %423, %386, %349, %312, %275, %238, %201, %164, %127 in 1 : vector<8x32xf32>, vector<8x32xf32>, vector<8x32xf32>, vector<8x32xf32>, vector<8x32xf32>, vector<8x32xf32>, vector<8x32xf32>, vector<8x32xf32>, vector<8x32xf32>, vector<8x32xf32>, vector<8x32xf32>, vector<8x32xf32>, vector<8x32xf32>, vector<8x32xf32>, vector<8x32xf32>, vector<8x32xf32> -> vector<8x512xf32>
    %c0_153 = arith.constant 0 : index
    %c0_154 = arith.constant 0 : index
    %684 = vector.load %arg12[%c0_153, %c0_154] : memref<8x512xf32, #tpu.memory_space<vmem>>, vector<8x512xf32>
    tpu.vector_store %arg12[%c0_153, %c0_154], %683 {strides = array<i32>} : memref<8x512xf32, #tpu.memory_space<vmem>>, vector<8x512xf32>,
    return
  }
  func.func @transform_0(%arg0: i32) -> (i32, i32) {
    %c0_i32 = arith.constant 0 : i32
    %c0_i32_0 = arith.constant 0 : i32
    return %arg0, %c0_i32 : i32, i32
  }
  func.func @transform_1(%arg0: i32) -> (i32, i32, i32) {
    %c0_i32 = arith.constant 0 : i32
    %c0_i32_0 = arith.constant 0 : i32
    %c0_i32_1 = arith.constant 0 : i32
    %c0_i32_2 = arith.constant 0 : i32
    return %c0_i32, %c0_i32_0, %c0_i32_1 : i32, i32, i32
  }
  func.func @transform_2(%arg0: i32) -> (i32, i32, i32) {
    %c0_i32 = arith.constant 0 : i32
    %c0_i32_0 = arith.constant 0 : i32
    %c0_i32_1 = arith.constant 0 : i32
    %c0_i32_2 = arith.constant 0 : i32
    return %c0_i32, %c0_i32_0, %c0_i32_1 : i32, i32, i32
  }
  func.func @transform_3(%arg0: i32) -> (i32, i32, i32) {
    %c0_i32 = arith.constant 0 : i32
    %c0_i32_0 = arith.constant 0 : i32
    %c0_i32_1 = arith.constant 0 : i32
    %c0_i32_2 = arith.constant 0 : i32
    return %c0_i32, %c0_i32_0, %c0_i32_1 : i32, i32, i32
  }
  func.func @transform_4(%arg0: i32) -> (i32, i32) {
    %c0_i32 = arith.constant 0 : i32
    %c0_i32_0 = arith.constant 0 : i32
    %c0_i32_1 = arith.constant 0 : i32
    return %c0_i32, %c0_i32_0 : i32, i32
  }
  func.func @transform_5(%arg0: i32) -> (i32, i32) {
    %c0_i32 = arith.constant 0 : i32
    %c0_i32_0 = arith.constant 0 : i32
    %c0_i32_1 = arith.constant 0 : i32
    return %c0_i32, %c0_i32_0 : i32, i32
  }
  func.func @transform_6(%arg0: i32) -> (i32, i32) {
    %c0_i32 = arith.constant 0 : i32
    %c0_i32_0 = arith.constant 0 : i32
    %c0_i32_1 = arith.constant 0 : i32
    return %c0_i32, %c0_i32_0 : i32, i32
  }
  func.func @transform_7(%arg0: i32) -> (i32, i32) {
    %c0_i32 = arith.constant 0 : i32
    %c0_i32_0 = arith.constant 0 : i32
    %c0_i32_1 = arith.constant 0 : i32
    return %c0_i32, %c0_i32_0 : i32, i32
  }
  func.func @transform_8(%arg0: i32) -> (i32, i32, i32) {
    %c0_i32 = arith.constant 0 : i32
    %c0_i32_0 = arith.constant 0 : i32
    %c0_i32_1 = arith.constant 0 : i32
    %c0_i32_2 = arith.constant 0 : i32
    return %c0_i32, %c0_i32_0, %c0_i32_1 : i32, i32, i32
  }
  func.func @transform_9(%arg0: i32) -> (i32, i32, i32) {
    %c0_i32 = arith.constant 0 : i32
    %c0_i32_0 = arith.constant 0 : i32
    %c0_i32_1 = arith.constant 0 : i32
    %c0_i32_2 = arith.constant 0 : i32
    return %c0_i32, %c0_i32_0, %c0_i32_1 : i32, i32, i32
  }
  func.func @transform_10(%arg0: i32) -> (i32, i32, i32) {
    %c0_i32 = arith.constant 0 : i32
    %c0_i32_0 = arith.constant 0 : i32
    %c0_i32_1 = arith.constant 0 : i32
    %c0_i32_2 = arith.constant 0 : i32
    return %c0_i32, %c0_i32_0, %c0_i32_1 : i32, i32, i32
  }
  func.func @transform_11(%arg0: i32) -> (i32, i32) {
    %c0_i32 = arith.constant 0 : i32
    %c0_i32_0 = arith.constant 0 : i32
    return %arg0, %c0_i32 : i32, i32
  }
}

</mosaic_0001>

<bundles_post_ra>
// kernel: lstm_encoder_forward.1
= control target key start
LH: loop header
LB: loop body
LE: loop exit
PB: predicated region body
PF: predicated region fallthrough
CT: control target
= control target key end

     0   :  { %vm106_vm0 = vcmask 1043456   ;;  %v8173_v2 = vmov 0.0   ;;  %vm57_vm1 = vcmask 31744   ;;  %vm621_vm2 = vcmask 261120   ;;  %s8175_s12 = smov 64   ;;  %s8176_s13 = smov 32   ;;  %s9908_s1 = inlined_call_operand.vmem [shape: f32[3,4,32], index: 1, kind: input, shape index: {}]   ;;  %s9909_s0 = inlined_call_operand.vmem [shape: f32[128,4], index: 0, kind: input, shape index: {}]   ;;  %s9910_s2 = inlined_call_operand.vmem [shape: f32[3,32,64], index: 2, kind: input, shape index: {}]   ;;  %s9911_s4 = inlined_call_operand.vmem [shape: f32[1,32], index: 4, kind: input, shape index: {}]   ;;  %s9912_s3 = inlined_call_operand.vmem [shape: f32[3,64,16], index: 3, kind: input, shape index: {}]   ;;  %s9913_s5 = inlined_call_operand.vmem [shape: f32[1,64], index: 5, kind: input, shape index: {}]   ;;  %s9914_s7 = inlined_call_operand.vmem [shape: f32[16,128], index: 7, kind: input, shape index: {}]   ;;  %s9915_s9 = inlined_call_operand.vmem [shape: f32[2,32,128], index: 9, kind: input, shape index: {}]   ;;  %s9916_s6 = inlined_call_operand.vmem [shape: f32[1,16], index: 6, kind: input, shape index: {}]   ;;  %s9917_s10 = inlined_call_operand.vmem [shape: f32[2,1,128], index: 10, kind: input, shape index: {}]   ;;  %s9918_s8 = inlined_call_operand.vmem [shape: f32[1,32,128], index: 8, kind: input, shape index: {}]   ;;  %s9919_s11 = inlined_call_operand.vmem [shape: f32[8,512], index: 11, kind: output, shape index: {}]  }
   0x1   :  { %v54_v0 = vld [vmem:[%s9908_s1] sm:$0xf]  ;;  %v55_v1 = vld [vmem:[%s9908_s1 + $0x4] sm:$0xf]  ;;  %7038 = vmatprep.mubr.f32.mxu0 %v8173_v2  ;;  %v39_v4 = vld [vmem:[%s9909_s0 + $0x8] sm:$0xff]  ;;  %vm1186_vm3 = vcmask 523264  }
   0x2   :  { %v38_v3 = vld [vmem:[%s9909_s0] sm:$0xff]  ;;  %7036 = vmatprep.subr.msk.mxu0 %vm106_vm0, %v54_v0  ;;  %7062 = vmatprep.subr.msk.mxu1 %vm106_vm0, %v55_v1  ;;  %v56_v5 = vld [vmem:[%s9908_s1 + $0x8] sm:$0xf]  ;;  %v40_v6 = vld [vmem:[%s9909_s0 + $0x10] sm:$0xff]  ;;  %vm8174_vm4 = vmmov 0   ;;  %vm1736_vm5 = vcmask 130048  }
   0x3   :  { %7037 = vmatpush3.msk.msra.mxu0 %vm106_vm0, %v54_v0  ;;  %7063 = vmatpush3.msk.msra.mxu1 %vm106_vm0, %v55_v1  ;;  %v41_v7 = vld [vmem:[%s9909_s0 + $0x18] sm:$0xff]  ;;  %v42_v8 = vld [vmem:[%s9909_s0 + $0x20] sm:$0xff]  ;;  %v43_v9 = vld [vmem:[%s9909_s0 + $0x28] sm:$0xff]  ;;  %vm6331_vm6 = vcmask 785408  }
   0x4   :  { %7064 = vmatprep.mubr.msk.f32.mxu1 %vm57_vm1, %v38_v3  ;;  %7039 = vmatmul.mubr.msk.f32.vlgmr.msra.gmra.mxu0 %vm57_vm1, %v38_v3  ;;  %v44_v10 = vld [vmem:[%s9909_s0 + $0x30] sm:$0xff]  ;;  %v45_v11 = vld [vmem:[%s9909_s0 + $0x38] sm:$0xff]  ;;  %v46_v12 = vld [vmem:[%s9909_s0 + $0x40] sm:$0xff] }
   0x5   :  { %7065 = vmatmul.mubr.msk.f32.vlgmr.msra.gmra.mxu1 %vm57_vm1, %v39_v4  ;;  %7088 = vmatprep.subr.msk.mxu0 %vm106_vm0, %v56_v5  ;;  %v47_v13 = vld [vmem:[%s9909_s0 + $0x48] sm:$0xff]  ;;  %v48_v14 = vld [vmem:[%s9909_s0 + $0x50] sm:$0xff]  ;;  %v49_v15 = vld [vmem:[%s9909_s0 + $0x58] sm:$0xff] }
   0x6   :  { %7089 = vmatpush3.msk.msra.mxu0 %vm106_vm0, %v56_v5  ;;  %7041 = vmatprep.mubr.msk.f32.mxu0 %vm57_vm1, %v39_v4  ;;  %v50_v16 = vld [vmem:[%s9909_s0 + $0x60] sm:$0xff]  ;;  %v51_v17 = vld [vmem:[%s9909_s0 + $0x68] sm:$0xff]  ;;  %v52_v18 = vld [vmem:[%s9909_s0 + $0x70] sm:$0xff] }
   0x7   :  { %7067 = vmatprep.mubr.msk.f32.mxu1 %vm57_vm1, %v40_v6  ;;  %v53_v19 = vld [vmem:[%s9909_s0 + $0x78] sm:$0xff]  ;;  %v611_v21 = vld [vmem:[%s9910_s2 + $0x10] sm:$0xff]  ;;  %v610_v22 = vld [vmem:[%s9910_s2 + $0x8] sm:$0xff] }
   0x8   :  { %7042 = vmatmul.mubr.msk.f32.gmra.mxu0 %vm57_vm1, %v40_v6  ;;  %v612_v20 = vld [vmem:[%s9910_s2 + $0x18] sm:$0xff]  ;;  %v615_v24 = vld [vmem:[%s9910_s2 + $0x30] sm:$0xff]  ;;  %v609_v25 = vld [vmem:[%s9910_s2] sm:$0xff] }
   0x9   :  { %7068 = vmatmul.mubr.msk.f32.gmra.mxu1 %vm57_vm1, %v41_v7  ;;  %7044 = vmatprep.mubr.msk.f32.mxu0 %vm57_vm1, %v41_v7  ;;  %v616_v23 = vld [vmem:[%s9910_s2 + $0x38] sm:$0xff]  ;;  %v614_v26 = vld [vmem:[%s9910_s2 + $0x28] sm:$0xff]  ;;  %v613_v27 = vld [vmem:[%s9910_s2 + $0x20] sm:$0xff] }
   0xa   :  { %7070 = vmatprep.mubr.msk.f32.mxu1 %vm57_vm1, %v42_v8  ;;  %7114 = vmatprep.subr.mxu1 %v612_v20  ;;  %v8377_v28 = vld [vmem:[%s9910_s2 + $0x58] sm:$0xff]  ;;  %v8399_v58 = vld [vmem:[%s9911_s4] ss:$0 sm:$0xff] }
   0xb   :  { %7115 = vmatpush3.msra.mxu1 %v612_v20  ;;  %7146 = vmatprep.subr.mxu0 %v616_v23 }
   0xc   :  { %7045 = vmatmul.mubr.msk.f32.gmra.mxu0 %vm57_vm1, %v42_v8  ;;  %7116 = vmatprep.subr.mxu1 %v611_v21 }
   0xd   :  { %7071 = vmatmul.mubr.msk.f32.gmra.mxu1 %vm57_vm1, %v43_v9  ;;  %7047 = vmatprep.mubr.msk.f32.mxu0 %vm57_vm1, %v43_v9 }
   0xe   :  { %7073 = vmatprep.mubr.msk.f32.mxu1 %vm57_vm1, %v44_v10  ;;  %7117 = vmatpush3.msra.mxu1 %v611_v21 }
   0xf   :  { %7118 = vmatprep.subr.mxu1 %v610_v22 }
  0x10   :  { %7048 = vmatmul.mubr.msk.f32.gmra.mxu0 %vm57_vm1, %v44_v10  ;;  %7119 = vmatpush3.msra.mxu1 %v610_v22 }
  0x11   :  { %7074 = vmatmul.mubr.msk.f32.gmra.mxu1 %vm57_vm1, %v45_v11  ;;  %7050 = vmatprep.mubr.msk.f32.mxu0 %vm57_vm1, %v45_v11 }
  0x12   :  { %7076 = vmatprep.mubr.msk.f32.mxu1 %vm57_vm1, %v46_v12  ;;  %7120 = vmatprep.subr.mxu1 %v609_v25 }
  0x13   :  { %7121 = vmatpush3.msra.mxu1 %v609_v25 }
  0x14   :  { %7051 = vmatmul.mubr.msk.f32.gmra.mxu0 %vm57_vm1, %v46_v12  ;;  %7178 = vmatprep.subr.mxu1 %v8377_v28 }
  0x15   :  { %7077 = vmatmul.mubr.msk.f32.gmra.mxu1 %vm57_vm1, %v47_v13  ;;  %7053 = vmatprep.mubr.msk.f32.mxu0 %vm57_vm1, %v47_v13 }
  0x16   :  { %7079 = vmatprep.mubr.msk.f32.mxu1 %vm57_vm1, %v48_v14 }
  0x18   :  { %7054 = vmatmul.mubr.msk.f32.gmra.mxu0 %vm57_vm1, %v48_v14 }
  0x19   :  { %7080 = vmatmul.mubr.msk.f32.gmra.mxu1 %vm57_vm1, %v49_v15  ;;  %7056 = vmatprep.mubr.msk.f32.mxu0 %vm57_vm1, %v49_v15 }
  0x1a   :  { %7082 = vmatprep.mubr.msk.f32.mxu1 %vm57_vm1, %v50_v16 }
  0x1c   :  { %7057 = vmatmul.mubr.msk.f32.gmra.mxu0 %vm57_vm1, %v50_v16 }
  0x1d   :  { %7083 = vmatmul.mubr.msk.f32.gmra.mxu1 %vm57_vm1, %v51_v17  ;;  %7059 = vmatprep.mubr.msk.f32.mxu0 %vm57_vm1, %v51_v17 }
  0x1e   :  { %7085 = vmatprep.mubr.msk.f32.mxu1 %vm57_vm1, %v52_v18 }
  0x20   :  { %7060 = vmatmul.mubr.msk.f32.gmra.mxu0 %vm57_vm1, %v52_v18 }
  0x21   :  { %7086 = vmatmul.mubr.msk.f32.gmra.mxu1 %vm57_vm1, %v53_v19  ;;  %7090 = vmatprep.mubr.msk.f32.mxu0 %vm57_vm1, %v39_v4 }
  0x22   :  { %7122 = vmatprep.mubr.f32.mxu1 %v8173_v2 }
  0x24   :  { %7091 = vmatmul.mubr.msk.f32.vlgmr.msra.gmra.mxu0 %vm57_vm1, %v40_v6 }
  0x25   :  { %7093 = vmatprep.mubr.msk.f32.mxu0 %vm57_vm1, %v41_v7  ;;  %7147 = vmatpush3.msra.mxu0 %v616_v23 }
  0x26   :  { %7148 = vmatprep.subr.mxu0 %v615_v24 }
  0x27   :  { %7149 = vmatpush3.msra.mxu0 %v615_v24 }
  0x28   :  { %7094 = vmatmul.mubr.msk.f32.gmra.mxu0 %vm57_vm1, %v42_v8  ;;  %7150 = vmatprep.subr.mxu0 %v614_v26 }
  0x29   :  { %7096 = vmatprep.mubr.msk.f32.mxu0 %vm57_vm1, %v43_v9  ;;  %7151 = vmatpush3.msra.mxu0 %v614_v26 }
  0x2a   :  { %7152 = vmatprep.subr.mxu0 %v613_v27 }
  0x2b   :  { %7153 = vmatpush3.msra.mxu0 %v613_v27 }
  0x2c   :  { %7097 = vmatmul.mubr.msk.f32.gmra.mxu0 %vm57_vm1, %v44_v10 }
  0x2d   :  { %7099 = vmatprep.mubr.msk.f32.mxu0 %vm57_vm1, %v45_v11 }
  0x30   :  { %7100 = vmatmul.mubr.msk.f32.gmra.mxu0 %vm57_vm1, %v46_v12 }
  0x31   :  { %7102 = vmatprep.mubr.msk.f32.mxu0 %vm57_vm1, %v47_v13 }
  0x34   :  { %7103 = vmatmul.mubr.msk.f32.gmra.mxu0 %vm57_vm1, %v48_v14 }
  0x35   :  { %7105 = vmatprep.mubr.msk.f32.mxu0 %vm57_vm1, %v49_v15 }
  0x38   :  { %7106 = vmatmul.mubr.msk.f32.gmra.mxu0 %vm57_vm1, %v50_v16  ;;  %v619_v16 = vld [vmem:[%s9910_s2 + $0x50] sm:$0xff] }
  0x39   :  { %7108 = vmatprep.mubr.msk.f32.mxu0 %vm57_vm1, %v51_v17 }
  0x3c   :  { %7109 = vmatmul.mubr.msk.f32.gmra.mxu0 %vm57_vm1, %v52_v18 }
  0x3d   :  { %7111 = vmatprep.mubr.msk.f32.mxu0 %vm57_vm1, %v53_v19 }
  0x40   :  { %7112 = vmatmul.mubr.f32.gmra.mxu0 %v8173_v2 }
  0xc4   :  { %v7040_v29 = vpop.f32.mrf.mxu0 }
  0xc5   :  { %v7066_v30 = vpop.f32.mrf.mxu1 }
  0xc6   :  { %v176_v31 = vpop.f32.mrf.mxu0  ;;  %v333_v54 = vadd.f32 %v7066_v30, %v7040_v29 }
  0xc7   :  { %v327_v32 = vpop.f32.mrf.mxu1 }
  0xc8   :  { %v7043_v33 = vpop.f32.mrf.mxu0  ;;  %v328_v56 = vadd.f32 %v327_v32, %v176_v31 }
  0xc9   :  { %v7069_v34 = vpop.f32.mrf.mxu1 }
  0xca   :  { %v186_v35 = vpop.f32.mrf.mxu0  ;;  %v343_v61 = vadd.f32 %v7069_v34, %v7043_v33 }
  0xcb   :  { %v337_v37 = vpop.f32.mrf.mxu1 }
  0xcc   :  { %v7046_v36 = vpop.f32.mrf.mxu0  ;;  %v338_v1 = vadd.f32 %v337_v37, %v186_v35 }
  0xcd   :  { %v7072_v40 = vpop.f32.mrf.mxu1 }
  0xce   :  { %v196_v38 = vpop.f32.mrf.mxu0  ;;  %v353_v7 = vadd.f32 %v7072_v40, %v7046_v36  ;;  %v617_v40 = vld [vmem:[%s9910_s2 + $0x40] sm:$0xff] }
  0xcf   :  { %v347_v43 = vpop.f32.mrf.mxu1 }
  0xd0   :  { %v7049_v39 = vpop.f32.mrf.mxu0  ;;  %v348_v13 = vadd.f32 %v347_v43, %v196_v38 }
  0xd1   :  { %v7075_v46 = vpop.f32.mrf.mxu1 }
  0xd2   :  { %v206_v41 = vpop.f32.mrf.mxu0  ;;  %v363_v19 = vadd.f32 %v7075_v46, %v7049_v39 }
  0xd3   :  { %v357_v49 = vpop.f32.mrf.mxu1 }
  0xd4   :  { %v8380_v42 = vpop.f32.mrf.mxu0  ;;  %v358_v25 = vadd.f32 %v357_v49, %v206_v41 }
  0xd5   :  { %v7078_v52 = vpop.f32.mrf.mxu1 }
  0xd6   :  { %v8382_v44 = vpop.f32.mrf.mxu0  ;;  %v373_v31 = vadd.f32 %v7078_v52, %v8380_v42 }
  0xd7   :  { %v367_v59 = vpop.f32.mrf.mxu1 }
  0xd8   :  { %v8384_v45 = vpop.f32.mrf.mxu0  ;;  %v368_v37 = vadd.f32 %v367_v59, %v8382_v44 }
  0xd9   :  { %v7081_v5 = vpop.f32.mrf.mxu1 }
  0xda   :  { %v8386_v47 = vpop.f32.mrf.mxu0  ;;  %v383_v43 = vadd.f32 %v7081_v5, %v8384_v45 }
  0xdb   :  { %v377_v17 = vpop.f32.mrf.mxu1 }
  0xdc   :  { %v8388_v48 = vpop.f32.mrf.mxu0 }
  0xdd   :  { %v7084_v29 = vpop.f32.mrf.mxu1 }
  0xde   :  { %v8390_v50 = vpop.f32.mrf.mxu0 }
  0xdf   :  { %v387_v41 = vpop.f32.mrf.mxu1 }
  0xe0   :  { %v8392_v51 = vpop.f32.mrf.mxu0 }
  0xe1   :  { %v7087_v45 = vpop.f32.mrf.mxu1 }
  0xe2   :  { %v8394_v53 = vpop.f32.mrf.mxu0 }
  0xe3   :  { %v397_v5 = vpop.f32.mrf.mxu1 }
  0xe4   :  { %v7092_v55 = vpop.f32.mrf.mxu0 }
  0xe5   :  { %v555_v57 = vadd.f32 %v7092_v55, %v333_v54  ;;  %v378_v55 = vadd.f32 %v377_v17, %v8386_v47 }
  0xe6   :  { %v475_v60 = vpop.f32.mrf.mxu0 }
  0xe7   :  { %v554_v62 = vadd.f32 %v475_v60, %v328_v56  ;;  %v578_v63 = vadd.f32 %v8399_v58, %v555_v57  ;;  %v393_v60 = vadd.f32 %v7084_v29, %v8388_v48  ;;  %v403_v48 = vadd.f32 %v7087_v45, %v8392_v51  ;;  %v1173_v29 = vld [vmem:[%s9912_s3 + $0x58] sm:$0xff] }
  0xe8   :  { %v7095_v0 = vpop.f32.mrf.mxu0 }
  0xe9   :  { %v577_v3 = vadd.f32 %v8399_v58, %v554_v62  ;;  %v557_v4 = vadd.f32 %v7095_v0, %v343_v61  ;;  %v8403_v10 = vmax.f32 %v578_v63, 0.0 }
  0xea   :  { %v485_v6 = vpop.f32.mrf.mxu0 }
  0xeb   :  { %v593_v8 = vmax.f32 %v577_v3, 0.0  ;;  %v556_v9 = vadd.f32 %v485_v6, %v338_v1  ;;  %v580_v11 = vadd.f32 %v8399_v58, %v557_v4  ;;  %v388_v1 = vadd.f32 %v387_v41, %v8390_v50 }
  0xec   :  { %v7098_v12 = vpop.f32.mrf.mxu0 }
  0xed   :  { %v579_v14 = vadd.f32 %v8399_v58, %v556_v9  ;;  %v559_v15 = vadd.f32 %v7098_v12, %v353_v7  ;;  %7123 = vmatmul.mubr.msk.f32.vlgmr.msra.gmra.mxu1 %vm621_vm2, %v593_v8  ;;  %7154 = vmatprep.mubr.msk.f32.mxu0 %vm621_vm2, %v593_v8  ;;  %v8419_v22 = vmax.f32 %v580_v11, 0.0  ;;  %v398_v12 = vadd.f32 %v397_v5, %v8394_v53 }
  0xee   :  { %v495_v18 = vpop.f32.mrf.mxu0  ;;  %7125 = vmatprep.mubr.msk.f32.mxu1 %vm621_vm2, %v8403_v10  ;;  %7155 = vmatmul.mubr.msk.f32.vlgmr.msra.gmra.mxu0 %vm621_vm2, %v8403_v10 }
  0xef   :  { %v8416_v20 = vmax.f32 %v579_v14, 0.0  ;;  %v558_v21 = vadd.f32 %v495_v18, %v348_v13  ;;  %7179 = vmatpush3.msra.mxu1 %v8377_v28  ;;  %v582_v23 = vadd.f32 %v8399_v58, %v559_v15  ;;  %v618_v28 = vld [vmem:[%s9910_s2 + $0x48] sm:$0xff] }
  0xf0   :  { %v7101_v24 = vpop.f32.mrf.mxu0  ;;  %7180 = vmatprep.subr.mxu1 %v619_v16 }
  0xf1   :  { %v581_v26 = vadd.f32 %v8399_v58, %v558_v21  ;;  %v561_v27 = vadd.f32 %v7101_v24, %v363_v19  ;;  %7126 = vmatmul.mubr.msk.f32.gmra.mxu1 %vm621_vm2, %v8416_v20  ;;  %7157 = vmatprep.mubr.msk.f32.mxu0 %vm621_vm2, %v8416_v20  ;;  %v8437_v34 = vmax.f32 %v582_v23, 0.0  ;;  %v1165_v23 = vld [vmem:[%s9912_s3 + $0x18] sm:$0xff] }
  0xf2   :  { %v505_v30 = vpop.f32.mrf.mxu0  ;;  %7128 = vmatprep.mubr.msk.f32.mxu1 %vm621_vm2, %v8419_v22  ;;  %7158 = vmatmul.mubr.msk.f32.gmra.mxu0 %vm621_vm2, %v8419_v22  ;;  %v1177_v24 = vld [vmem:[%s9912_s3 + $0x78] sm:$0xff] }
  0xf3   :  { %v8435_v32 = vmax.f32 %v581_v26, 0.0  ;;  %v560_v33 = vadd.f32 %v505_v30, %v358_v25  ;;  %7181 = vmatpush3.msra.mxu1 %v619_v16  ;;  %v584_v35 = vadd.f32 %v8399_v58, %v561_v27  ;;  %v1176_v25 = vld [vmem:[%s9912_s3 + $0x70] sm:$0xff]  ;;  %v1175_v27 = vld [vmem:[%s9912_s3 + $0x68] sm:$0xff] }
  0xf4   :  { %v7104_v36 = vpop.f32.mrf.mxu0  ;;  %7182 = vmatprep.subr.mxu1 %v618_v28  ;;  %v1164_v26 = vld [vmem:[%s9912_s3 + $0x10] sm:$0xff] }
  0xf5   :  { %v583_v38 = vadd.f32 %v8399_v58, %v560_v33  ;;  %v563_v39 = vadd.f32 %v7104_v36, %v373_v31  ;;  %7129 = vmatmul.mubr.msk.f32.gmra.mxu1 %vm621_vm2, %v8435_v32  ;;  %7160 = vmatprep.mubr.msk.f32.mxu0 %vm621_vm2, %v8435_v32  ;;  %v8456_v49 = vmax.f32 %v584_v35, 0.0  ;;  %v1172_v30 = vld [vmem:[%s9912_s3 + $0x50] sm:$0xff]  ;;  %v1163_v31 = vld [vmem:[%s9912_s3 + $0x8] sm:$0xff]  ;;  %v1162_v33 = vld [vmem:[%s9912_s3] sm:$0xff] }
  0xf6   :  { %v515_v42 = vpop.f32.mrf.mxu0  ;;  %7131 = vmatprep.mubr.msk.f32.mxu1 %vm621_vm2, %v8437_v34  ;;  %7161 = vmatmul.mubr.msk.f32.gmra.mxu0 %vm621_vm2, %v8437_v34  ;;  %v8569_v35 = vld [vmem:[%s9912_s3 + $0xb8] sm:$0xff] }
  0xf7   :  { %v8454_v44 = vmax.f32 %v583_v38, 0.0  ;;  %v562_v46 = vadd.f32 %v515_v42, %v368_v37  ;;  %7183 = vmatpush3.msra.mxu1 %v618_v28  ;;  %v586_v52 = vadd.f32 %v8399_v58, %v563_v39  ;;  %v1174_v28 = vld [vmem:[%s9912_s3 + $0x60] sm:$0xff] }
  0xf8   :  { %v7107_v54 = vpop.f32.mrf.mxu0  ;;  %7184 = vmatprep.subr.mxu1 %v617_v40 }
  0xf9   :  { %v585_v56 = vadd.f32 %v8399_v58, %v562_v46  ;;  %v565_v57 = vadd.f32 %v7107_v54, %v383_v43  ;;  %7132 = vmatmul.mubr.msk.f32.gmra.mxu1 %vm621_vm2, %v8454_v44  ;;  %7163 = vmatprep.mubr.msk.f32.mxu0 %vm621_vm2, %v8454_v44  ;;  %v602_v62 = vmax.f32 %v586_v52, 0.0 }
  0xfa   :  { %v525_v59 = vpop.f32.mrf.mxu0  ;;  %7134 = vmatprep.mubr.msk.f32.mxu1 %vm621_vm2, %v8456_v49  ;;  %7164 = vmatmul.mubr.msk.f32.gmra.mxu0 %vm621_vm2, %v8456_v49 }
  0xfb   :  { %v601_v47 = vmax.f32 %v585_v56, 0.0  ;;  %v564_v61 = vadd.f32 %v525_v59, %v378_v55  ;;  %7185 = vmatpush3.msra.mxu1 %v617_v40  ;;  %v588_v63 = vadd.f32 %v8399_v58, %v565_v57 }
  0xfc   :  { %v7110_v0 = vpop.f32.mrf.mxu0  ;;  %7250 = vmatprep.subr.mxu1 %v1177_v24 }
  0xfd   :  { %v587_v3 = vadd.f32 %v8399_v58, %v564_v61  ;;  %v567_v4 = vadd.f32 %v7110_v0, %v393_v60  ;;  %7135 = vmatmul.mubr.msk.f32.gmra.mxu1 %vm621_vm2, %v601_v47  ;;  %7166 = vmatprep.mubr.msk.f32.mxu0 %vm621_vm2, %v601_v47  ;;  %v604_v9 = vmax.f32 %v588_v63, 0.0 }
  0xfe   :  { %v535_v6 = vpop.f32.mrf.mxu0  ;;  %7137 = vmatprep.mubr.msk.f32.mxu1 %vm621_vm2, %v602_v62  ;;  %7167 = vmatmul.mubr.msk.f32.gmra.mxu0 %vm621_vm2, %v602_v62 }
  0xff   :  { %v603_v7 = vmax.f32 %v587_v3, 0.0  ;;  %v566_v8 = vadd.f32 %v535_v6, %v388_v1  ;;  %v590_v50 = vadd.f32 %v8399_v58, %v567_v4 }
 0x100   :  { %v7113_v11 = vpop.f32.mrf.mxu0 }
 0x101   :  { %v589_v13 = vadd.f32 %v8399_v58, %v566_v8  ;;  %v569_v14 = vadd.f32 %v7113_v11, %v403_v48  ;;  %7138 = vmatmul.mubr.msk.f32.gmra.mxu1 %vm621_vm2, %v603_v7  ;;  %7169 = vmatprep.mubr.msk.f32.mxu0 %vm621_vm2, %v603_v7  ;;  %v606_v17 = vmax.f32 %v590_v50, 0.0  ;;  %v8591_v48 = vld [vmem:[%s9913_s5] ss:$0 sm:$0xff] }
 0x102   :  { %v545_v15 = vpop.f32.mrf.mxu0  ;;  %7140 = vmatprep.mubr.msk.f32.mxu1 %vm621_vm2, %v604_v9  ;;  %7170 = vmatmul.mubr.msk.f32.gmra.mxu0 %vm621_vm2, %v604_v9 }
 0x103   :  { %v605_v51 = vmax.f32 %v589_v13, 0.0  ;;  %v568_v16 = vadd.f32 %v545_v15, %v398_v12  ;;  %v592_v18 = vadd.f32 %v8399_v58, %v569_v14 }
 0x105   :  { %v591_v19 = vadd.f32 %v8399_v58, %v568_v16  ;;  %7141 = vmatmul.mubr.msk.f32.gmra.mxu1 %vm621_vm2, %v605_v51  ;;  %7172 = vmatprep.mubr.msk.f32.mxu0 %vm621_vm2, %v605_v51  ;;  %v608_v21 = vmax.f32 %v592_v18, 0.0  ;;  %v1169_v58 = vld [vmem:[%s9912_s3 + $0x38] sm:$0xff] }
 0x106   :  { %7143 = vmatprep.mubr.msk.f32.mxu1 %vm621_vm2, %v606_v17  ;;  %7173 = vmatmul.mubr.msk.f32.gmra.mxu0 %vm621_vm2, %v606_v17 }
 0x107   :  { %v607_v53 = vmax.f32 %v591_v19, 0.0  ;;  %7210 = vmatprep.subr.mxu0 %v1169_v58 }
 0x108   :  { %7211 = vmatpush3.msra.mxu0 %v1169_v58 }
 0x109   :  { %7144 = vmatmul.mubr.msk.f32.gmra.mxu1 %vm621_vm2, %v607_v53  ;;  %7175 = vmatprep.mubr.msk.f32.mxu0 %vm621_vm2, %v607_v53 }
 0x10a   :  { %7176 = vmatmul.mubr.msk.f32.gmra.mxu0 %vm621_vm2, %v608_v21  ;;  %7186 = vmatprep.mubr.msk.f32.mxu1 %vm621_vm2, %v8403_v10  ;;  %v1168_v10 = vld [vmem:[%s9912_s3 + $0x30] sm:$0xff] }
 0x10b   :  { %7226 = vmatprep.mubr.f32.mxu0 %v8173_v2  ;;  %7212 = vmatprep.subr.mxu0 %v1168_v10 }
 0x10c   :  { %7213 = vmatpush3.msra.mxu0 %v1168_v10 }
 0x10d   :  { %7187 = vmatmul.mubr.msk.f32.vlgmr.msra.gmra.mxu1 %vm621_vm2, %v8416_v20  ;;  %v1167_v20 = vld [vmem:[%s9912_s3 + $0x28] sm:$0xff] }
 0x10e   :  { %7189 = vmatprep.mubr.msk.f32.mxu1 %vm621_vm2, %v8419_v22  ;;  %7214 = vmatprep.subr.mxu0 %v1167_v20  ;;  %v1166_v22 = vld [vmem:[%s9912_s3 + $0x20] sm:$0xff] }
 0x10f   :  { %7215 = vmatpush3.msra.mxu0 %v1167_v20  ;;  %7251 = vmatpush3.msra.mxu1 %v1177_v24 }
 0x110   :  { %7216 = vmatprep.subr.mxu0 %v1166_v22  ;;  %7252 = vmatprep.subr.mxu1 %v1176_v25 }
 0x111   :  { %7190 = vmatmul.mubr.msk.f32.gmra.mxu1 %vm621_vm2, %v8435_v32  ;;  %7217 = vmatpush3.msra.mxu0 %v1166_v22  ;;  %v1171_v32 = vld [vmem:[%s9912_s3 + $0x48] sm:$0xff] }
 0x112   :  { %7192 = vmatprep.mubr.msk.f32.mxu1 %vm621_vm2, %v8437_v34  ;;  %7218 = vmatprep.subr.mxu0 %v1165_v23  ;;  %v1170_v34 = vld [vmem:[%s9912_s3 + $0x40] sm:$0xff] }
 0x113   :  { %7219 = vmatpush3.msra.mxu0 %v1165_v23  ;;  %7253 = vmatpush3.msra.mxu1 %v1176_v25  ;;  %v1184_v23 = vld [vmem:[%s9912_s3 + $0xb0] sm:$0xff] }
 0x114   :  { %7220 = vmatprep.subr.mxu0 %v1164_v26  ;;  %7254 = vmatprep.subr.mxu1 %v1175_v27 }
 0x115   :  { %7193 = vmatmul.mubr.msk.f32.gmra.mxu1 %vm621_vm2, %v8454_v44  ;;  %7221 = vmatpush3.msra.mxu0 %v1164_v26 }
 0x116   :  { %7195 = vmatprep.mubr.msk.f32.mxu1 %vm621_vm2, %v8456_v49  ;;  %7255 = vmatpush3.msra.mxu1 %v1175_v27 }
 0x117   :  { %7256 = vmatprep.subr.mxu1 %v1174_v28  ;;  %7222 = vmatprep.subr.mxu0 %v1163_v31 }
 0x118   :  { %7257 = vmatpush3.msra.mxu1 %v1174_v28  ;;  %7223 = vmatpush3.msra.mxu0 %v1163_v31 }
 0x119   :  { %7196 = vmatmul.mubr.msk.f32.gmra.mxu1 %vm621_vm2, %v601_v47  ;;  %7258 = vmatprep.subr.mxu1 %v1173_v29 }
 0x11a   :  { %7198 = vmatprep.mubr.msk.f32.mxu1 %vm621_vm2, %v602_v62  ;;  %7259 = vmatpush3.msra.mxu1 %v1173_v29 }
 0x11b   :  { %7260 = vmatprep.subr.mxu1 %v1172_v30  ;;  %7224 = vmatprep.subr.mxu0 %v1162_v33 }
 0x11c   :  { %7261 = vmatpush3.msra.mxu1 %v1172_v30  ;;  %7225 = vmatpush3.msra.mxu0 %v1162_v33 }
 0x11d   :  { %7199 = vmatmul.mubr.msk.f32.gmra.mxu1 %vm621_vm2, %v603_v7  ;;  %7262 = vmatprep.subr.mxu1 %v1171_v32 }
 0x11e   :  { %7201 = vmatprep.mubr.msk.f32.mxu1 %vm621_vm2, %v604_v9  ;;  %7263 = vmatpush3.msra.mxu1 %v1171_v32 }
 0x11f   :  { %7264 = vmatprep.subr.mxu1 %v1170_v34  ;;  %7290 = vmatprep.subr.mxu0 %v8569_v35 }
 0x120   :  { %7265 = vmatpush3.msra.mxu1 %v1170_v34 }
 0x121   :  { %7202 = vmatmul.mubr.msk.f32.gmra.mxu1 %vm621_vm2, %v605_v51 }
 0x122   :  { %7204 = vmatprep.mubr.msk.f32.mxu1 %vm621_vm2, %v606_v17 }
 0x125   :  { %7205 = vmatmul.mubr.msk.f32.gmra.mxu1 %vm621_vm2, %v607_v53 }
 0x126   :  { %7207 = vmatprep.mubr.msk.f32.mxu1 %vm621_vm2, %v608_v21 }
 0x129   :  { %7208 = vmatmul.mubr.f32.gmra.mxu1 %v8173_v2 }
 0x1ad   :  { %v7124_v36 = vpop.f32.mrf.mxu1 }
 0x1ae   :  { %v7156_v37 = vpop.f32.mrf.mxu0 }
 0x1af   :  { %v735_v38 = vpop.f32.mrf.mxu1  ;;  %v889_v3 = vadd.f32 %v7156_v37, %v7124_v36 }
 0x1b0   :  { %v883_v39 = vpop.f32.mrf.mxu0 }
 0x1b1   :  { %v7127_v40 = vpop.f32.mrf.mxu1  ;;  %v884_v5 = vadd.f32 %v883_v39, %v735_v38 }
 0x1b2   :  { %v7159_v41 = vpop.f32.mrf.mxu0 }
 0x1b3   :  { %v745_v42 = vpop.f32.mrf.mxu1  ;;  %v899_v9 = vadd.f32 %v7159_v41, %v7127_v40 }
 0x1b4   :  { %v893_v44 = vpop.f32.mrf.mxu0 }
 0x1b5   :  { %v7130_v43 = vpop.f32.mrf.mxu1  ;;  %v894_v13 = vadd.f32 %v893_v44, %v745_v42 }
 0x1b6   :  { %v7162_v52 = vpop.f32.mrf.mxu0 }
 0x1b7   :  { %v755_v46 = vpop.f32.mrf.mxu1  ;;  %v909_v17 = vadd.f32 %v7162_v52, %v7130_v43  ;;  %v1182_v52 = vld [vmem:[%s9912_s3 + $0xa0] sm:$0xff] }
 0x1b8   :  { %v903_v56 = vpop.f32.mrf.mxu0 }
 0x1b9   :  { %v7133_v49 = vpop.f32.mrf.mxu1  ;;  %v904_v10 = vadd.f32 %v903_v56, %v755_v46 }
 0x1ba   :  { %v7165_v59 = vpop.f32.mrf.mxu0 }
 0x1bb   :  { %v765_v54 = vpop.f32.mrf.mxu1  ;;  %v919_v26 = vadd.f32 %v7165_v59, %v7133_v49 }
 0x1bc   :  { %v913_v61 = vpop.f32.mrf.mxu0 }
 0x1bd   :  { %v8572_v55 = vpop.f32.mrf.mxu1  ;;  %v914_v32 = vadd.f32 %v913_v61, %v765_v54 }
 0x1be   :  { %v7168_v0 = vpop.f32.mrf.mxu0 }
 0x1bf   :  { %v8574_v57 = vpop.f32.mrf.mxu1  ;;  %v929_v38 = vadd.f32 %v7168_v0, %v8572_v55 }
 0x1c0   :  { %v923_v7 = vpop.f32.mrf.mxu0 }
 0x1c1   :  { %v8576_v45 = vpop.f32.mrf.mxu1  ;;  %v924_v44 = vadd.f32 %v923_v7, %v8574_v57 }
 0x1c2   :  { %v7171_v51 = vpop.f32.mrf.mxu0 }
 0x1c3   :  { %v8578_v60 = vpop.f32.mrf.mxu1  ;;  %v939_v56 = vadd.f32 %v7171_v51, %v8576_v45  ;;  %v1181_v45 = vld [vmem:[%s9912_s3 + $0x98] sm:$0xff] }
 0x1c4   :  { %v933_v24 = vpop.f32.mrf.mxu0 }
 0x1c5   :  { %v8580_v47 = vpop.f32.mrf.mxu1 }
 0x1c6   :  { %v7174_v36 = vpop.f32.mrf.mxu0 }
 0x1c7   :  { %v8582_v62 = vpop.f32.mrf.mxu1 }
 0x1c8   :  { %v943_v54 = vpop.f32.mrf.mxu0 }
 0x1c9   :  { %v8584_v63 = vpop.f32.mrf.mxu1 }
 0x1ca   :  { %v7177_v7 = vpop.f32.mrf.mxu0 }
 0x1cb   :  { %v8586_v1 = vpop.f32.mrf.mxu1 }
 0x1cd   :  { %v7188_v4 = vpop.f32.mrf.mxu1 }
 0x1ce   :  { %v1108_v6 = vadd.f32 %v7188_v4, %v889_v3  ;;  %v934_v4 = vadd.f32 %v933_v24, %v8578_v60  ;;  %v949_v60 = vadd.f32 %v7174_v36, %v8580_v47  ;;  %v1180_v47 = vld [vmem:[%s9912_s3 + $0x90] sm:$0xff] }
 0x1cf   :  { %v1028_v8 = vpop.f32.mrf.mxu1 }
 0x1d0   :  { %v1107_v50 = vadd.f32 %v1028_v8, %v884_v5  ;;  %v1131_v11 = vadd.f32 %v8591_v48, %v1108_v6 }
 0x1d1   :  { %v7191_v12 = vpop.f32.mrf.mxu1 }
 0x1d2   :  { %v1130_v14 = vadd.f32 %v8591_v48, %v1107_v50  ;;  %v1110_v15 = vadd.f32 %v7191_v12, %v899_v9  ;;  %v8595_v53 = vmax.f32 %v1131_v11, 0.0 }
 0x1d3   :  { %v1038_v16 = vpop.f32.mrf.mxu1 }
 0x1d4   :  { %v1146_v18 = vmax.f32 %v1130_v14, 0.0  ;;  %v1109_v19 = vadd.f32 %v1038_v16, %v894_v13  ;;  %v1133_v21 = vadd.f32 %v8591_v48, %v1110_v15  ;;  %v944_v14 = vadd.f32 %v943_v54, %v8582_v62  ;;  %v953_v16 = vpop.f32.mrf.mxu0 }
 0x1d5   :  { %v7194_v58 = vpop.f32.mrf.mxu1 }
 0x1d6   :  { %v1132_v20 = vadd.f32 %v8591_v48, %v1109_v19  ;;  %v1112_v22 = vadd.f32 %v7194_v58, %v909_v17  ;;  %7227 = vmatmul.mubr.msk.f32.vlgmr.msra.gmra.mxu0 %vm1186_vm3, %v1146_v18  ;;  %7266 = vmatprep.mubr.msk.f32.mxu1 %vm1186_vm3, %v1146_v18  ;;  %v8611_v29 = vmax.f32 %v1133_v21, 0.0  ;;  %v959_v18 = vadd.f32 %v7177_v7, %v8584_v63  ;;  %v1179_v63 = vld [vmem:[%s9912_s3 + $0x88] sm:$0xff] }
 0x1d7   :  { %v1048_v25 = vpop.f32.mrf.mxu1  ;;  %7229 = vmatprep.mubr.msk.f32.mxu0 %vm1186_vm3, %v8595_v53  ;;  %7267 = vmatmul.mubr.msk.f32.vlgmr.msra.gmra.mxu1 %vm1186_vm3, %v8595_v53 }
 0x1d8   :  { %v8608_v27 = vmax.f32 %v1132_v20, 0.0  ;;  %v1111_v28 = vadd.f32 %v1048_v25, %v904_v10  ;;  %7291 = vmatpush3.msra.mxu0 %v8569_v35  ;;  %v1135_v30 = vadd.f32 %v8591_v48, %v1112_v22  ;;  %v1183_v35 = vld [vmem:[%s9912_s3 + $0xa8] sm:$0xff]  ;;  %v954_v20 = vadd.f32 %v953_v16, %v8586_v1 }
 0x1d9   :  { %v7197_v31 = vpop.f32.mrf.mxu1  ;;  %7292 = vmatprep.subr.mxu0 %v1184_v23 }
 0x1da   :  { %v1134_v33 = vadd.f32 %v8591_v48, %v1111_v28  ;;  %v1114_v34 = vadd.f32 %v7197_v31, %v919_v26  ;;  %7230 = vmatmul.mubr.msk.f32.gmra.mxu0 %vm1186_vm3, %v8608_v27  ;;  %7269 = vmatprep.mubr.msk.f32.mxu1 %vm1186_vm3, %v8608_v27  ;;  %v8629_v41 = vmax.f32 %v1135_v30, 0.0  ;;  %v1178_v31 = vld [vmem:[%s9912_s3 + $0x80] sm:$0xff] }
 0x1db   :  { %v1058_v37 = vpop.f32.mrf.mxu1  ;;  %7232 = vmatprep.mubr.msk.f32.mxu0 %vm1186_vm3, %v8611_v29  ;;  %7270 = vmatmul.mubr.msk.f32.gmra.mxu1 %vm1186_vm3, %v8611_v29 }
 0x1dc   :  { %v8627_v39 = vmax.f32 %v1134_v33, 0.0  ;;  %v1113_v40 = vadd.f32 %v1058_v37, %v914_v32  ;;  %7293 = vmatpush3.msra.mxu0 %v1184_v23  ;;  %v1137_v42 = vadd.f32 %v8591_v48, %v1114_v34  ;;  %v8746_v34 = vld [vmem:[%s9915_s9 + $0x8] sm:$0xff] }
 0x1dd   :  { %v7200_v43 = vpop.f32.mrf.mxu1  ;;  %7294 = vmatprep.subr.mxu0 %v1183_v35 }
 0x1de   :  { %v1136_v46 = vadd.f32 %v8591_v48, %v1113_v40  ;;  %v1116_v49 = vadd.f32 %v7200_v43, %v929_v38  ;;  %7233 = vmatmul.mubr.msk.f32.gmra.mxu0 %vm1186_vm3, %v8627_v39  ;;  %7272 = vmatprep.mubr.msk.f32.mxu1 %vm1186_vm3, %v8627_v39  ;;  %v8648_v61 = vmax.f32 %v1137_v42, 0.0 }
 0x1df   :  { %v1068_v55 = vpop.f32.mrf.mxu1  ;;  %7235 = vmatprep.mubr.msk.f32.mxu0 %vm1186_vm3, %v8629_v41  ;;  %7273 = vmatmul.mubr.msk.f32.gmra.mxu1 %vm1186_vm3, %v8629_v41 }
 0x1e0   :  { %v8646_v57 = vmax.f32 %v1136_v46, 0.0  ;;  %v1115_v59 = vadd.f32 %v1068_v55, %v924_v44  ;;  %7295 = vmatpush3.msra.mxu0 %v1183_v35  ;;  %v1139_v0 = vadd.f32 %v8591_v48, %v1116_v49  ;;  %v8753_v35 = vld [vmem:[%s9915_s9] sm:$0xff] }
 0x1e1   :  { %v7203_v3 = vpop.f32.mrf.mxu1  ;;  %7296 = vmatprep.subr.mxu0 %v1182_v52 }
 0x1e2   :  { %v1138_v5 = vadd.f32 %v8591_v48, %v1115_v59  ;;  %v1118_v6 = vadd.f32 %v7203_v3, %v939_v56  ;;  %7236 = vmatmul.mubr.msk.f32.gmra.mxu0 %vm1186_vm3, %v8646_v57  ;;  %7275 = vmatprep.mubr.msk.f32.mxu1 %vm1186_vm3, %v8646_v57  ;;  %v1155_v11 = vmax.f32 %v1139_v0, 0.0 }
 0x1e3   :  { %v1078_v8 = vpop.f32.mrf.mxu1  ;;  %7238 = vmatprep.mubr.msk.f32.mxu0 %vm1186_vm3, %v8648_v61  ;;  %7276 = vmatmul.mubr.msk.f32.gmra.mxu1 %vm1186_vm3, %v8648_v61 }
 0x1e4   :  { %v1154_v9 = vmax.f32 %v1138_v5, 0.0  ;;  %v1117_v50 = vadd.f32 %v1078_v8, %v934_v4  ;;  %7297 = vmatpush3.msra.mxu0 %v1182_v52  ;;  %v1141_v12 = vadd.f32 %v8591_v48, %v1118_v6 }
 0x1e5   :  { %v7206_v13 = vpop.f32.mrf.mxu1  ;;  %7298 = vmatprep.subr.mxu0 %v1181_v45 }
 0x1e6   :  { %v1140_v15 = vadd.f32 %v8591_v48, %v1117_v50  ;;  %v1120_v51 = vadd.f32 %v7206_v13, %v949_v60  ;;  %7239 = vmatmul.mubr.msk.f32.gmra.mxu0 %vm1186_vm3, %v1154_v9  ;;  %7278 = vmatprep.mubr.msk.f32.mxu1 %vm1186_vm3, %v1154_v9  ;;  %v1157_v21 = vmax.f32 %v1141_v12, 0.0 }
 0x1e7   :  { %v1088_v17 = vpop.f32.mrf.mxu1  ;;  %7241 = vmatprep.mubr.msk.f32.mxu0 %vm1186_vm3, %v1155_v11  ;;  %7279 = vmatmul.mubr.msk.f32.gmra.mxu1 %vm1186_vm3, %v1155_v11 }
 0x1e8   :  { %v1156_v62 = vmax.f32 %v1140_v15, 0.0  ;;  %v1119_v19 = vadd.f32 %v1088_v17, %v944_v14  ;;  %7299 = vmatpush3.msra.mxu0 %v1181_v45  ;;  %v1143_v58 = vadd.f32 %v8591_v48, %v1120_v51 }
 0x1e9   :  { %v7209_v10 = vpop.f32.mrf.mxu1  ;;  %7300 = vmatprep.subr.mxu0 %v1180_v47 }
 0x1ea   :  { %v1142_v22 = vadd.f32 %v8591_v48, %v1119_v19  ;;  %v1122_v23 = vadd.f32 %v7209_v10, %v959_v18  ;;  %7242 = vmatmul.mubr.msk.f32.gmra.mxu0 %vm1186_vm3, %v1156_v62  ;;  %7281 = vmatprep.mubr.msk.f32.mxu1 %vm1186_vm3, %v1156_v62  ;;  %v1159_v1 = vmax.f32 %v1143_v58, 0.0 }
 0x1eb   :  { %v1098_v24 = vpop.f32.mrf.mxu1  ;;  %7244 = vmatprep.mubr.msk.f32.mxu0 %vm1186_vm3, %v1157_v21  ;;  %7282 = vmatmul.mubr.msk.f32.gmra.mxu1 %vm1186_vm3, %v1157_v21 }
 0x1ec   :  { %v1158_v25 = vmax.f32 %v1142_v22, 0.0  ;;  %v1121_v26 = vadd.f32 %v1098_v24, %v954_v20  ;;  %7301 = vmatpush3.msra.mxu0 %v1180_v47  ;;  %v1145_v28 = vadd.f32 %v8591_v48, %v1122_v23 }
 0x1ed   :  { %7302 = vmatprep.subr.mxu0 %v1179_v63 }
 0x1ee   :  { %v1144_v30 = vadd.f32 %v8591_v48, %v1121_v26  ;;  %7245 = vmatmul.mubr.msk.f32.gmra.mxu0 %vm1186_vm3, %v1158_v25  ;;  %7284 = vmatprep.mubr.msk.f32.mxu1 %vm1186_vm3, %v1158_v25  ;;  %v1161_v33 = vmax.f32 %v1145_v28, 0.0  ;;  %v1728_v48 = vld [vmem:[%s9914_s7 + $0x8] sm:$0xff] }
 0x1ef   :  { %7247 = vmatprep.mubr.msk.f32.mxu0 %vm1186_vm3, %v1159_v1  ;;  %7285 = vmatmul.mubr.msk.f32.gmra.mxu1 %vm1186_vm3, %v1159_v1 }
 0x1f0   :  { %v1160_v32 = vmax.f32 %v1144_v30, 0.0  ;;  %7303 = vmatpush3.msra.mxu0 %v1179_v63  ;;  %7330 = vmatprep.subr.mxu1 %v1728_v48 }
 0x1f1   :  { %7304 = vmatprep.subr.mxu0 %v1178_v31  ;;  %7331 = vmatpush3.msra.mxu1 %v1728_v48 }
 0x1f2   :  { %7248 = vmatmul.mubr.msk.f32.gmra.mxu0 %vm1186_vm3, %v1160_v32  ;;  %7287 = vmatprep.mubr.msk.f32.mxu1 %vm1186_vm3, %v1160_v32 }
 0x1f3   :  { %7288 = vmatmul.mubr.msk.f32.gmra.mxu1 %vm1186_vm3, %v1161_v33  ;;  %7305 = vmatpush3.msra.mxu0 %v1178_v31 }
 0x1f4   :  { %7306 = vmatprep.mubr.msk.f32.mxu0 %vm1186_vm3, %v8595_v53  ;;  %7358 = vmatprep.subr.mxu0 %v8173_v2  ;;  %v1727_v53 = vld [vmem:[%s9914_s7] sm:$0xff] }
 0x1f5   :  { %7332 = vmatprep.subr.mxu1 %v1727_v53 }
 0x1f6   :  { %7307 = vmatmul.mubr.msk.f32.vlgmr.msra.gmra.mxu0 %vm1186_vm3, %v8608_v27  ;;  %7333 = vmatpush3.msra.mxu1 %v1727_v53  ;;  %v8732_v27 = vld [vmem:[%s9915_s9 + $0x18] sm:$0xff] }
 0x1f7   :  { %7309 = vmatprep.mubr.msk.f32.mxu0 %vm1186_vm3, %v8611_v29  ;;  %7369 = vmatprep.subr.mxu1 %v8173_v2  ;;  %v8739_v29 = vld [vmem:[%s9915_s9 + $0x10] sm:$0xff] }
 0x1f8   :  { %7359 = vmatpush3.msra.mxu0 %v8732_v27 }
 0x1f9   :  { %7360 = vmatprep.subr.mxu0 %v8173_v2 }
 0x1fa   :  { %7310 = vmatmul.mubr.msk.f32.gmra.mxu0 %vm1186_vm3, %v8627_v39 }
 0x1fb   :  { %7312 = vmatprep.mubr.msk.f32.mxu0 %vm1186_vm3, %v8629_v41  ;;  %7361 = vmatpush3.msra.mxu0 %v8739_v29 }
 0x1fc   :  { %7362 = vmatprep.subr.mxu0 %v8173_v2 }
 0x1fd   :  { %7363 = vmatpush3.msra.mxu0 %v8746_v34 }
 0x1fe   :  { %7313 = vmatmul.mubr.msk.f32.gmra.mxu0 %vm1186_vm3, %v8646_v57  ;;  %7364 = vmatprep.subr.mxu0 %v8173_v2 }
 0x1ff   :  { %7315 = vmatprep.mubr.msk.f32.mxu0 %vm1186_vm3, %v8648_v61  ;;  %7365 = vmatpush3.msra.mxu0 %v8753_v35 }
 0x200   :  { %7380 = vmatprep.subr.mxu0 %v8173_v2 }
 0x202   :  { %7316 = vmatmul.mubr.msk.f32.gmra.mxu0 %vm1186_vm3, %v1154_v9 }
 0x203   :  { %7318 = vmatprep.mubr.msk.f32.mxu0 %vm1186_vm3, %v1155_v11  ;;  %v8777_v11 = vld [vmem:[%s9916_s6] ss:$0 sm:$0xff] }
 0x206   :  { %7319 = vmatmul.mubr.msk.f32.gmra.mxu0 %vm1186_vm3, %v1156_v62 }
 0x207   :  { %7321 = vmatprep.mubr.msk.f32.mxu0 %vm1186_vm3, %v1157_v21 }
 0x20a   :  { %7322 = vmatmul.mubr.msk.f32.gmra.mxu0 %vm1186_vm3, %v1158_v25 }
 0x20b   :  { %7324 = vmatprep.mubr.msk.f32.mxu0 %vm1186_vm3, %v1159_v1 }
 0x20e   :  { %7325 = vmatmul.mubr.msk.f32.gmra.mxu0 %vm1186_vm3, %v1160_v32 }
 0x20f   :  { %7327 = vmatprep.mubr.msk.f32.mxu0 %vm1186_vm3, %v1161_v33 }
 0x212   :  { %7328 = vmatmul.mubr.f32.gmra.mxu0 %v8173_v2 }
 0x213   :  { %7366 = vmatprep.mubr.msk.f32.mxu0 %vm8174_vm4, %v8173_v2 }
 0x216   :  { %7367 = vmatmul.mubr.f32.vlgmr.msra.gmra.mxu0 %v8173_v2 }
 0x217   :  { %7388 = vmatprep.mubr.msk.f32.mxu0 %vm8174_vm4, %v8173_v2 }
 0x296   :  { %v7228_v36 = vpop.f32.mrf.mxu0 }
 0x297   :  { %v7268_v37 = vpop.f32.mrf.mxu1 }
 0x298   :  { %v1300_v38 = vpop.f32.mrf.mxu0  ;;  %v1454_v8 = vadd.f32 %v7268_v37, %v7228_v36 }
 0x299   :  { %v1448_v39 = vpop.f32.mrf.mxu1 }
 0x29a   :  { %v7231_v40 = vpop.f32.mrf.mxu0  ;;  %v1449_v9 = vadd.f32 %v1448_v39, %v1300_v38 }
 0x29b   :  { %v7271_v41 = vpop.f32.mrf.mxu1 }
 0x29c   :  { %v1310_v42 = vpop.f32.mrf.mxu0  ;;  %v1464_v14 = vadd.f32 %v7271_v41, %v7231_v40 }
 0x29d   :  { %v1458_v44 = vpop.f32.mrf.mxu1 }
 0x29e   :  { %v7234_v43 = vpop.f32.mrf.mxu0  ;;  %v1459_v16 = vadd.f32 %v1458_v44, %v1310_v42 }
 0x29f   :  { %v7274_v52 = vpop.f32.mrf.mxu1 }
 0x2a0   :  { %v1320_v46 = vpop.f32.mrf.mxu0  ;;  %v1474_v21 = vadd.f32 %v7274_v52, %v7234_v43 }
 0x2a1   :  { %v1468_v56 = vpop.f32.mrf.mxu1 }
 0x2a2   :  { %v7237_v49 = vpop.f32.mrf.mxu0  ;;  %v1469_v63 = vadd.f32 %v1468_v56, %v1320_v46 }
 0x2a3   :  { %v7277_v61 = vpop.f32.mrf.mxu1 }
 0x2a4   :  { %v1330_v54 = vpop.f32.mrf.mxu0  ;;  %v1484_v28 = vadd.f32 %v7277_v61, %v7237_v49 }
 0x2a5   :  { %v1478_v4 = vpop.f32.mrf.mxu1 }
 0x2a6   :  { %v7240_v55 = vpop.f32.mrf.mxu0  ;;  %v1479_v53 = vadd.f32 %v1478_v4, %v1330_v54 }
 0x2a7   :  { %v7280_v45 = vpop.f32.mrf.mxu1 }
 0x2a8   :  { %v1340_v57 = vpop.f32.mrf.mxu0  ;;  %v1494_v40 = vadd.f32 %v7280_v45, %v7240_v55 }
 0x2a9   :  { %v1488_v12 = vpop.f32.mrf.mxu1 }
 0x2aa   :  { %v8762_v59 = vpop.f32.mrf.mxu0  ;;  %v1489_v49 = vadd.f32 %v1488_v12, %v1340_v57 }
 0x2ab   :  { %v7283_v62 = vpop.f32.mrf.mxu1 }
 0x2ac   :  { %v8764_v0 = vpop.f32.mrf.mxu0  ;;  %v1504_v4 = vadd.f32 %v7283_v62, %v8762_v59 }
 0x2ad   :  { %v1498_v26 = vpop.f32.mrf.mxu1 }
 0x2ae   :  { %v8766_v3 = vpop.f32.mrf.mxu0 }
 0x2af   :  { %v7286_v38 = vpop.f32.mrf.mxu1 }
 0x2b0   :  { %v8768_v5 = vpop.f32.mrf.mxu0 }
 0x2b1   :  { %v1508_v56 = vpop.f32.mrf.mxu1 }
 0x2b2   :  { %v8770_v6 = vpop.f32.mrf.mxu0 }
 0x2b4   :  { %v8772_v7 = vpop.f32.mrf.mxu0 }
 0x2b6   :  { %v7308_v60 = vpop.f32.mrf.mxu0 }
 0x2b7   :  { %v1673_v50 = vadd.f32 %v7308_v60, %v1454_v8 }
 0x2b8   :  { %v1593_v13 = vpop.f32.mrf.mxu0 }
 0x2b9   :  { %v1672_v15 = vadd.f32 %v1593_v13, %v1449_v9  ;;  %v1696_v51 = vadd.f32 %v8777_v11, %v1673_v50  ;;  %v1499_v50 = vadd.f32 %v1498_v26, %v8764_v0  ;;  %v7289_v13 = vpop.f32.mrf.mxu1 }
 0x2ba   :  { %v7311_v47 = vpop.f32.mrf.mxu0 }
 0x2bb   :  { %v1695_v17 = vadd.f32 %v8777_v11, %v1672_v15  ;;  %v1675_v18 = vadd.f32 %v7311_v47, %v1464_v14  ;;  %v1712_v20 = vmax.f32 %v1696_v51, 0.0  ;;  %v1514_v15 = vadd.f32 %v7286_v38, %v8766_v3 }
 0x2bc   :  { %v1603_v19 = vpop.f32.mrf.mxu0 }
 0x2bd   :  { %v1711_v58 = vmax.f32 %v1695_v17, 0.0  ;;  %v1674_v10 = vadd.f32 %v1603_v19, %v1459_v16  ;;  %v1698_v22 = vadd.f32 %v8777_v11, %v1675_v18  ;;  %v1509_v18 = vadd.f32 %v1508_v56, %v8768_v5  ;;  %v1518_v19 = vpop.f32.mrf.mxu1 }
 0x2be   :  { %v7314_v23 = vpop.f32.mrf.mxu0 }
 0x2bf   :  { %v1697_v24 = vadd.f32 %v8777_v11, %v1674_v10  ;;  %v1677_v25 = vadd.f32 %v7314_v23, %v1474_v21  ;;  %7334 = vmatprep.mubr.msk.f32.mxu1 %vm1736_vm5, %v1711_v58  ;;  %v1714_v32 = vmax.f32 %v1698_v22, 0.0  ;;  %v1524_v58 = vadd.f32 %v7289_v13, %v8770_v6 }
 0x2c0   :  { %v1613_v1 = vpop.f32.mrf.mxu0  ;;  %7335 = vmatmul.mubr.msk.f32.vlgmr.msra.gmra.mxu1 %vm1736_vm5, %v1712_v20 }
 0x2c1   :  { %v1713_v30 = vmax.f32 %v1697_v24, 0.0  ;;  %v1676_v31 = vadd.f32 %v1613_v1, %v1469_v63  ;;  %v1700_v33 = vadd.f32 %v8777_v11, %v1677_v25  ;;  %v1519_v63 = vadd.f32 %v1518_v19, %v8772_v7 }
 0x2c2   :  { %v7317_v48 = vpop.f32.mrf.mxu0 }
 0x2c3   :  { %v1699_v36 = vadd.f32 %v8777_v11, %v1676_v31  ;;  %v1679_v37 = vadd.f32 %v7317_v48, %v1484_v28  ;;  %7337 = vmatprep.mubr.msk.f32.mxu1 %vm1736_vm5, %v1713_v30  ;;  %v1716_v43 = vmax.f32 %v1700_v33, 0.0  ;;  %v8822_v48 = vld [vmem:[%s9917_s10] ss:$0 sm:$0xff] }
 0x2c4   :  { %v1623_v39 = vpop.f32.mrf.mxu0  ;;  %7338 = vmatmul.mubr.msk.f32.gmra.mxu1 %vm1736_vm5, %v1714_v32 }
 0x2c5   :  { %v1715_v41 = vmax.f32 %v1699_v36, 0.0  ;;  %v1678_v42 = vadd.f32 %v1623_v39, %v1479_v53  ;;  %v1702_v44 = vadd.f32 %v8777_v11, %v1679_v37 }
 0x2c6   :  { %v7320_v46 = vpop.f32.mrf.mxu0 }
 0x2c7   :  { %v1701_v52 = vadd.f32 %v8777_v11, %v1678_v42  ;;  %v1681_v54 = vadd.f32 %v7320_v46, %v1494_v40  ;;  %7340 = vmatprep.mubr.msk.f32.mxu1 %vm1736_vm5, %v1715_v41  ;;  %v1718_v45 = vmax.f32 %v1702_v44, 0.0 }
 0x2c8   :  { %v1633_v61 = vpop.f32.mrf.mxu0  ;;  %7341 = vmatmul.mubr.msk.f32.gmra.mxu1 %vm1736_vm5, %v1716_v43 }
 0x2c9   :  { %v1717_v8 = vmax.f32 %v1701_v52, 0.0  ;;  %v1680_v55 = vadd.f32 %v1633_v61, %v1489_v49  ;;  %v1704_v60 = vadd.f32 %v8777_v11, %v1681_v54 }
 0x2ca   :  { %v7323_v9 = vpop.f32.mrf.mxu0 }
 0x2cb   :  { %v1703_v57 = vadd.f32 %v8777_v11, %v1680_v55  ;;  %v1683_v12 = vadd.f32 %v7323_v9, %v1504_v4  ;;  %7343 = vmatprep.mubr.msk.f32.mxu1 %vm1736_vm5, %v1717_v8  ;;  %v1720_v47 = vmax.f32 %v1704_v60, 0.0 }
 0x2cc   :  { %v1643_v14 = vpop.f32.mrf.mxu0  ;;  %7344 = vmatmul.mubr.msk.f32.gmra.mxu1 %vm1736_vm5, %v1718_v45 }
 0x2cd   :  { %v1719_v59 = vmax.f32 %v1703_v57, 0.0  ;;  %v1682_v51 = vadd.f32 %v1643_v14, %v1499_v50  ;;  %v1706_v16 = vadd.f32 %v8777_v11, %v1683_v12 }
 0x2ce   :  { %v7326_v17 = vpop.f32.mrf.mxu0 }
 0x2cf   :  { %v1705_v0 = vadd.f32 %v8777_v11, %v1682_v51  ;;  %v1685_v62 = vadd.f32 %v7326_v17, %v1514_v15  ;;  %7346 = vmatprep.mubr.msk.f32.mxu1 %vm1736_vm5, %v1719_v59  ;;  %v1722_v20 = vmax.f32 %v1706_v16, 0.0 }
 0x2d0   :  { %v1653_v21 = vpop.f32.mrf.mxu0  ;;  %7347 = vmatmul.mubr.msk.f32.gmra.mxu1 %vm1736_vm5, %v1720_v47 }
 0x2d1   :  { %v1721_v3 = vmax.f32 %v1705_v0, 0.0  ;;  %v1684_v10 = vadd.f32 %v1653_v21, %v1509_v18  ;;  %v1708_v22 = vadd.f32 %v8777_v11, %v1685_v62 }
 0x2d2   :  { %v7329_v23 = vpop.f32.mrf.mxu0 }
 0x2d3   :  { %v1707_v5 = vadd.f32 %v8777_v11, %v1684_v10  ;;  %v1687_v24 = vadd.f32 %v7329_v23, %v1524_v58  ;;  %7349 = vmatprep.mubr.msk.f32.mxu1 %vm1736_vm5, %v1721_v3  ;;  %v1724_v28 = vmax.f32 %v1708_v22, 0.0  ;;  %v8875_v10 = vld [vmem:[%s9915_s9 + $0x38] sm:$0xff]  ;;  %v8891_v23 = vld [vmem:[%s9918_s8 + $0x10] sm:$0xff] }
 0x2d4   :  { %v1663_v25 = vpop.f32.mrf.mxu0  ;;  %7350 = vmatmul.mubr.msk.f32.gmra.mxu1 %vm1736_vm5, %v1722_v20  ;;  %v8880_v20 = vld [vmem:[%s9915_s9 + $0x30] sm:$0xff]  ;;  %v8886_v22 = vld [vmem:[%s9918_s8 + $0x18] sm:$0xff] }
 0x2d5   :  { %v1723_v26 = vmax.f32 %v1707_v5, 0.0  ;;  %v1686_v1 = vadd.f32 %v1663_v25, %v1519_v63  ;;  %v1710_v6 = vadd.f32 %v8777_v11, %v1687_v24  ;;  %7370 = vmatpush3.msra.mxu1 %v8875_v10  ;;  %v8897_v63 = vld [vmem:[%s9915_s9 + $0x28] sm:$0xff]  ;;  %7381 = vmatpush3.msra.mxu0 %v8886_v22  ;;  %v8911_v24 = vld [vmem:[%s9915_s9 + $0x20] sm:$0xff] }
 0x2d6   :  { %v2034_v32 = vpop.f32.mrf.mxu0  ;;  %7371 = vmatprep.subr.mxu1 %v8173_v2  ;;  %7382 = vmatprep.subr.mxu0 %v8173_v2  ;;  %v8905_v5 = vld [vmem:[%s9918_s8 + $0x8] sm:$0xff]  ;;  %v8921_v25 = vld [vmem:[%s9918_s8] sm:$0xff] }
 0x2d7   :  { %v1709_v30 = vadd.f32 %v8777_v11, %v1686_v1  ;;  %7352 = vmatprep.mubr.msk.f32.mxu1 %vm1736_vm5, %v1723_v26  ;;  %v1726_v31 = vmax.f32 %v1710_v6, 0.0  ;;  %7372 = vmatpush3.msra.mxu1 %v8880_v20 }
 0x2d8   :  { %7353 = vmatmul.mubr.msk.f32.gmra.mxu1 %vm1736_vm5, %v1724_v28  ;;  %v7368_v33 = vpop.f32.mrf.mxu0  ;;  %7373 = vmatprep.subr.mxu1 %v8173_v2 }
 0x2d9   :  { %v1725_v7 = vmax.f32 %v1709_v30, 0.0  ;;  %7383 = vmatpush3.msra.mxu0 %v8891_v23  ;;  %7374 = vmatpush3.msra.mxu1 %v8897_v63  ;;  %v8967_v33 = vld [vmem:[%s9917_s10 + $0x1] ss:$0 sm:$0xff] }
 0x2da   :  { %7384 = vmatprep.subr.mxu0 %v8173_v2  ;;  %7375 = vmatprep.subr.mxu1 %v8173_v2 }
 0x2db   :  { %7355 = vmatprep.mubr.msk.f32.mxu1 %vm1736_vm5, %v1725_v7  ;;  %7385 = vmatpush3.msra.mxu0 %v8905_v5 }
 0x2dc   :  { %7356 = vmatmul.mubr.msk.f32.gmra.mxu1 %vm1736_vm5, %v1726_v31  ;;  %7386 = vmatprep.subr.mxu0 %v8173_v2 }
 0x2dd   :  { %7377 = vmatprep.mubr.msk.f32.mxu1 %vm8174_vm4, %v8173_v2  ;;  %7376 = vmatpush3.msra.mxu1 %v8911_v24 }
 0x2de   :  { %7391 = vmatprep.subr.mxu1 %v8173_v2  ;;  %7387 = vmatpush3.msra.mxu0 %v8921_v25 }
 0x2df   :  { %7402 = vmatprep.subr.mxu0 %v8173_v2 }
 0x2e0   :  { %7378 = vmatmul.mubr.f32.vlgmr.msra.gmra.mxu1 %v8173_v2 }
 0x2e1   :  { %7392 = vmatpush3.msra.mxu1 %v8732_v27  ;;  %7399 = vmatprep.mubr.msk.f32.mxu1 %vm8174_vm4, %v8173_v2 }
 0x2e2   :  { %7393 = vmatprep.subr.mxu1 %v8173_v2 }
 0x2e3   :  { %7394 = vmatpush3.msra.mxu1 %v8739_v29 }
 0x2e4   :  { %7395 = vmatprep.subr.mxu1 %v8173_v2 }
 0x2e5   :  { %7396 = vmatpush3.msra.mxu1 %v8746_v34 }
 0x2e6   :  { %7397 = vmatprep.subr.mxu1 %v8173_v2 }
 0x2e7   :  { %7398 = vmatpush3.msra.mxu1 %v8753_v35 }
 0x2e8   :  { %7413 = vmatprep.subr.mxu1 %v8173_v2 }
 0x380   :  { %v7336_v11 = vpop.f32.mrf.mxu1 }
 0x381   :  { %v8825_v53 = vadd.f32 %v7336_v11, %v8822_v48 }
 0x382   :  { %v1851_v36 = vpop.f32.mrf.mxu1 }
 0x383   :  { %v8828_v37 = vadd.f32 %v8822_v48, %v1851_v36 }
 0x384   :  { %v7339_v38 = vpop.f32.mrf.mxu1 }
 0x385   :  { %v8831_v39 = vadd.f32 %v7339_v38, %v8822_v48 }
 0x386   :  { %v1861_v40 = vpop.f32.mrf.mxu1 }
 0x387   :  { %v8834_v41 = vadd.f32 %v8822_v48, %v1861_v40 }
 0x388   :  { %v7342_v42 = vpop.f32.mrf.mxu1 }
 0x389   :  { %v8837_v43 = vadd.f32 %v7342_v42, %v8822_v48 }
 0x38a   :  { %v1871_v44 = vpop.f32.mrf.mxu1 }
 0x38b   :  { %v8840_v46 = vadd.f32 %v8822_v48, %v1871_v44 }
 0x38c   :  { %v7345_v49 = vpop.f32.mrf.mxu1 }
 0x38d   :  { %v8843_v52 = vadd.f32 %v7345_v49, %v8822_v48 }
 0x38e   :  { %v1881_v54 = vpop.f32.mrf.mxu1 }
 0x38f   :  { %v8846_v56 = vadd.f32 %v8822_v48, %v1881_v54 }
 0x390   :  { %v7348_v61 = vpop.f32.mrf.mxu1 }
 0x391   :  { %v8849_v4 = vadd.f32 %v7348_v61, %v8822_v48 }
 0x392   :  { %v1891_v8 = vpop.f32.mrf.mxu1 }
 0x393   :  { %v8852_v55 = vadd.f32 %v8822_v48, %v1891_v8 }
 0x394   :  { %v7351_v45 = vpop.f32.mrf.mxu1 }
 0x395   :  { %v8855_v60 = vadd.f32 %v7351_v45, %v8822_v48 }
 0x396   :  { %v1901_v9 = vpop.f32.mrf.mxu1 }
 0x397   :  { %v8858_v50 = vadd.f32 %v8822_v48, %v1901_v9 }
 0x398   :  { %v7354_v57 = vpop.f32.mrf.mxu1 }
 0x399   :  { %v8861_v12 = vadd.f32 %v7354_v57, %v8822_v48 }
 0x39a   :  { %v1911_v13 = vpop.f32.mrf.mxu1 }
 0x39b   :  { %v8864_v14 = vadd.f32 %v8822_v48, %v1911_v13 }
 0x39c   :  { %v7357_v15 = vpop.f32.mrf.mxu1 }
 0x39d   :  { %v1927_v59 = vadd.f32 %v7357_v15, %v8822_v48 }
 0x39e   :  { %v1921_v6 = vpop.f32.mrf.mxu1 }
 0x39f   :  { %v2038_v51 = vadd.f32 %v2034_v32, %v1927_v59  ;;  %v1922_v32 = vadd.f32 %v8822_v48, %v1921_v6 }
 0x3a0   :  { %v2129_v30 = vpop.f32.mrf.mxu1 }
 0x3a1   :  { %7891 = vtanh.f32 %v2038_v51  ;;  %v6517_v16 = vmul.f32 -1.442695, %v2038_v51 }
 0x3a2   :  { %v7379_v7 = vpop.f32.mrf.mxu1 }
 0x3a3   :  { %7893 = vpow2.f32 %v6517_v16 }
 0x3ae   :  { %v7892_v47 = vpop.eup %7891 }
 0x3af   :  { %2048 = vrot.lane.b32.xlu0 %v7892_v47, %s8175_s12 }
 0x3b0   :  { %v7894_v17 = vpop.eup %7893 }
 0x3b1   :  { %v2042_v18 = vadd.f32 1.0, %v7894_v17 }
 0x3b3   :  { %7895 = vrcp.f32 %v2042_v18 }
 0x3c0   :  { %v7896_v0 = vpop.eup %7895 }
 0x3c1   :  { %v2046_v21 = vmul.f32 0.0, %v7896_v0 }
 0x421   :  { %v2049_v62 = vpop.permute.xlu0 %2048 }
 0x422   :  { %v2051_v19 = vmul.f32 %v7896_v0, %v2049_v62 }
 0x424   :  { %2053 = vrot.lane.b32.xlu0 %v2051_v19, %s8176_s13 }
 0x496   :  { %v2054_v58 = vpop.permute.xlu0 %2053 }
 0x497   :  { %v8869_v3 = vadd.f32 %v2054_v58, %v2046_v21 }
 0x499   :  { %7897 = vtanh.f32 %v8869_v3 }
 0x4a6   :  { %v7898_v26 = vpop.eup %7897 }
 0x4a7   :  { %2059 = vrot.lane.b32.xlu1 %v7898_v26, %s8175_s12 }
 0x519   :  { %v2060_v1 = vpop.permute.xlu1 %2059 }
 0x51a   :  { %v2062_v28 = vmul.f32 %v7896_v0, %v2060_v1 }
 0x51c   :  { %2134 = vrot.lane.b32.xlu1 %v2062_v28, %s8176_s13 }
 0x58e   :  { %v2135_v31 = vpop.permute.xlu1 %2134 }
 0x58f   :  { %7389 = vmatmul.mubr.msk.f32.vlgmr.msra.gmra.mxu0 %vm621_vm2, %v2135_v31  ;;  %7400 = vmatmul.mubr.msk.f32.vlgmr.msra.gmra.mxu1 %vm621_vm2, %v2135_v31 }
 0x590   :  { %7414 = vmatpush3.msra.mxu1 %v8886_v22  ;;  %7403 = vmatpush3.msra.mxu0 %v8875_v10 }
 0x591   :  { %7415 = vmatprep.subr.mxu1 %v8173_v2  ;;  %7404 = vmatprep.subr.mxu0 %v8173_v2 }
 0x592   :  { %7416 = vmatpush3.msra.mxu1 %v8891_v23  ;;  %7405 = vmatpush3.msra.mxu0 %v8880_v20 }
 0x593   :  { %7417 = vmatprep.subr.mxu1 %v8173_v2  ;;  %7406 = vmatprep.subr.mxu0 %v8173_v2 }
 0x594   :  { %7418 = vmatpush3.msra.mxu1 %v8905_v5  ;;  %7407 = vmatpush3.msra.mxu0 %v8897_v63 }
 0x595   :  { %7419 = vmatprep.subr.mxu1 %v8173_v2  ;;  %7408 = vmatprep.subr.mxu0 %v8173_v2 }
 0x596   :  { %7420 = vmatpush3.msra.mxu1 %v8921_v25  ;;  %7421 = vmatprep.mubr.msk.f32.mxu1 %vm8174_vm4, %v8173_v2 }
 0x597   :  { %7409 = vmatpush3.msra.mxu0 %v8911_v24  ;;  %7410 = vmatprep.mubr.msk.f32.mxu0 %vm8174_vm4, %v8173_v2 }
 0x598   :  { %7424 = vmatprep.subr.mxu0 %v8173_v2  ;;  %7435 = vmatprep.subr.mxu1 %v8173_v2 }
 0x64f   :  { %v2204_v11 = vpop.f32.mrf.mxu0  ;;  %v2300_v36 = vpop.f32.mrf.mxu1 }
 0x650   :  { %v2205_v38 = vadd.f32 %v2204_v11, %v2129_v30  ;;  %v2304_v40 = vadd.f32 %v2300_v36, %v1922_v32 }
 0x651   :  { %v7390_v42 = vpop.f32.mrf.mxu0  ;;  %v7401_v44 = vpop.f32.mrf.mxu1 }
 0x652   :  { %v2208_v49 = vadd.f32 %v8967_v33, %v2205_v38  ;;  %7899 = vtanh.f32 %v2304_v40  ;;  %v6521_v48 = vmul.f32 -1.442695, %v2304_v40 }
 0x654   :  { %7901 = vtanh.f32 %v2208_v49  ;;  %v6519_v8 = vmul.f32 -1.442695, %v2208_v49 }
 0x655   :  { %7903 = vpow2.f32 %v6521_v48 }
 0x656   :  { %7905 = vpow2.f32 %v6519_v8 }
 0x65f   :  { %v7900_v54 = vpop.eup %7899 }
 0x660   :  { %2314 = vrot.lane.b32.xlu1 %v7900_v54, %s8175_s12 }
 0x661   :  { %v7902_v61 = vpop.eup %7901 }
 0x662   :  { %2218 = vrot.lane.b32.xlu0 %v7902_v61, %s8175_s12  ;;  %v7904_v45 = vpop.eup %7903 }
 0x663   :  { %v7906_v9 = vpop.eup %7905  ;;  %v2308_v57 = vadd.f32 1.0, %v7904_v45 }
 0x664   :  { %v2212_v13 = vadd.f32 1.0, %v7906_v9 }
 0x665   :  { %7907 = vrcp.f32 %v2308_v57 }
 0x666   :  { %7909 = vrcp.f32 %v2212_v13 }
 0x672   :  { %v7908_v15 = vpop.eup %7907 }
 0x673   :  { %v7910_v47 = vpop.eup %7909  ;;  %v2312_v18 = vmul.f32 %v7908_v15, %v8869_v3 }
 0x674   :  { %v2216_v19 = vmul.f32 0.0, %v7910_v47 }
 0x6d2   :  { %v2315_v59 = vpop.permute.xlu1 %2314 }
 0x6d3   :  { %v2317_v51 = vmul.f32 %v7908_v15, %v2315_v59 }
 0x6d4   :  { %v2219_v16 = vpop.permute.xlu0 %2218 }
 0x6d5   :  { %v2221_v17 = vmul.f32 %v7910_v47, %v2219_v16  ;;  %2319 = vrot.lane.b32.xlu1 %v2317_v51, %s8176_s13 }
 0x6d7   :  { %2223 = vrot.lane.b32.xlu0 %v2221_v17, %s8176_s13 }
 0x747   :  { %v2320_v0 = vpop.permute.xlu1 %2319 }
 0x748   :  { %v8975_v62 = vadd.f32 %v2320_v0, %v2312_v18 }
 0x749   :  { %v2224_v21 = vpop.permute.xlu0 %2223 }
 0x74a   :  { %7911 = vtanh.f32 %v8975_v62  ;;  %v8978_v58 = vadd.f32 %v2224_v21, %v2216_v19 }
 0x74c   :  { %7913 = vtanh.f32 %v8978_v58 }
 0x757   :  { %v7912_v26 = vpop.eup %7911 }
 0x758   :  { %2325 = vrot.lane.b32.xlu1 %v7912_v26, %s8175_s12 }
 0x759   :  { %v7914_v1 = vpop.eup %7913 }
 0x75a   :  { %2229 = vrot.lane.b32.xlu0 %v7914_v1, %s8175_s12 }
 0x7ca   :  { %v2326_v28 = vpop.permute.xlu1 %2325 }
 0x7cb   :  { %v2328_v6 = vmul.f32 %v7908_v15, %v2326_v28 }
 0x7cc   :  { %v2230_v3 = vpop.permute.xlu0 %2229 }
 0x7cd   :  { %v8983_v30 = vmul.f32 %v7910_v47, %v2230_v3  ;;  %2405 = vrot.lane.b32.xlu1 %v2328_v6, %s8176_s13 }
 0x7cf   :  { %2330 = vrot.lane.b32.xlu0 %v8983_v30, %s8176_s13 }
 0x83f   :  { %v2406_v7 = vpop.permute.xlu1 %2405 }
 0x840   :  { %7422 = vmatmul.mubr.msk.f32.vlgmr.msra.gmra.mxu1 %vm621_vm2, %v2406_v7 }
 0x841   :  { %v2331_v31 = vpop.permute.xlu0 %2330  ;;  %7436 = vmatpush3.msra.mxu1 %v8875_v10  ;;  %7443 = vmatprep.mubr.msk.f32.mxu1 %vm8174_vm4, %v8173_v2 }
 0x842   :  { %7411 = vmatmul.mubr.msk.f32.vlgmr.msra.gmra.mxu0 %vm621_vm2, %v2331_v31  ;;  %7437 = vmatprep.subr.mxu1 %v8173_v2 }
 0x843   :  { %7425 = vmatpush3.msra.mxu0 %v8732_v27  ;;  %7432 = vmatprep.mubr.msk.f32.mxu0 %vm8174_vm4, %v8173_v2 }
 0x844   :  { %7426 = vmatprep.subr.mxu0 %v8173_v2  ;;  %7438 = vmatpush3.msra.mxu1 %v8880_v20 }
 0x845   :  { %7427 = vmatpush3.msra.mxu0 %v8739_v29  ;;  %7439 = vmatprep.subr.mxu1 %v8173_v2 }
 0x846   :  { %7428 = vmatprep.subr.mxu0 %v8173_v2  ;;  %7440 = vmatpush3.msra.mxu1 %v8897_v63 }
 0x847   :  { %7429 = vmatpush3.msra.mxu0 %v8746_v34  ;;  %7441 = vmatprep.subr.mxu1 %v8173_v2 }
 0x848   :  { %7430 = vmatprep.subr.mxu0 %v8173_v2  ;;  %7442 = vmatpush3.msra.mxu1 %v8911_v24 }
 0x849   :  { %7431 = vmatpush3.msra.mxu0 %v8753_v35  ;;  %7457 = vmatprep.subr.mxu1 %v8173_v2 }
 0x84a   :  { %7433 = vmatmul.mubr.msk.f32.vlgmr.msra.gmra.mxu0 %vm621_vm2, %v2406_v7  ;;  %7446 = vmatprep.subr.mxu0 %v8173_v2 }
 0x84b   :  { %7447 = vmatpush3.msra.mxu0 %v8886_v22  ;;  %7454 = vmatprep.mubr.msk.f32.mxu0 %vm8174_vm4, %v8173_v2 }
 0x84c   :  { %7448 = vmatprep.subr.mxu0 %v8173_v2 }
 0x84d   :  { %7449 = vmatpush3.msra.mxu0 %v8891_v23 }
 0x84e   :  { %7450 = vmatprep.subr.mxu0 %v8173_v2 }
 0x84f   :  { %7451 = vmatpush3.msra.mxu0 %v8905_v5 }
 0x850   :  { %7452 = vmatprep.subr.mxu0 %v8173_v2 }
 0x851   :  { %7453 = vmatpush3.msra.mxu0 %v8921_v25 }
 0x852   :  { %7468 = vmatprep.subr.mxu0 %v8173_v2 }
 0x900   :  { %v2475_v32 = vpop.f32.mrf.mxu1 }
 0x902   :  { %v2400_v11 = vpop.f32.mrf.mxu0  ;;  %v7423_v36 = vpop.f32.mrf.mxu1 }
 0x903   :  { %v2476_v38 = vadd.f32 %v2475_v32, %v2400_v11 }
 0x904   :  { %v7412_v40 = vpop.f32.mrf.mxu0 }
 0x905   :  { %v2479_v42 = vadd.f32 %v8967_v33, %v2476_v38 }
 0x907   :  { %7915 = vtanh.f32 %v2479_v42  ;;  %v6524_v8 = vmul.f32 -1.442695, %v2479_v42 }
 0x90a   :  { %v2571_v44 = vpop.f32.mrf.mxu0 }
 0x90b   :  { %v2575_v49 = vadd.f32 %v2571_v44, %v8861_v12 }
 0x90c   :  { %v7434_v54 = vpop.f32.mrf.mxu0 }
 0x90d   :  { %7917 = vtanh.f32 %v2575_v49  ;;  %v6526_v45 = vmul.f32 -1.442695, %v2575_v49 }
 0x90e   :  { %7919 = vpow2.f32 %v6524_v8 }
 0x90f   :  { %7921 = vpow2.f32 %v6526_v45 }
 0x914   :  { %v7916_v61 = vpop.eup %7915 }
 0x915   :  { %2489 = vrot.lane.b32.xlu0 %v7916_v61, %s8175_s12 }
 0x91a   :  { %v7918_v48 = vpop.eup %7917 }
 0x91b   :  { %2585 = vrot.lane.b32.xlu1 %v7918_v48, %s8175_s12  ;;  %v7920_v9 = vpop.eup %7919 }
 0x91c   :  { %v2483_v57 = vadd.f32 1.0, %v7920_v9  ;;  %v7922_v13 = vpop.eup %7921 }
 0x91d   :  { %v2579_v15 = vadd.f32 1.0, %v7922_v13 }
 0x91e   :  { %7923 = vrcp.f32 %v2483_v57 }
 0x91f   :  { %7925 = vrcp.f32 %v2579_v15 }
 0x92b   :  { %v7924_v59 = vpop.eup %7923 }
 0x92c   :  { %v7926_v47 = vpop.eup %7925  ;;  %v2487_v18 = vmul.f32 %v7924_v59, %v8978_v58 }
 0x92d   :  { %v2583_v21 = vmul.f32 %v7926_v47, %v8975_v62 }
 0x987   :  { %v2490_v12 = vpop.permute.xlu0 %2489 }
 0x988   :  { %v2492_v51 = vmul.f32 %v7924_v59, %v2490_v12 }
 0x98a   :  { %2494 = vrot.lane.b32.xlu0 %v2492_v51, %s8176_s13 }
 0x98d   :  { %v2586_v16 = vpop.permute.xlu1 %2585 }
 0x98e   :  { %v2588_v17 = vmul.f32 %v7926_v47, %v2586_v16 }
 0x990   :  { %2590 = vrot.lane.b32.xlu1 %v2588_v17, %s8176_s13 }
 0x9fc   :  { %v2495_v0 = vpop.permute.xlu0 %2494 }
 0x9fd   :  { %v9028_v19 = vadd.f32 %v2495_v0, %v2487_v18 }
 0x9ff   :  { %7927 = vtanh.f32 %v9028_v19 }
 0xa02   :  { %v2591_v26 = vpop.permute.xlu1 %2590 }
 0xa03   :  { %v9032_v1 = vadd.f32 %v2591_v26, %v2583_v21 }
 0xa05   :  { %7929 = vtanh.f32 %v9032_v1 }
 0xa0c   :  { %v7928_v28 = vpop.eup %7927 }
 0xa0d   :  { %2500 = vrot.lane.b32.xlu0 %v7928_v28, %s8175_s12 }
 0xa12   :  { %v7930_v6 = vpop.eup %7929 }
 0xa13   :  { %2596 = vrot.lane.b32.xlu1 %v7930_v6, %s8175_s12 }
 0xa7f   :  { %v2501_v3 = vpop.permute.xlu0 %2500 }
 0xa80   :  { %v9037_v58 = vmul.f32 %v7924_v59, %v2501_v3 }
 0xa82   :  { %2601 = vrot.lane.b32.xlu0 %v9037_v58, %s8176_s13 }
 0xa85   :  { %v2597_v7 = vpop.permute.xlu1 %2596 }
 0xa86   :  { %v2599_v31 = vmul.f32 %v7926_v47, %v2597_v7 }
 0xa88   :  { %2676 = vrot.lane.b32.xlu1 %v2599_v31, %s8176_s13 }
 0xaf4   :  { %v2602_v62 = vpop.permute.xlu0 %2601 }
 0xaf5   :  { %7444 = vmatmul.mubr.msk.f32.vlgmr.msra.gmra.mxu1 %vm621_vm2, %v2602_v62 }
 0xaf6   :  { %7458 = vmatpush3.msra.mxu1 %v8732_v27  ;;  %7465 = vmatprep.mubr.msk.f32.mxu1 %vm8174_vm4, %v8173_v2 }
 0xaf7   :  { %7459 = vmatprep.subr.mxu1 %v8173_v2 }
 0xaf8   :  { %7460 = vmatpush3.msra.mxu1 %v8739_v29 }
 0xaf9   :  { %7461 = vmatprep.subr.mxu1 %v8173_v2 }
 0xafa   :  { %v2677_v32 = vpop.permute.xlu1 %2676  ;;  %7462 = vmatpush3.msra.mxu1 %v8746_v34 }
 0xafb   :  { %7455 = vmatmul.mubr.msk.f32.vlgmr.msra.gmra.mxu0 %vm621_vm2, %v2677_v32  ;;  %7463 = vmatprep.subr.mxu1 %v8173_v2 }
 0xafc   :  { %7464 = vmatpush3.msra.mxu1 %v8753_v35  ;;  %7469 = vmatpush3.msra.mxu0 %v8875_v10 }
 0xafd   :  { %7466 = vmatmul.mubr.msk.f32.vlgmr.msra.gmra.mxu1 %vm621_vm2, %v2677_v32  ;;  %7479 = vmatprep.subr.mxu1 %v8173_v2 }
 0xafe   :  { %7470 = vmatprep.subr.mxu0 %v8173_v2  ;;  %7480 = vmatpush3.msra.mxu1 %v8886_v22 }
 0xaff   :  { %7471 = vmatpush3.msra.mxu0 %v8880_v20  ;;  %7481 = vmatprep.subr.mxu1 %v8173_v2 }
 0xb00   :  { %7472 = vmatprep.subr.mxu0 %v8173_v2  ;;  %7482 = vmatpush3.msra.mxu1 %v8891_v23 }
 0xb01   :  { %7473 = vmatpush3.msra.mxu0 %v8897_v63  ;;  %7483 = vmatprep.subr.mxu1 %v8173_v2 }
 0xb02   :  { %7474 = vmatprep.subr.mxu0 %v8173_v2  ;;  %7484 = vmatpush3.msra.mxu1 %v8905_v5 }
 0xb03   :  { %7475 = vmatpush3.msra.mxu0 %v8911_v24  ;;  %7485 = vmatprep.subr.mxu1 %v8173_v2 }
 0xb04   :  { %7476 = vmatprep.mubr.msk.f32.mxu0 %vm8174_vm4, %v8173_v2  ;;  %7486 = vmatpush3.msra.mxu1 %v8921_v25 }
 0xb05   :  { %7487 = vmatprep.mubr.msk.f32.mxu1 %vm8174_vm4, %v8173_v2  ;;  %7490 = vmatprep.subr.mxu0 %v8173_v2 }
 0xb06   :  { %7501 = vmatprep.subr.mxu1 %v8173_v2 }
 0xbb5   :  { %v2671_v11 = vpop.f32.mrf.mxu1 }
 0xbb7   :  { %v7445_v36 = vpop.f32.mrf.mxu1 }
 0xbbb   :  { %v2746_v38 = vpop.f32.mrf.mxu0 }
 0xbbc   :  { %v2747_v40 = vadd.f32 %v2746_v38, %v2671_v11 }
 0xbbd   :  { %v7456_v42 = vpop.f32.mrf.mxu0  ;;  %v2842_v44 = vpop.f32.mrf.mxu1 }
 0xbbe   :  { %v2750_v49 = vadd.f32 %v8967_v33, %v2747_v40  ;;  %v2846_v54 = vadd.f32 %v2842_v44, %v8864_v14 }
 0xbbf   :  { %v7467_v61 = vpop.f32.mrf.mxu1 }
 0xbc0   :  { %7931 = vtanh.f32 %v2750_v49  ;;  %v6529_v45 = vmul.f32 -1.442695, %v2750_v49  ;;  %v6531_v9 = vmul.f32 -1.442695, %v2846_v54 }
 0xbc1   :  { %7933 = vtanh.f32 %v2846_v54 }
 0xbc2   :  { %7935 = vpow2.f32 %v6529_v45 }
 0xbc3   :  { %7937 = vpow2.f32 %v6531_v9 }
 0xbcd   :  { %v7932_v48 = vpop.eup %7931 }
 0xbce   :  { %v7934_v8 = vpop.eup %7933  ;;  %2760 = vrot.lane.b32.xlu0 %v7932_v48, %s8175_s12 }
 0xbcf   :  { %2856 = vrot.lane.b32.xlu1 %v7934_v8, %s8175_s12  ;;  %v7936_v57 = vpop.eup %7935 }
 0xbd0   :  { %v7938_v13 = vpop.eup %7937  ;;  %v2754_v15 = vadd.f32 1.0, %v7936_v57 }
 0xbd1   :  { %v2850_v59 = vadd.f32 1.0, %v7938_v13 }
 0xbd2   :  { %7939 = vrcp.f32 %v2754_v15 }
 0xbd3   :  { %7941 = vrcp.f32 %v2850_v59 }
 0xbdf   :  { %v7940_v14 = vpop.eup %7939 }
 0xbe0   :  { %v7942_v51 = vpop.eup %7941  ;;  %v2758_v18 = vmul.f32 %v7940_v14, %v9028_v19 }
 0xbe1   :  { %v2854_v21 = vmul.f32 %v7942_v51, %v9032_v1 }
 0xc40   :  { %v2761_v12 = vpop.permute.xlu0 %2760 }
 0xc41   :  { %v2763_v47 = vmul.f32 %v7940_v14, %v2761_v12  ;;  %v2857_v16 = vpop.permute.xlu1 %2856 }
 0xc42   :  { %v2859_v17 = vmul.f32 %v7942_v51, %v2857_v16 }
 0xc43   :  { %2765 = vrot.lane.b32.xlu0 %v2763_v47, %s8176_s13 }
 0xc44   :  { %2861 = vrot.lane.b32.xlu1 %v2859_v17, %s8176_s13 }
 0xcb5   :  { %v2766_v0 = vpop.permute.xlu0 %2765 }
 0xcb6   :  { %v9083_v26 = vadd.f32 %v2766_v0, %v2758_v18  ;;  %v2862_v28 = vpop.permute.xlu1 %2861 }
 0xcb7   :  { %v9085_v6 = vadd.f32 %v2862_v28, %v2854_v21 }
 0xcb8   :  { %7943 = vtanh.f32 %v9083_v26 }
 0xcb9   :  { %7945 = vtanh.f32 %v9085_v6 }
 0xcc5   :  { %v7944_v3 = vpop.eup %7943 }
 0xcc6   :  { %v7946_v7 = vpop.eup %7945  ;;  %2771 = vrot.lane.b32.xlu0 %v7944_v3, %s8175_s12 }
 0xcc7   :  { %2867 = vrot.lane.b32.xlu1 %v7946_v7, %s8175_s12 }
 0xd38   :  { %v2772_v31 = vpop.permute.xlu0 %2771 }
 0xd39   :  { %v9091_v19 = vmul.f32 %v7940_v14, %v2772_v31  ;;  %v2868_v62 = vpop.permute.xlu1 %2867 }
 0xd3a   :  { %v2870_v1 = vmul.f32 %v7942_v51, %v2868_v62  ;;  %v9154_v62 = vld [vmem:[%s9915_s9 + $0x18] sm:$0xff] }
 0xd3b   :  { %2872 = vrot.lane.b32.xlu0 %v9091_v19, %s8176_s13 }
 0xd3c   :  { %2947 = vrot.lane.b32.xlu1 %v2870_v1, %s8176_s13  ;;  %v9163_v1 = vld [vmem:[%s9915_s9 + $0x10] sm:$0xff] }
 0xdad   :  { %v2873_v32 = vpop.permute.xlu0 %2872 }
 0xdae   :  { %v2948_v11 = vpop.permute.xlu1 %2947  ;;  %7477 = vmatmul.mubr.msk.f32.vlgmr.msra.gmra.mxu0 %vm621_vm2, %v2873_v32 }
 0xdaf   :  { %7488 = vmatmul.mubr.msk.f32.vlgmr.msra.gmra.mxu1 %vm621_vm2, %v2948_v11  ;;  %7491 = vmatpush3.msra.mxu0 %v8732_v27 }
 0xdb0   :  { %7492 = vmatprep.subr.mxu0 %v8173_v2  ;;  %7498 = vmatprep.mubr.msk.f32.mxu0 %vm8174_vm4, %v8173_v2 }
 0xdb1   :  { %7493 = vmatpush3.msra.mxu0 %v8739_v29  ;;  %7502 = vmatpush3.msra.mxu1 %v8875_v10 }
 0xdb2   :  { %7494 = vmatprep.subr.mxu0 %v8173_v2  ;;  %7503 = vmatprep.subr.mxu1 %v8173_v2 }
 0xdb3   :  { %7495 = vmatpush3.msra.mxu0 %v8746_v34  ;;  %7504 = vmatpush3.msra.mxu1 %v8880_v20 }
 0xdb4   :  { %7496 = vmatprep.subr.mxu0 %v8173_v2  ;;  %7505 = vmatprep.subr.mxu1 %v8173_v2 }
 0xdb5   :  { %7497 = vmatpush3.msra.mxu0 %v8753_v35  ;;  %7506 = vmatpush3.msra.mxu1 %v8897_v63 }
 0xdb6   :  { %7499 = vmatmul.mubr.msk.f32.vlgmr.msra.gmra.mxu0 %vm621_vm2, %v2948_v11  ;;  %7507 = vmatprep.subr.mxu1 %v8173_v2  ;;  %v9170_v11 = vld [vmem:[%s9915_s9 + $0x8] sm:$0xff] }
 0xdb7   :  { %7512 = vmatprep.subr.mxu0 %v8173_v2  ;;  %7508 = vmatpush3.msra.mxu1 %v8911_v24 }
 0xdb8   :  { %7513 = vmatpush3.msra.mxu0 %v8886_v22  ;;  %7509 = vmatprep.mubr.msk.f32.mxu1 %vm8174_vm4, %v8173_v2 }
 0xdb9   :  { %7514 = vmatprep.subr.mxu0 %v8173_v2  ;;  %7523 = vmatprep.subr.mxu1 %v8173_v2 }
 0xdba   :  { %7515 = vmatpush3.msra.mxu0 %v8891_v23  ;;  %7520 = vmatprep.mubr.msk.f32.mxu0 %vm8174_vm4, %v8173_v2 }
 0xdbb   :  { %7516 = vmatprep.subr.mxu0 %v8173_v2 }
 0xdbc   :  { %7517 = vmatpush3.msra.mxu0 %v8905_v5 }
 0xdbd   :  { %7518 = vmatprep.subr.mxu0 %v8173_v2 }
 0xdbe   :  { %7519 = vmatpush3.msra.mxu0 %v8921_v25 }
 0xdbf   :  { %7534 = vmatprep.subr.mxu0 %v8173_v2 }
 0xe6e   :  { %v2942_v27 = vpop.f32.mrf.mxu0 }
 0xe6f   :  { %v3017_v29 = vpop.f32.mrf.mxu1 }
 0xe70   :  { %v3018_v34 = vadd.f32 %v3017_v29, %v2942_v27  ;;  %v7478_v35 = vpop.f32.mrf.mxu0  ;;  %v9179_v27 = vld [vmem:[%s9915_s9] sm:$0xff] }
 0xe71   :  { %v7489_v36 = vpop.f32.mrf.mxu1 }
 0xe72   :  { %v3021_v38 = vadd.f32 %v8967_v33, %v3018_v34 }
 0xe74   :  { %7947 = vtanh.f32 %v3021_v38  ;;  %v6534_v61 = vmul.f32 -1.442695, %v3021_v38 }
 0xe76   :  { %v3113_v40 = vpop.f32.mrf.mxu0 }
 0xe77   :  { %v3117_v42 = vadd.f32 %v3113_v40, %v8855_v60 }
 0xe78   :  { %v7500_v44 = vpop.f32.mrf.mxu0 }
 0xe79   :  { %7949 = vtanh.f32 %v3117_v42  ;;  %v6536_v48 = vmul.f32 -1.442695, %v3117_v42 }
 0xe7a   :  { %7951 = vpow2.f32 %v6534_v61 }
 0xe7b   :  { %7953 = vpow2.f32 %v6536_v48 }
 0xe81   :  { %v7948_v49 = vpop.eup %7947 }
 0xe82   :  { %3031 = vrot.lane.b32.xlu0 %v7948_v49, %s8175_s12 }
 0xe86   :  { %v7950_v54 = vpop.eup %7949 }
 0xe87   :  { %3127 = vrot.lane.b32.xlu1 %v7950_v54, %s8175_s12  ;;  %v7952_v8 = vpop.eup %7951 }
 0xe88   :  { %v3025_v45 = vadd.f32 1.0, %v7952_v8  ;;  %v7954_v9 = vpop.eup %7953 }
 0xe89   :  { %v3121_v57 = vadd.f32 1.0, %v7954_v9 }
 0xe8a   :  { %7955 = vrcp.f32 %v3025_v45 }
 0xe8b   :  { %7957 = vrcp.f32 %v3121_v57 }
 0xe97   :  { %v7956_v13 = vpop.eup %7955 }
 0xe98   :  { %v7958_v59 = vpop.eup %7957  ;;  %v3029_v51 = vmul.f32 %v7956_v13, %v9083_v26 }
 0xe99   :  { %v3125_v17 = vmul.f32 %v7958_v59, %v9085_v6 }
 0xef4   :  { %v3032_v60 = vpop.permute.xlu0 %3031 }
 0xef5   :  { %v3034_v15 = vmul.f32 %v7956_v13, %v3032_v60 }
 0xef7   :  { %3036 = vrot.lane.b32.xlu0 %v3034_v15, %s8176_s13 }
 0xef9   :  { %v3128_v14 = vpop.permute.xlu1 %3127 }
 0xefa   :  { %v3130_v12 = vmul.f32 %v7958_v59, %v3128_v14 }
 0xefc   :  { %3132 = vrot.lane.b32.xlu1 %v3130_v12, %s8176_s13 }
 0xf69   :  { %v3037_v47 = vpop.permute.xlu0 %3036 }
 0xf6a   :  { %v9136_v16 = vadd.f32 %v3037_v47, %v3029_v51 }
 0xf6c   :  { %7959 = vtanh.f32 %v9136_v16 }
 0xf6e   :  { %v3133_v18 = vpop.permute.xlu1 %3132 }
 0xf6f   :  { %v9140_v0 = vadd.f32 %v3133_v18, %v3125_v17 }
 0xf71   :  { %7961 = vtanh.f32 %v9140_v0 }
 0xf79   :  { %v7960_v21 = vpop.eup %7959 }
 0xf7a   :  { %3042 = vrot.lane.b32.xlu0 %v7960_v21, %s8175_s12 }
 0xf7e   :  { %v7962_v28 = vpop.eup %7961 }
 0xf7f   :  { %3138 = vrot.lane.b32.xlu1 %v7962_v28, %s8175_s12 }
 0xfec   :  { %v3043_v3 = vpop.permute.xlu0 %3042 }
 0xfed   :  { %v3045_v26 = vmul.f32 %v7956_v13, %v3043_v3 }
 0xfef   :  { %3143 = vrot.lane.b32.xlu0 %v3045_v26, %s8176_s13 }
 0xff1   :  { %v3139_v7 = vpop.permute.xlu1 %3138 }
 0xff2   :  { %v3141_v31 = vmul.f32 %v7958_v59, %v3139_v7 }
 0xff4   :  { %3218 = vrot.lane.b32.xlu1 %v3141_v31, %s8176_s13 }
0x1061   :  { %v9147_v6 = vpop.permute.xlu0 %3143 }
0x1062   :  { %7510 = vmatmul.mubr.msk.f32.vlgmr.msra.gmra.mxu1 %vm621_vm2, %v9147_v6 }
0x1063   :  { %7524 = vmatpush3.msra.mxu1 %v9154_v62  ;;  %7531 = vmatprep.mubr.msk.f32.mxu1 %vm8174_vm4, %v8173_v2 }
0x1064   :  { %7525 = vmatprep.subr.mxu1 %v8173_v2 }
0x1065   :  { %7526 = vmatpush3.msra.mxu1 %v9163_v1 }
0x1066   :  { %7527 = vmatprep.subr.mxu1 %v8173_v2  ;;  %v3219_v32 = vpop.permute.xlu1 %3218 }
0x1067   :  { %7528 = vmatpush3.msra.mxu1 %v9170_v11  ;;  %7521 = vmatmul.mubr.msk.f32.vlgmr.msra.gmra.mxu0 %vm621_vm2, %v3219_v32 }
0x1068   :  { %7529 = vmatprep.subr.mxu1 %v8173_v2  ;;  %7535 = vmatpush3.msra.mxu0 %v8875_v10 }
0x1069   :  { %7530 = vmatpush3.msra.mxu1 %v9179_v27  ;;  %7536 = vmatprep.subr.mxu0 %v8173_v2 }
0x106a   :  { %7532 = vmatmul.mubr.msk.f32.vlgmr.msra.gmra.mxu1 %vm621_vm2, %v3219_v32  ;;  %7545 = vmatprep.subr.mxu1 %v8173_v2 }
0x106b   :  { %7546 = vmatpush3.msra.mxu1 %v8886_v22  ;;  %7537 = vmatpush3.msra.mxu0 %v8880_v20 }
0x106c   :  { %7547 = vmatprep.subr.mxu1 %v8173_v2  ;;  %7538 = vmatprep.subr.mxu0 %v8173_v2 }
0x106d   :  { %7548 = vmatpush3.msra.mxu1 %v8891_v23  ;;  %7539 = vmatpush3.msra.mxu0 %v8897_v63 }
0x106e   :  { %7549 = vmatprep.subr.mxu1 %v8173_v2  ;;  %7540 = vmatprep.subr.mxu0 %v8173_v2 }
0x106f   :  { %7550 = vmatpush3.msra.mxu1 %v8905_v5  ;;  %7541 = vmatpush3.msra.mxu0 %v8911_v24 }
0x1070   :  { %7551 = vmatprep.subr.mxu1 %v8173_v2  ;;  %7542 = vmatprep.mubr.msk.f32.mxu0 %vm8174_vm4, %v8173_v2 }
0x1071   :  { %7552 = vmatpush3.msra.mxu1 %v8921_v25  ;;  %7553 = vmatprep.mubr.msk.f32.mxu1 %vm8174_vm4, %v8173_v2 }
0x1072   :  { %7556 = vmatprep.subr.mxu0 %v8173_v2  ;;  %7567 = vmatprep.subr.mxu1 %v8173_v2 }
0x1122   :  { %v3213_v29 = vpop.f32.mrf.mxu1 }
0x1124   :  { %v7511_v34 = vpop.f32.mrf.mxu1 }
0x1127   :  { %v3288_v35 = vpop.f32.mrf.mxu0 }
0x1128   :  { %v3289_v36 = vadd.f32 %v3288_v35, %v3213_v29 }
0x1129   :  { %v7522_v38 = vpop.f32.mrf.mxu0 }
0x112a   :  { %v3292_v40 = vadd.f32 %v8967_v33, %v3289_v36  ;;  %v3384_v42 = vpop.f32.mrf.mxu1 }
0x112b   :  { %v3388_v44 = vadd.f32 %v3384_v42, %v8858_v50 }
0x112c   :  { %7963 = vtanh.f32 %v3292_v40  ;;  %v7533_v49 = vpop.f32.mrf.mxu1  ;;  %v6539_v48 = vmul.f32 -1.442695, %v3292_v40 }
0x112d   :  { %7965 = vtanh.f32 %v3388_v44  ;;  %v6541_v8 = vmul.f32 -1.442695, %v3388_v44 }
0x112e   :  { %7967 = vpow2.f32 %v6539_v48 }
0x112f   :  { %7969 = vpow2.f32 %v6541_v8 }
0x1139   :  { %v7964_v54 = vpop.eup %7963 }
0x113a   :  { %v7966_v61 = vpop.eup %7965  ;;  %3302 = vrot.lane.b32.xlu0 %v7964_v54, %s8175_s12 }
0x113b   :  { %3398 = vrot.lane.b32.xlu1 %v7966_v61, %s8175_s12  ;;  %v7968_v45 = vpop.eup %7967 }
0x113c   :  { %v7970_v9 = vpop.eup %7969  ;;  %v3296_v57 = vadd.f32 1.0, %v7968_v45 }
0x113d   :  { %v3392_v13 = vadd.f32 1.0, %v7970_v9 }
0x113e   :  { %7971 = vrcp.f32 %v3296_v57 }
0x113f   :  { %7973 = vrcp.f32 %v3392_v13 }
0x114b   :  { %v7972_v50 = vpop.eup %7971 }
0x114c   :  { %v7974_v15 = vpop.eup %7973  ;;  %v3300_v51 = vmul.f32 %v7972_v50, %v9136_v16 }
0x114d   :  { %v3396_v17 = vmul.f32 %v7974_v15, %v9140_v0 }
0x11ac   :  { %v3303_v60 = vpop.permute.xlu0 %3302 }
0x11ad   :  { %v3305_v59 = vmul.f32 %v7972_v50, %v3303_v60  ;;  %v3399_v14 = vpop.permute.xlu1 %3398 }
0x11ae   :  { %v3401_v12 = vmul.f32 %v7974_v15, %v3399_v14 }
0x11af   :  { %3307 = vrot.lane.b32.xlu0 %v3305_v59, %s8176_s13 }
0x11b0   :  { %3403 = vrot.lane.b32.xlu1 %v3401_v12, %s8176_s13 }
0x1221   :  { %v3308_v47 = vpop.permute.xlu0 %3307 }
0x1222   :  { %v9211_v18 = vadd.f32 %v3308_v47, %v3300_v51  ;;  %v3404_v21 = vpop.permute.xlu1 %3403 }
0x1223   :  { %v9213_v28 = vadd.f32 %v3404_v21, %v3396_v17 }
0x1224   :  { %7975 = vtanh.f32 %v9211_v18 }
0x1225   :  { %7977 = vtanh.f32 %v9213_v28 }
0x1231   :  { %v7976_v3 = vpop.eup %7975 }
0x1232   :  { %v7978_v26 = vpop.eup %7977  ;;  %3313 = vrot.lane.b32.xlu0 %v7976_v3, %s8175_s12  ;;  %v9291_v3 = vld [vmem:[%s9915_s9 + $0x38] sm:$0xff] }
0x1233   :  { %3409 = vrot.lane.b32.xlu1 %v7978_v26, %s8175_s12  ;;  %v9301_v26 = vld [vmem:[%s9918_s8 + $0x18] sm:$0xff] }
0x12a4   :  { %v3314_v7 = vpop.permute.xlu0 %3313 }
0x12a5   :  { %v9219_v16 = vmul.f32 %v7972_v50, %v3314_v7  ;;  %v3410_v31 = vpop.permute.xlu1 %3409  ;;  %v9307_v7 = vld [vmem:[%s9915_s9 + $0x30] sm:$0xff] }
0x12a6   :  { %v3412_v0 = vmul.f32 %v7974_v15, %v3410_v31  ;;  %v9315_v31 = vld [vmem:[%s9918_s8 + $0x10] sm:$0xff] }
0x12a7   :  { %3414 = vrot.lane.b32.xlu0 %v9219_v16, %s8176_s13 }
0x12a8   :  { %3489 = vrot.lane.b32.xlu1 %v3412_v0, %s8176_s13  ;;  %v9321_v0 = vld [vmem:[%s9915_s9 + $0x28] sm:$0xff] }
0x1319   :  { %v3415_v32 = vpop.permute.xlu0 %3414 }
0x131a   :  { %v3490_v29 = vpop.permute.xlu1 %3489  ;;  %7543 = vmatmul.mubr.msk.f32.vlgmr.msra.gmra.mxu0 %vm621_vm2, %v3415_v32  ;;  %v9329_v32 = vld [vmem:[%s9918_s8 + $0x8] sm:$0xff] }
0x131b   :  { %7554 = vmatmul.mubr.msk.f32.vlgmr.msra.gmra.mxu1 %vm621_vm2, %v3490_v29  ;;  %7557 = vmatpush3.msra.mxu0 %v9154_v62 }
0x131c   :  { %7558 = vmatprep.subr.mxu0 %v8173_v2  ;;  %7564 = vmatprep.mubr.msk.f32.mxu0 %vm8174_vm4, %v8173_v2 }
0x131d   :  { %7559 = vmatpush3.msra.mxu0 %v9163_v1  ;;  %7568 = vmatpush3.msra.mxu1 %v8875_v10 }
0x131e   :  { %7560 = vmatprep.subr.mxu0 %v8173_v2  ;;  %7569 = vmatprep.subr.mxu1 %v8173_v2 }
0x131f   :  { %7561 = vmatpush3.msra.mxu0 %v9170_v11  ;;  %7570 = vmatpush3.msra.mxu1 %v8880_v20 }
0x1320   :  { %7562 = vmatprep.subr.mxu0 %v8173_v2  ;;  %7571 = vmatprep.subr.mxu1 %v8173_v2 }
0x1321   :  { %7563 = vmatpush3.msra.mxu0 %v9179_v27  ;;  %7572 = vmatpush3.msra.mxu1 %v8897_v63 }
0x1322   :  { %7565 = vmatmul.mubr.msk.f32.vlgmr.msra.gmra.mxu0 %vm621_vm2, %v3490_v29  ;;  %7573 = vmatprep.subr.mxu1 %v8173_v2  ;;  %v9335_v29 = vld [vmem:[%s9915_s9 + $0x20] sm:$0xff] }
0x1323   :  { %7578 = vmatprep.subr.mxu0 %v8173_v2  ;;  %7574 = vmatpush3.msra.mxu1 %v8911_v24 }
0x1324   :  { %7579 = vmatpush3.msra.mxu0 %v8886_v22  ;;  %7575 = vmatprep.mubr.msk.f32.mxu1 %vm8174_vm4, %v8173_v2 }
0x1325   :  { %7580 = vmatprep.subr.mxu0 %v8173_v2  ;;  %7589 = vmatprep.subr.mxu1 %v8173_v2 }
0x1326   :  { %7581 = vmatpush3.msra.mxu0 %v8891_v23  ;;  %7586 = vmatprep.mubr.msk.f32.mxu0 %vm8174_vm4, %v8173_v2 }
0x1327   :  { %7582 = vmatprep.subr.mxu0 %v8173_v2 }
0x1328   :  { %7583 = vmatpush3.msra.mxu0 %v8905_v5 }
0x1329   :  { %7584 = vmatprep.subr.mxu0 %v8173_v2 }
0x132a   :  { %7585 = vmatpush3.msra.mxu0 %v8921_v25 }
0x132b   :  { %7600 = vmatprep.subr.mxu0 %v8173_v2 }
0x13da   :  { %v3484_v10 = vpop.f32.mrf.mxu0 }
0x13db   :  { %v3559_v20 = vpop.f32.mrf.mxu1 }
0x13dc   :  { %v3560_v22 = vadd.f32 %v3559_v20, %v3484_v10  ;;  %v7544_v63 = vpop.f32.mrf.mxu0  ;;  %v9344_v10 = vld [vmem:[%s9918_s8] sm:$0xff] }
0x13dd   :  { %v7555_v24 = vpop.f32.mrf.mxu1 }
0x13de   :  { %v3563_v23 = vadd.f32 %v8967_v33, %v3560_v22 }
0x13e0   :  { %7979 = vtanh.f32 %v3563_v23  ;;  %v6544_v25 = vmul.f32 -1.442695, %v3563_v23 }
0x13e2   :  { %v3655_v34 = vpop.f32.mrf.mxu0 }
0x13e3   :  { %v3659_v35 = vadd.f32 %v3655_v34, %v8849_v4 }
0x13e4   :  { %v7566_v36 = vpop.f32.mrf.mxu0 }
0x13e5   :  { %7981 = vtanh.f32 %v3659_v35  ;;  %v6546_v40 = vmul.f32 -1.442695, %v3659_v35 }
0x13e6   :  { %7983 = vpow2.f32 %v6544_v25 }
0x13e7   :  { %7985 = vpow2.f32 %v6546_v40 }
0x13ed   :  { %v7980_v5 = vpop.eup %7979 }
0x13ee   :  { %3573 = vrot.lane.b32.xlu0 %v7980_v5, %s8175_s12 }
0x13f2   :  { %v7982_v38 = vpop.eup %7981 }
0x13f3   :  { %3669 = vrot.lane.b32.xlu1 %v7982_v38, %s8175_s12  ;;  %v7984_v42 = vpop.eup %7983 }
0x13f4   :  { %v3567_v44 = vadd.f32 1.0, %v7984_v42  ;;  %v7986_v49 = vpop.eup %7985 }
0x13f5   :  { %v3663_v54 = vadd.f32 1.0, %v7986_v49 }
0x13f6   :  { %7987 = vrcp.f32 %v3567_v44 }
0x13f7   :  { %7989 = vrcp.f32 %v3663_v54 }
0x1403   :  { %v7988_v61 = vpop.eup %7987 }
0x1404   :  { %v7990_v8 = vpop.eup %7989  ;;  %v3571_v57 = vmul.f32 %v7988_v61, %v9211_v18 }
0x1405   :  { %v3667_v60 = vmul.f32 %v7990_v8, %v9213_v28 }
0x1460   :  { %v3574_v4 = vpop.permute.xlu0 %3573 }
0x1461   :  { %v3576_v48 = vmul.f32 %v7988_v61, %v3574_v4 }
0x1463   :  { %3578 = vrot.lane.b32.xlu0 %v3576_v48, %s8176_s13 }
0x1465   :  { %v3670_v45 = vpop.permute.xlu1 %3669 }
0x1466   :  { %v3672_v9 = vmul.f32 %v7990_v8, %v3670_v45 }
0x1468   :  { %3674 = vrot.lane.b32.xlu1 %v3672_v9, %s8176_s13 }
0x14d5   :  { %v3579_v13 = vpop.permute.xlu0 %3578 }
0x14d6   :  { %v9264_v50 = vadd.f32 %v3579_v13, %v3571_v57 }
0x14d8   :  { %7991 = vtanh.f32 %v9264_v50 }
0x14da   :  { %v3675_v15 = vpop.permute.xlu1 %3674 }
0x14db   :  { %v9268_v59 = vadd.f32 %v3675_v15, %v3667_v60 }
0x14dd   :  { %7993 = vtanh.f32 %v9268_v59 }
0x14e5   :  { %v7992_v14 = vpop.eup %7991 }
0x14e6   :  { %3584 = vrot.lane.b32.xlu0 %v7992_v14, %s8175_s12 }
0x14ea   :  { %v7994_v12 = vpop.eup %7993 }
0x14eb   :  { %3680 = vrot.lane.b32.xlu1 %v7994_v12, %s8175_s12 }
0x1558   :  { %v3585_v51 = vpop.permute.xlu0 %3584 }
0x1559   :  { %v9273_v47 = vmul.f32 %v7988_v61, %v3585_v51 }
0x155b   :  { %3685 = vrot.lane.b32.xlu0 %v9273_v47, %s8176_s13 }
0x155d   :  { %v3681_v17 = vpop.permute.xlu1 %3680 }
0x155e   :  { %v3683_v18 = vmul.f32 %v7990_v8, %v3681_v17 }
0x1560   :  { %3760 = vrot.lane.b32.xlu1 %v3683_v18, %s8176_s13 }
0x15cd   :  { %v3686_v21 = vpop.permute.xlu0 %3685 }
0x15ce   :  { %7576 = vmatmul.mubr.msk.f32.vlgmr.msra.gmra.mxu1 %vm621_vm2, %v3686_v21 }
0x15cf   :  { %7590 = vmatpush3.msra.mxu1 %v9154_v62  ;;  %7597 = vmatprep.mubr.msk.f32.mxu1 %vm8174_vm4, %v8173_v2 }
0x15d0   :  { %7591 = vmatprep.subr.mxu1 %v8173_v2 }
0x15d1   :  { %7592 = vmatpush3.msra.mxu1 %v9163_v1 }
0x15d2   :  { %7593 = vmatprep.subr.mxu1 %v8173_v2  ;;  %v3761_v28 = vpop.permute.xlu1 %3760 }
0x15d3   :  { %7594 = vmatpush3.msra.mxu1 %v9170_v11  ;;  %7587 = vmatmul.mubr.msk.f32.vlgmr.msra.gmra.mxu0 %vm621_vm2, %v3761_v28 }
0x15d4   :  { %7595 = vmatprep.subr.mxu1 %v8173_v2  ;;  %7601 = vmatpush3.msra.mxu0 %v9291_v3 }
0x15d5   :  { %7596 = vmatpush3.msra.mxu1 %v9179_v27  ;;  %7602 = vmatprep.subr.mxu0 %v8173_v2 }
0x15d6   :  { %7598 = vmatmul.mubr.msk.f32.vlgmr.msra.gmra.mxu1 %vm621_vm2, %v3761_v28  ;;  %7611 = vmatprep.subr.mxu1 %v8173_v2 }
0x15d7   :  { %7612 = vmatpush3.msra.mxu1 %v9301_v26  ;;  %7603 = vmatpush3.msra.mxu0 %v9307_v7 }
0x15d8   :  { %7613 = vmatprep.subr.mxu1 %v8173_v2  ;;  %7604 = vmatprep.subr.mxu0 %v8173_v2 }
0x15d9   :  { %7614 = vmatpush3.msra.mxu1 %v9315_v31  ;;  %7605 = vmatpush3.msra.mxu0 %v9321_v0 }
0x15da   :  { %7615 = vmatprep.subr.mxu1 %v8173_v2  ;;  %7606 = vmatprep.subr.mxu0 %v8173_v2 }
0x15db   :  { %7616 = vmatpush3.msra.mxu1 %v9329_v32  ;;  %7607 = vmatpush3.msra.mxu0 %v9335_v29 }
0x15dc   :  { %7617 = vmatprep.subr.mxu1 %v8173_v2  ;;  %7608 = vmatprep.mubr.msk.f32.mxu0 %vm8174_vm4, %v8173_v2 }
0x15dd   :  { %7618 = vmatpush3.msra.mxu1 %v9344_v10  ;;  %7619 = vmatprep.mubr.msk.f32.mxu1 %vm8174_vm4, %v8173_v2 }
0x15de   :  { %7622 = vmatprep.subr.mxu0 %v8173_v2  ;;  %7633 = vmatprep.subr.mxu1 %v8173_v2 }
0x168e   :  { %v3755_v20 = vpop.f32.mrf.mxu1 }
0x1690   :  { %v7577_v22 = vpop.f32.mrf.mxu1 }
0x1693   :  { %v3830_v63 = vpop.f32.mrf.mxu0 }
0x1694   :  { %v3831_v24 = vadd.f32 %v3830_v63, %v3755_v20 }
0x1695   :  { %v7588_v23 = vpop.f32.mrf.mxu0 }
0x1696   :  { %v3834_v34 = vadd.f32 %v8967_v33, %v3831_v24  ;;  %v3926_v35 = vpop.f32.mrf.mxu1 }
0x1697   :  { %v3930_v36 = vadd.f32 %v3926_v35, %v8852_v55 }
0x1698   :  { %7995 = vtanh.f32 %v3834_v34  ;;  %v7599_v5 = vpop.f32.mrf.mxu1  ;;  %v6549_v40 = vmul.f32 -1.442695, %v3834_v34  ;;  %v9408_v34 = vld [vmem:[%s9917_s10 + $0x1] ss:$0 sm:$0xff] }
0x1699   :  { %7997 = vtanh.f32 %v3930_v36  ;;  %v6551_v42 = vmul.f32 -1.442695, %v3930_v36 }
0x169a   :  { %7999 = vpow2.f32 %v6549_v40 }
0x169b   :  { %8001 = vpow2.f32 %v6551_v42 }
0x16a5   :  { %v7996_v38 = vpop.eup %7995 }
0x16a6   :  { %v7998_v25 = vpop.eup %7997  ;;  %3844 = vrot.lane.b32.xlu0 %v7996_v38, %s8175_s12 }
0x16a7   :  { %3940 = vrot.lane.b32.xlu1 %v7998_v25, %s8175_s12  ;;  %v8000_v44 = vpop.eup %7999 }
0x16a8   :  { %v8002_v49 = vpop.eup %8001  ;;  %v3838_v54 = vadd.f32 1.0, %v8000_v44 }
0x16a9   :  { %v3934_v33 = vadd.f32 1.0, %v8002_v49 }
0x16aa   :  { %8003 = vrcp.f32 %v3838_v54 }
0x16ab   :  { %8005 = vrcp.f32 %v3934_v33 }
0x16b7   :  { %v8004_v55 = vpop.eup %8003 }
0x16b8   :  { %v8006_v4 = vpop.eup %8005  ;;  %v3842_v9 = vmul.f32 %v8004_v55, %v9264_v50 }
0x16b9   :  { %v3938_v13 = vmul.f32 %v8006_v4, %v9268_v59 }
0x1718   :  { %v3845_v61 = vpop.permute.xlu0 %3844 }
0x1719   :  { %v3847_v48 = vmul.f32 %v8004_v55, %v3845_v61  ;;  %v3941_v8 = vpop.permute.xlu1 %3940 }
0x171a   :  { %v3943_v45 = vmul.f32 %v8006_v4, %v3941_v8 }
0x171b   :  { %3849 = vrot.lane.b32.xlu0 %v3847_v48, %s8176_s13 }
0x171c   :  { %3945 = vrot.lane.b32.xlu1 %v3943_v45, %s8176_s13 }
0x178d   :  { %v3850_v57 = vpop.permute.xlu0 %3849 }
0x178e   :  { %v9359_v60 = vadd.f32 %v3850_v57, %v3842_v9  ;;  %v3946_v15 = vpop.permute.xlu1 %3945 }
0x178f   :  { %v9361_v14 = vadd.f32 %v3946_v15, %v3938_v13 }
0x1790   :  { %8007 = vtanh.f32 %v9359_v60 }
0x1791   :  { %8009 = vtanh.f32 %v9361_v14 }
0x179d   :  { %v8008_v12 = vpop.eup %8007 }
0x179e   :  { %v8010_v51 = vpop.eup %8009  ;;  %3855 = vrot.lane.b32.xlu0 %v8008_v12, %s8175_s12 }
0x179f   :  { %3951 = vrot.lane.b32.xlu1 %v8010_v51, %s8175_s12 }
0x1810   :  { %v3856_v17 = vpop.permute.xlu0 %3855 }
0x1811   :  { %v9367_v50 = vmul.f32 %v8004_v55, %v3856_v17  ;;  %v3952_v18 = vpop.permute.xlu1 %3951 }
0x1812   :  { %v3954_v59 = vmul.f32 %v8006_v4, %v3952_v18 }
0x1813   :  { %3956 = vrot.lane.b32.xlu0 %v9367_v50, %s8176_s13 }
0x1814   :  { %4031 = vrot.lane.b32.xlu1 %v3954_v59, %s8176_s13 }
0x1885   :  { %v3957_v21 = vpop.permute.xlu0 %3956 }
0x1886   :  { %v4032_v28 = vpop.permute.xlu1 %4031  ;;  %7609 = vmatmul.mubr.msk.f32.vlgmr.msra.gmra.mxu0 %vm621_vm2, %v3957_v21 }
0x1887   :  { %7620 = vmatmul.mubr.msk.f32.vlgmr.msra.gmra.mxu1 %vm621_vm2, %v4032_v28  ;;  %7623 = vmatpush3.msra.mxu0 %v9154_v62 }
0x1888   :  { %7624 = vmatprep.subr.mxu0 %v8173_v2  ;;  %7630 = vmatprep.mubr.msk.f32.mxu0 %vm8174_vm4, %v8173_v2 }
0x1889   :  { %7625 = vmatpush3.msra.mxu0 %v9163_v1  ;;  %7634 = vmatpush3.msra.mxu1 %v9291_v3 }
0x188a   :  { %7626 = vmatprep.subr.mxu0 %v8173_v2  ;;  %7635 = vmatprep.subr.mxu1 %v8173_v2 }
0x188b   :  { %7627 = vmatpush3.msra.mxu0 %v9170_v11  ;;  %7636 = vmatpush3.msra.mxu1 %v9307_v7 }
0x188c   :  { %7628 = vmatprep.subr.mxu0 %v8173_v2  ;;  %7637 = vmatprep.subr.mxu1 %v8173_v2 }
0x188d   :  { %7629 = vmatpush3.msra.mxu0 %v9179_v27  ;;  %7638 = vmatpush3.msra.mxu1 %v9321_v0 }
0x188e   :  { %7631 = vmatmul.mubr.msk.f32.vlgmr.msra.gmra.mxu0 %vm621_vm2, %v4032_v28  ;;  %7639 = vmatprep.subr.mxu1 %v8173_v2 }
0x188f   :  { %7644 = vmatprep.subr.mxu0 %v8173_v2  ;;  %7640 = vmatpush3.msra.mxu1 %v9335_v29 }
0x1890   :  { %7645 = vmatpush3.msra.mxu0 %v9301_v26  ;;  %7641 = vmatprep.mubr.msk.f32.mxu1 %vm8174_vm4, %v8173_v2 }
0x1891   :  { %7646 = vmatprep.subr.mxu0 %v8173_v2  ;;  %7655 = vmatprep.subr.mxu1 %v8173_v2 }
0x1892   :  { %7647 = vmatpush3.msra.mxu0 %v9315_v31  ;;  %7652 = vmatprep.mubr.msk.f32.mxu0 %vm8174_vm4, %v8173_v2 }
0x1893   :  { %7648 = vmatprep.subr.mxu0 %v8173_v2 }
0x1894   :  { %7649 = vmatpush3.msra.mxu0 %v9329_v32 }
0x1895   :  { %7650 = vmatprep.subr.mxu0 %v8173_v2 }
0x1896   :  { %7651 = vmatpush3.msra.mxu0 %v9344_v10 }
0x1897   :  { %7666 = vmatprep.subr.mxu0 %v8173_v2 }
0x1946   :  { %v4026_v20 = vpop.f32.mrf.mxu0 }
0x1947   :  { %v4101_v22 = vpop.f32.mrf.mxu1 }
0x1948   :  { %v4102_v63 = vadd.f32 %v4101_v22, %v4026_v20  ;;  %v7610_v24 = vpop.f32.mrf.mxu0 }
0x1949   :  { %v7621_v23 = vpop.f32.mrf.mxu1 }
0x194a   :  { %v4105_v35 = vadd.f32 %v9408_v34, %v4102_v63 }
0x194c   :  { %8011 = vtanh.f32 %v4105_v35  ;;  %v6554_v42 = vmul.f32 -1.442695, %v4105_v35 }
0x194e   :  { %v4197_v36 = vpop.f32.mrf.mxu0 }
0x194f   :  { %v4201_v5 = vadd.f32 %v4197_v36, %v8843_v52 }
0x1950   :  { %v7632_v38 = vpop.f32.mrf.mxu0 }
0x1951   :  { %8013 = vtanh.f32 %v4201_v5  ;;  %v6556_v44 = vmul.f32 -1.442695, %v4201_v5 }
0x1952   :  { %8015 = vpow2.f32 %v6554_v42 }
0x1953   :  { %8017 = vpow2.f32 %v6556_v44 }
0x1959   :  { %v8012_v25 = vpop.eup %8011 }
0x195a   :  { %4115 = vrot.lane.b32.xlu0 %v8012_v25, %s8175_s12 }
0x195e   :  { %v8014_v40 = vpop.eup %8013 }
0x195f   :  { %4211 = vrot.lane.b32.xlu1 %v8014_v40, %s8175_s12  ;;  %v8016_v49 = vpop.eup %8015 }
0x1960   :  { %v4109_v54 = vadd.f32 1.0, %v8016_v49  ;;  %v8018_v33 = vpop.eup %8017 }
0x1961   :  { %v4205_v55 = vadd.f32 1.0, %v8018_v33 }
0x1962   :  { %8019 = vrcp.f32 %v4109_v54 }
0x1963   :  { %8021 = vrcp.f32 %v4205_v55 }
0x196f   :  { %v8020_v61 = vpop.eup %8019 }
0x1970   :  { %v8022_v48 = vpop.eup %8021  ;;  %v4113_v9 = vmul.f32 %v8020_v61, %v9359_v60 }
0x1971   :  { %v4209_v15 = vmul.f32 %v8022_v48, %v9361_v14 }
0x19cc   :  { %v4116_v52 = vpop.permute.xlu0 %4115 }
0x19cd   :  { %v4118_v4 = vmul.f32 %v8020_v61, %v4116_v52 }
0x19cf   :  { %4120 = vrot.lane.b32.xlu0 %v4118_v4, %s8176_s13 }
0x19d1   :  { %v4212_v8 = vpop.permute.xlu1 %4211 }
0x19d2   :  { %v4214_v45 = vmul.f32 %v8022_v48, %v4212_v8 }
0x19d4   :  { %4216 = vrot.lane.b32.xlu1 %v4214_v45, %s8176_s13 }
0x1a41   :  { %v4121_v57 = vpop.permute.xlu0 %4120 }
0x1a42   :  { %v9417_v13 = vadd.f32 %v4121_v57, %v4113_v9 }
0x1a44   :  { %8023 = vtanh.f32 %v9417_v13 }
0x1a46   :  { %v4217_v12 = vpop.permute.xlu1 %4216 }
0x1a47   :  { %v9421_v51 = vadd.f32 %v4217_v12, %v4209_v15 }
0x1a49   :  { %8025 = vtanh.f32 %v9421_v51 }
0x1a51   :  { %v8024_v17 = vpop.eup %8023 }
0x1a52   :  { %4126 = vrot.lane.b32.xlu0 %v8024_v17, %s8175_s12 }
0x1a56   :  { %v8026_v18 = vpop.eup %8025 }
0x1a57   :  { %4222 = vrot.lane.b32.xlu1 %v8026_v18, %s8175_s12 }
0x1ac4   :  { %v4127_v59 = vpop.permute.xlu0 %4126 }
0x1ac5   :  { %v4129_v60 = vmul.f32 %v8020_v61, %v4127_v59 }
0x1ac7   :  { %4227 = vrot.lane.b32.xlu0 %v4129_v60, %s8176_s13 }
0x1ac9   :  { %v4223_v21 = vpop.permute.xlu1 %4222 }
0x1aca   :  { %v4225_v28 = vmul.f32 %v8022_v48, %v4223_v21 }
0x1acc   :  { %4302 = vrot.lane.b32.xlu1 %v4225_v28, %s8176_s13 }
0x1b39   :  { %v9428_v14 = vpop.permute.xlu0 %4227 }
0x1b3a   :  { %7642 = vmatmul.mubr.msk.f32.vlgmr.msra.gmra.mxu1 %vm621_vm2, %v9428_v14 }
0x1b3b   :  { %7656 = vmatpush3.msra.mxu1 %v9154_v62  ;;  %7663 = vmatprep.mubr.msk.f32.mxu1 %vm8174_vm4, %v8173_v2 }
0x1b3c   :  { %7657 = vmatprep.subr.mxu1 %v8173_v2 }
0x1b3d   :  { %7658 = vmatpush3.msra.mxu1 %v9163_v1 }
0x1b3e   :  { %7659 = vmatprep.subr.mxu1 %v8173_v2  ;;  %v4303_v20 = vpop.permute.xlu1 %4302 }
0x1b3f   :  { %7660 = vmatpush3.msra.mxu1 %v9170_v11  ;;  %7653 = vmatmul.mubr.msk.f32.vlgmr.msra.gmra.mxu0 %vm621_vm2, %v4303_v20 }
0x1b40   :  { %7661 = vmatprep.subr.mxu1 %v8173_v2  ;;  %7667 = vmatpush3.msra.mxu0 %v9291_v3 }
0x1b41   :  { %7662 = vmatpush3.msra.mxu1 %v9179_v27  ;;  %7668 = vmatprep.subr.mxu0 %v8173_v2 }
0x1b42   :  { %7664 = vmatmul.mubr.msk.f32.vlgmr.msra.gmra.mxu1 %vm621_vm2, %v4303_v20  ;;  %7677 = vmatprep.subr.mxu1 %v8173_v2 }
0x1b43   :  { %7678 = vmatpush3.msra.mxu1 %v9301_v26  ;;  %7669 = vmatpush3.msra.mxu0 %v9307_v7 }
0x1b44   :  { %7679 = vmatprep.subr.mxu1 %v8173_v2  ;;  %7670 = vmatprep.subr.mxu0 %v8173_v2 }
0x1b45   :  { %7680 = vmatpush3.msra.mxu1 %v9315_v31  ;;  %7671 = vmatpush3.msra.mxu0 %v9321_v0 }
0x1b46   :  { %7681 = vmatprep.subr.mxu1 %v8173_v2  ;;  %7672 = vmatprep.subr.mxu0 %v8173_v2 }
0x1b47   :  { %7682 = vmatpush3.msra.mxu1 %v9329_v32  ;;  %7673 = vmatpush3.msra.mxu0 %v9335_v29 }
0x1b48   :  { %7683 = vmatprep.subr.mxu1 %v8173_v2  ;;  %7674 = vmatprep.mubr.msk.f32.mxu0 %vm8174_vm4, %v8173_v2 }
0x1b49   :  { %7684 = vmatpush3.msra.mxu1 %v9344_v10  ;;  %7685 = vmatprep.mubr.msk.f32.mxu1 %vm8174_vm4, %v8173_v2 }
0x1b4a   :  { %7688 = vmatprep.subr.mxu0 %v8173_v2  ;;  %7699 = vmatprep.subr.mxu1 %v8173_v2 }
0x1bfa   :  { %v4297_v22 = vpop.f32.mrf.mxu1 }
0x1bfc   :  { %v7643_v63 = vpop.f32.mrf.mxu1 }
0x1bff   :  { %v4372_v24 = vpop.f32.mrf.mxu0 }
0x1c00   :  { %v4373_v23 = vadd.f32 %v4372_v24, %v4297_v22 }
0x1c01   :  { %v7654_v35 = vpop.f32.mrf.mxu0 }
0x1c02   :  { %v4376_v36 = vadd.f32 %v9408_v34, %v4373_v23  ;;  %v4468_v5 = vpop.f32.mrf.mxu1 }
0x1c03   :  { %v4472_v38 = vadd.f32 %v4468_v5, %v8846_v56 }
0x1c04   :  { %8027 = vtanh.f32 %v4376_v36  ;;  %v7665_v25 = vpop.f32.mrf.mxu1  ;;  %v6559_v44 = vmul.f32 -1.442695, %v4376_v36 }
0x1c05   :  { %8029 = vtanh.f32 %v4472_v38  ;;  %v6561_v49 = vmul.f32 -1.442695, %v4472_v38 }
0x1c06   :  { %8031 = vpow2.f32 %v6559_v44 }
0x1c07   :  { %8033 = vpow2.f32 %v6561_v49 }
0x1c11   :  { %v8028_v40 = vpop.eup %8027 }
0x1c12   :  { %v8030_v42 = vpop.eup %8029  ;;  %4386 = vrot.lane.b32.xlu0 %v8028_v40, %s8175_s12 }
0x1c13   :  { %4482 = vrot.lane.b32.xlu1 %v8030_v42, %s8175_s12  ;;  %v8032_v54 = vpop.eup %8031 }
0x1c14   :  { %v8034_v33 = vpop.eup %8033  ;;  %v4380_v55 = vadd.f32 1.0, %v8032_v54 }
0x1c15   :  { %v4476_v61 = vadd.f32 1.0, %v8034_v33 }
0x1c16   :  { %8035 = vrcp.f32 %v4380_v55 }
0x1c17   :  { %8037 = vrcp.f32 %v4476_v61 }
0x1c23   :  { %v8036_v56 = vpop.eup %8035 }
0x1c24   :  { %v8038_v4 = vpop.eup %8037  ;;  %v4384_v9 = vmul.f32 %v8036_v56, %v9417_v13 }
0x1c25   :  { %v4480_v15 = vmul.f32 %v8038_v4, %v9421_v51 }
0x1c84   :  { %v4387_v52 = vpop.permute.xlu0 %4386 }
0x1c85   :  { %v4389_v48 = vmul.f32 %v8036_v56, %v4387_v52  ;;  %v4483_v8 = vpop.permute.xlu1 %4482 }
0x1c86   :  { %v4485_v45 = vmul.f32 %v8038_v4, %v4483_v8 }
0x1c87   :  { %4391 = vrot.lane.b32.xlu0 %v4389_v48, %s8176_s13 }
0x1c88   :  { %4487 = vrot.lane.b32.xlu1 %v4485_v45, %s8176_s13 }
0x1cf9   :  { %v4392_v57 = vpop.permute.xlu0 %4391 }
0x1cfa   :  { %v9472_v12 = vadd.f32 %v4392_v57, %v4384_v9  ;;  %v4488_v17 = vpop.permute.xlu1 %4487 }
0x1cfb   :  { %v9474_v18 = vadd.f32 %v4488_v17, %v4480_v15 }
0x1cfc   :  { %8039 = vtanh.f32 %v9472_v12 }
0x1cfd   :  { %8041 = vtanh.f32 %v9474_v18 }
0x1d09   :  { %v8040_v59 = vpop.eup %8039 }
0x1d0a   :  { %v8042_v60 = vpop.eup %8041  ;;  %4397 = vrot.lane.b32.xlu0 %v8040_v59, %s8175_s12 }
0x1d0b   :  { %4493 = vrot.lane.b32.xlu1 %v8042_v60, %s8175_s12 }
0x1d7c   :  { %v4398_v21 = vpop.permute.xlu0 %4397 }
0x1d7d   :  { %v9480_v13 = vmul.f32 %v8036_v56, %v4398_v21  ;;  %v4494_v28 = vpop.permute.xlu1 %4493 }
0x1d7e   :  { %v4496_v51 = vmul.f32 %v8038_v4, %v4494_v28 }
0x1d7f   :  { %4498 = vrot.lane.b32.xlu0 %v9480_v13, %s8176_s13 }
0x1d80   :  { %4573 = vrot.lane.b32.xlu1 %v4496_v51, %s8176_s13 }
0x1df1   :  { %v4499_v20 = vpop.permute.xlu0 %4498 }
0x1df2   :  { %v4574_v22 = vpop.permute.xlu1 %4573  ;;  %7675 = vmatmul.mubr.msk.f32.vlgmr.msra.gmra.mxu0 %vm621_vm2, %v4499_v20 }
0x1df3   :  { %7686 = vmatmul.mubr.msk.f32.vlgmr.msra.gmra.mxu1 %vm621_vm2, %v4574_v22  ;;  %7689 = vmatpush3.msra.mxu0 %v9154_v62 }
0x1df4   :  { %7690 = vmatprep.subr.mxu0 %v8173_v2  ;;  %7696 = vmatprep.mubr.msk.f32.mxu0 %vm8174_vm4, %v8173_v2 }
0x1df5   :  { %7691 = vmatpush3.msra.mxu0 %v9163_v1  ;;  %7700 = vmatpush3.msra.mxu1 %v9291_v3 }
0x1df6   :  { %7692 = vmatprep.subr.mxu0 %v8173_v2  ;;  %7701 = vmatprep.subr.mxu1 %v8173_v2 }
0x1df7   :  { %7693 = vmatpush3.msra.mxu0 %v9170_v11  ;;  %7702 = vmatpush3.msra.mxu1 %v9307_v7 }
0x1df8   :  { %7694 = vmatprep.subr.mxu0 %v8173_v2  ;;  %7703 = vmatprep.subr.mxu1 %v8173_v2 }
0x1df9   :  { %7695 = vmatpush3.msra.mxu0 %v9179_v27  ;;  %7704 = vmatpush3.msra.mxu1 %v9321_v0 }
0x1dfa   :  { %7697 = vmatmul.mubr.msk.f32.vlgmr.msra.gmra.mxu0 %vm621_vm2, %v4574_v22  ;;  %7705 = vmatprep.subr.mxu1 %v8173_v2 }
0x1dfb   :  { %7710 = vmatprep.subr.mxu0 %v8173_v2  ;;  %7706 = vmatpush3.msra.mxu1 %v9335_v29 }
0x1dfc   :  { %7711 = vmatpush3.msra.mxu0 %v9301_v26  ;;  %7707 = vmatprep.mubr.msk.f32.mxu1 %vm8174_vm4, %v8173_v2 }
0x1dfd   :  { %7712 = vmatprep.subr.mxu0 %v8173_v2  ;;  %7721 = vmatprep.subr.mxu1 %v8173_v2 }
0x1dfe   :  { %7713 = vmatpush3.msra.mxu0 %v9315_v31  ;;  %7718 = vmatprep.mubr.msk.f32.mxu0 %vm8174_vm4, %v8173_v2 }
0x1dff   :  { %7714 = vmatprep.subr.mxu0 %v8173_v2 }
0x1e00   :  { %7715 = vmatpush3.msra.mxu0 %v9329_v32 }
0x1e01   :  { %7716 = vmatprep.subr.mxu0 %v8173_v2 }
0x1e02   :  { %7717 = vmatpush3.msra.mxu0 %v9344_v10 }
0x1e03   :  { %7732 = vmatprep.subr.mxu0 %v8173_v2 }
0x1eb2   :  { %v4568_v63 = vpop.f32.mrf.mxu0 }
0x1eb3   :  { %v4643_v24 = vpop.f32.mrf.mxu1 }
0x1eb4   :  { %v4644_v23 = vadd.f32 %v4643_v24, %v4568_v63  ;;  %v7676_v35 = vpop.f32.mrf.mxu0 }
0x1eb5   :  { %v7687_v36 = vpop.f32.mrf.mxu1 }
0x1eb6   :  { %v4647_v5 = vadd.f32 %v9408_v34, %v4644_v23 }
0x1eb8   :  { %8043 = vtanh.f32 %v4647_v5  ;;  %v6564_v49 = vmul.f32 -1.442695, %v4647_v5 }
0x1eba   :  { %v4739_v38 = vpop.f32.mrf.mxu0 }
0x1ebb   :  { %v4743_v25 = vadd.f32 %v4739_v38, %v8837_v43 }
0x1ebc   :  { %v7698_v40 = vpop.f32.mrf.mxu0 }
0x1ebd   :  { %8045 = vtanh.f32 %v4743_v25  ;;  %v6566_v54 = vmul.f32 -1.442695, %v4743_v25 }
0x1ebe   :  { %8047 = vpow2.f32 %v6564_v49 }
0x1ebf   :  { %8049 = vpow2.f32 %v6566_v54 }
0x1ec5   :  { %v8044_v42 = vpop.eup %8043 }
0x1ec6   :  { %4657 = vrot.lane.b32.xlu0 %v8044_v42, %s8175_s12 }
0x1eca   :  { %v8046_v44 = vpop.eup %8045 }
0x1ecb   :  { %4753 = vrot.lane.b32.xlu1 %v8046_v44, %s8175_s12  ;;  %v8048_v33 = vpop.eup %8047 }
0x1ecc   :  { %v4651_v55 = vadd.f32 1.0, %v8048_v33  ;;  %v8050_v61 = vpop.eup %8049 }
0x1ecd   :  { %v4747_v56 = vadd.f32 1.0, %v8050_v61 }
0x1ece   :  { %8051 = vrcp.f32 %v4651_v55 }
0x1ecf   :  { %8053 = vrcp.f32 %v4747_v56 }
0x1edb   :  { %v8052_v52 = vpop.eup %8051 }
0x1edc   :  { %v8054_v48 = vpop.eup %8053  ;;  %v4655_v9 = vmul.f32 %v8052_v52, %v9472_v12 }
0x1edd   :  { %v4751_v17 = vmul.f32 %v8054_v48, %v9474_v18 }
0x1f38   :  { %v4658_v43 = vpop.permute.xlu0 %4657 }
0x1f39   :  { %v4660_v4 = vmul.f32 %v8052_v52, %v4658_v43 }
0x1f3b   :  { %4662 = vrot.lane.b32.xlu0 %v4660_v4, %s8176_s13 }
0x1f3d   :  { %v4754_v8 = vpop.permute.xlu1 %4753 }
0x1f3e   :  { %v4756_v45 = vmul.f32 %v8054_v48, %v4754_v8 }
0x1f40   :  { %4758 = vrot.lane.b32.xlu1 %v4756_v45, %s8176_s13 }
0x1fad   :  { %v4663_v57 = vpop.permute.xlu0 %4662 }
0x1fae   :  { %v9525_v15 = vadd.f32 %v4663_v57, %v4655_v9 }
0x1fb0   :  { %8055 = vtanh.f32 %v9525_v15 }
0x1fb2   :  { %v4759_v59 = vpop.permute.xlu1 %4758 }
0x1fb3   :  { %v9529_v60 = vadd.f32 %v4759_v59, %v4751_v17 }
0x1fb5   :  { %8057 = vtanh.f32 %v9529_v60 }
0x1fbd   :  { %v8056_v21 = vpop.eup %8055 }
0x1fbe   :  { %4668 = vrot.lane.b32.xlu0 %v8056_v21, %s8175_s12 }
0x1fc2   :  { %v8058_v28 = vpop.eup %8057 }
0x1fc3   :  { %4764 = vrot.lane.b32.xlu1 %v8058_v28, %s8175_s12 }
0x2030   :  { %v4669_v51 = vpop.permute.xlu0 %4668 }
0x2031   :  { %v9534_v12 = vmul.f32 %v8052_v52, %v4669_v51 }
0x2033   :  { %4769 = vrot.lane.b32.xlu0 %v9534_v12, %s8176_s13 }
0x2035   :  { %v4765_v20 = vpop.permute.xlu1 %4764 }
0x2036   :  { %v4767_v22 = vmul.f32 %v8054_v48, %v4765_v20 }
0x2038   :  { %4844 = vrot.lane.b32.xlu1 %v4767_v22, %s8176_s13  ;;  %v9598_v22 = vld [vmem:[%s9915_s9 + $0x18] sm:$0xff] }
0x20a5   :  { %v4770_v18 = vpop.permute.xlu0 %4769 }
0x20a6   :  { %7708 = vmatmul.mubr.msk.f32.vlgmr.msra.gmra.mxu1 %vm621_vm2, %v4770_v18  ;;  %v9607_v18 = vld [vmem:[%s9915_s9 + $0x10] sm:$0xff] }
0x20a7   :  { %7722 = vmatpush3.msra.mxu1 %v9154_v62  ;;  %7729 = vmatprep.mubr.msk.f32.mxu1 %vm8174_vm4, %v8173_v2 }
0x20a8   :  { %7723 = vmatprep.subr.mxu1 %v8173_v2 }
0x20a9   :  { %7724 = vmatpush3.msra.mxu1 %v9163_v1 }
0x20aa   :  { %7725 = vmatprep.subr.mxu1 %v8173_v2  ;;  %v4845_v63 = vpop.permute.xlu1 %4844 }
0x20ab   :  { %7726 = vmatpush3.msra.mxu1 %v9170_v11  ;;  %7719 = vmatmul.mubr.msk.f32.vlgmr.msra.gmra.mxu0 %vm621_vm2, %v4845_v63 }
0x20ac   :  { %7727 = vmatprep.subr.mxu1 %v8173_v2  ;;  %7733 = vmatpush3.msra.mxu0 %v9291_v3 }
0x20ad   :  { %7728 = vmatpush3.msra.mxu1 %v9179_v27  ;;  %7734 = vmatprep.subr.mxu0 %v8173_v2 }
0x20ae   :  { %7730 = vmatmul.mubr.msk.f32.vlgmr.msra.gmra.mxu1 %vm621_vm2, %v4845_v63  ;;  %7743 = vmatprep.subr.mxu1 %v8173_v2  ;;  %v9616_v63 = vld [vmem:[%s9915_s9 + $0x8] sm:$0xff] }
0x20af   :  { %7744 = vmatpush3.msra.mxu1 %v9301_v26  ;;  %7735 = vmatpush3.msra.mxu0 %v9307_v7 }
0x20b0   :  { %7745 = vmatprep.subr.mxu1 %v8173_v2  ;;  %7736 = vmatprep.subr.mxu0 %v8173_v2 }
0x20b1   :  { %7746 = vmatpush3.msra.mxu1 %v9315_v31  ;;  %7737 = vmatpush3.msra.mxu0 %v9321_v0 }
0x20b2   :  { %7747 = vmatprep.subr.mxu1 %v8173_v2  ;;  %7738 = vmatprep.subr.mxu0 %v8173_v2 }
0x20b3   :  { %7748 = vmatpush3.msra.mxu1 %v9329_v32  ;;  %7739 = vmatpush3.msra.mxu0 %v9335_v29 }
0x20b4   :  { %7749 = vmatprep.subr.mxu1 %v8173_v2  ;;  %7740 = vmatprep.mubr.msk.f32.mxu0 %vm8174_vm4, %v8173_v2 }
0x20b5   :  { %7750 = vmatpush3.msra.mxu1 %v9344_v10  ;;  %7751 = vmatprep.mubr.msk.f32.mxu1 %vm8174_vm4, %v8173_v2 }
0x20b6   :  { %7754 = vmatprep.subr.mxu0 %v8173_v2  ;;  %7765 = vmatprep.subr.mxu1 %v8173_v2 }
0x2166   :  { %v4839_v62 = vpop.f32.mrf.mxu1 }
0x2168   :  { %v7709_v1 = vpop.f32.mrf.mxu1 }
0x216b   :  { %v4914_v11 = vpop.f32.mrf.mxu0 }
0x216c   :  { %v4915_v27 = vadd.f32 %v4914_v11, %v4839_v62  ;;  %v9625_v62 = vld [vmem:[%s9915_s9] sm:$0xff] }
0x216d   :  { %v7720_v24 = vpop.f32.mrf.mxu0 }
0x216e   :  { %v4918_v23 = vadd.f32 %v9408_v34, %v4915_v27  ;;  %v5010_v35 = vpop.f32.mrf.mxu1 }
0x216f   :  { %v5014_v36 = vadd.f32 %v5010_v35, %v8840_v46 }
0x2170   :  { %8059 = vtanh.f32 %v4918_v23  ;;  %v7731_v5 = vpop.f32.mrf.mxu1  ;;  %v6569_v40 = vmul.f32 -1.442695, %v4918_v23 }
0x2171   :  { %8061 = vtanh.f32 %v5014_v36  ;;  %v6571_v42 = vmul.f32 -1.442695, %v5014_v36 }
0x2172   :  { %8063 = vpow2.f32 %v6569_v40 }
0x2173   :  { %8065 = vpow2.f32 %v6571_v42 }
0x217d   :  { %v8060_v38 = vpop.eup %8059 }
0x217e   :  { %v8062_v25 = vpop.eup %8061  ;;  %4928 = vrot.lane.b32.xlu0 %v8060_v38, %s8175_s12 }
0x217f   :  { %5024 = vrot.lane.b32.xlu1 %v8062_v25, %s8175_s12  ;;  %v8064_v44 = vpop.eup %8063 }
0x2180   :  { %v8066_v49 = vpop.eup %8065  ;;  %v4922_v54 = vadd.f32 1.0, %v8064_v44 }
0x2181   :  { %v5018_v33 = vadd.f32 1.0, %v8066_v49 }
0x2182   :  { %8067 = vrcp.f32 %v4922_v54 }
0x2183   :  { %8069 = vrcp.f32 %v5018_v33 }
0x218f   :  { %v8068_v46 = vpop.eup %8067 }
0x2190   :  { %v8070_v61 = vpop.eup %8069  ;;  %v4926_v4 = vmul.f32 %v8068_v46, %v9525_v15 }
0x2191   :  { %v5022_v8 = vmul.f32 %v8070_v61, %v9529_v60 }
0x21f0   :  { %v4929_v55 = vpop.permute.xlu0 %4928 }
0x21f1   :  { %v4931_v56 = vmul.f32 %v8068_v46, %v4929_v55  ;;  %v5025_v52 = vpop.permute.xlu1 %5024 }
0x21f2   :  { %v5027_v43 = vmul.f32 %v8070_v61, %v5025_v52 }
0x21f3   :  { %4933 = vrot.lane.b32.xlu0 %v4931_v56, %s8176_s13 }
0x21f4   :  { %5029 = vrot.lane.b32.xlu1 %v5027_v43, %s8176_s13 }
0x2265   :  { %v4934_v48 = vpop.permute.xlu0 %4933 }
0x2266   :  { %v9580_v45 = vadd.f32 %v4934_v48, %v4926_v4  ;;  %v5030_v9 = vpop.permute.xlu1 %5029 }
0x2267   :  { %v9582_v57 = vadd.f32 %v5030_v9, %v5022_v8 }
0x2268   :  { %8071 = vtanh.f32 %v9580_v45 }
0x2269   :  { %8073 = vtanh.f32 %v9582_v57 }
0x2275   :  { %v8072_v17 = vpop.eup %8071 }
0x2276   :  { %v8074_v59 = vpop.eup %8073  ;;  %4939 = vrot.lane.b32.xlu0 %v8072_v17, %s8175_s12 }
0x2277   :  { %5035 = vrot.lane.b32.xlu1 %v8074_v59, %s8175_s12 }
0x22e8   :  { %v4940_v21 = vpop.permute.xlu0 %4939 }
0x22e9   :  { %v9588_v15 = vmul.f32 %v8068_v46, %v4940_v21  ;;  %v5036_v28 = vpop.permute.xlu1 %5035 }
0x22ea   :  { %v5038_v60 = vmul.f32 %v8070_v61, %v5036_v28 }
0x22eb   :  { %5040 = vrot.lane.b32.xlu0 %v9588_v15, %s8176_s13 }
0x22ec   :  { %5115 = vrot.lane.b32.xlu1 %v5038_v60, %s8176_s13 }
0x235d   :  { %v5041_v51 = vpop.permute.xlu0 %5040 }
0x235e   :  { %v5116_v20 = vpop.permute.xlu1 %5115  ;;  %7741 = vmatmul.mubr.msk.f32.vlgmr.msra.gmra.mxu0 %vm621_vm2, %v5041_v51 }
0x235f   :  { %7752 = vmatmul.mubr.msk.f32.vlgmr.msra.gmra.mxu1 %vm621_vm2, %v5116_v20  ;;  %7755 = vmatpush3.msra.mxu0 %v9598_v22 }
0x2360   :  { %7756 = vmatprep.subr.mxu0 %v8173_v2  ;;  %7762 = vmatprep.mubr.msk.f32.mxu0 %vm8174_vm4, %v8173_v2 }
0x2361   :  { %7757 = vmatpush3.msra.mxu0 %v9607_v18  ;;  %7766 = vmatpush3.msra.mxu1 %v9291_v3 }
0x2362   :  { %7758 = vmatprep.subr.mxu0 %v8173_v2  ;;  %7767 = vmatprep.subr.mxu1 %v8173_v2 }
0x2363   :  { %7759 = vmatpush3.msra.mxu0 %v9616_v63  ;;  %7768 = vmatpush3.msra.mxu1 %v9307_v7 }
0x2364   :  { %7760 = vmatprep.subr.mxu0 %v8173_v2  ;;  %7769 = vmatprep.subr.mxu1 %v8173_v2 }
0x2365   :  { %7761 = vmatpush3.msra.mxu0 %v9625_v62  ;;  %7770 = vmatpush3.msra.mxu1 %v9321_v0 }
0x2366   :  { %7763 = vmatmul.mubr.msk.f32.vlgmr.msra.gmra.mxu0 %vm621_vm2, %v5116_v20  ;;  %7771 = vmatprep.subr.mxu1 %v8173_v2 }
0x2367   :  { %7776 = vmatprep.subr.mxu0 %v8173_v2  ;;  %7772 = vmatpush3.msra.mxu1 %v9335_v29 }
0x2368   :  { %7777 = vmatpush3.msra.mxu0 %v9301_v26  ;;  %7773 = vmatprep.mubr.msk.f32.mxu1 %vm8174_vm4, %v8173_v2 }
0x2369   :  { %7778 = vmatprep.subr.mxu0 %v8173_v2  ;;  %7787 = vmatprep.subr.mxu1 %v8173_v2 }
0x236a   :  { %7779 = vmatpush3.msra.mxu0 %v9315_v31  ;;  %7784 = vmatprep.mubr.msk.f32.mxu0 %vm8174_vm4, %v8173_v2 }
0x236b   :  { %7780 = vmatprep.subr.mxu0 %v8173_v2 }
0x236c   :  { %7781 = vmatpush3.msra.mxu0 %v9329_v32 }
0x236d   :  { %7782 = vmatprep.subr.mxu0 %v8173_v2 }
0x236e   :  { %7783 = vmatpush3.msra.mxu0 %v9344_v10 }
0x236f   :  { %7798 = vmatprep.subr.mxu0 %v8173_v2 }
0x241e   :  { %v5110_v1 = vpop.f32.mrf.mxu0 }
0x241f   :  { %v5185_v11 = vpop.f32.mrf.mxu1 }
0x2420   :  { %v5186_v27 = vadd.f32 %v5185_v11, %v5110_v1  ;;  %v7742_v24 = vpop.f32.mrf.mxu0 }
0x2421   :  { %v7753_v23 = vpop.f32.mrf.mxu1 }
0x2422   :  { %v5189_v35 = vadd.f32 %v9408_v34, %v5186_v27 }
0x2424   :  { %8075 = vtanh.f32 %v5189_v35  ;;  %v6574_v42 = vmul.f32 -1.442695, %v5189_v35 }
0x2426   :  { %v5281_v36 = vpop.f32.mrf.mxu0 }
0x2427   :  { %v5285_v5 = vadd.f32 %v5281_v36, %v8831_v39 }
0x2428   :  { %v7764_v38 = vpop.f32.mrf.mxu0 }
0x2429   :  { %8077 = vtanh.f32 %v5285_v5  ;;  %v6576_v44 = vmul.f32 -1.442695, %v5285_v5 }
0x242a   :  { %8079 = vpow2.f32 %v6574_v42 }
0x242b   :  { %8081 = vpow2.f32 %v6576_v44 }
0x2431   :  { %v8076_v25 = vpop.eup %8075 }
0x2432   :  { %5199 = vrot.lane.b32.xlu0 %v8076_v25, %s8175_s12 }
0x2436   :  { %v8078_v40 = vpop.eup %8077 }
0x2437   :  { %5295 = vrot.lane.b32.xlu1 %v8078_v40, %s8175_s12  ;;  %v8080_v49 = vpop.eup %8079 }
0x2438   :  { %v5193_v54 = vadd.f32 1.0, %v8080_v49  ;;  %v8082_v33 = vpop.eup %8081 }
0x2439   :  { %v5289_v46 = vadd.f32 1.0, %v8082_v33 }
0x243a   :  { %8083 = vrcp.f32 %v5193_v54 }
0x243b   :  { %8085 = vrcp.f32 %v5289_v46 }
0x2447   :  { %v8084_v55 = vpop.eup %8083 }
0x2448   :  { %v8086_v56 = vpop.eup %8085  ;;  %v5197_v4 = vmul.f32 %v8084_v55, %v9580_v45 }
0x2449   :  { %v5293_v9 = vmul.f32 %v8086_v56, %v9582_v57 }
0x24a4   :  { %v5200_v39 = vpop.permute.xlu0 %5199 }
0x24a5   :  { %v5202_v61 = vmul.f32 %v8084_v55, %v5200_v39 }
0x24a7   :  { %5204 = vrot.lane.b32.xlu0 %v5202_v61, %s8176_s13 }
0x24a9   :  { %v5296_v52 = vpop.permute.xlu1 %5295 }
0x24aa   :  { %v5298_v43 = vmul.f32 %v8086_v56, %v5296_v52 }
0x24ac   :  { %5300 = vrot.lane.b32.xlu1 %v5298_v43, %s8176_s13 }
0x2519   :  { %v5205_v48 = vpop.permute.xlu0 %5204 }
0x251a   :  { %v9653_v8 = vadd.f32 %v5205_v48, %v5197_v4 }
0x251c   :  { %8087 = vtanh.f32 %v9653_v8 }
0x251e   :  { %v5301_v17 = vpop.permute.xlu1 %5300 }
0x251f   :  { %v9657_v59 = vadd.f32 %v5301_v17, %v5293_v9 }
0x2521   :  { %8089 = vtanh.f32 %v9657_v59 }
0x2529   :  { %v8088_v21 = vpop.eup %8087 }
0x252a   :  { %5210 = vrot.lane.b32.xlu0 %v8088_v21, %s8175_s12  ;;  %v9731_v21 = vld [vmem:[%s9915_s9 + $0x38] sm:$0xff] }
0x252e   :  { %v8090_v28 = vpop.eup %8089 }
0x252f   :  { %5306 = vrot.lane.b32.xlu1 %v8090_v28, %s8175_s12  ;;  %v9740_v28 = vld [vmem:[%s9915_s9 + $0x30] sm:$0xff] }
0x259c   :  { %v5211_v60 = vpop.permute.xlu0 %5210 }
0x259d   :  { %v5213_v45 = vmul.f32 %v8084_v55, %v5211_v60  ;;  %v9749_v60 = vld [vmem:[%s9915_s9 + $0x28] sm:$0xff] }
0x259f   :  { %5311 = vrot.lane.b32.xlu0 %v5213_v45, %s8176_s13  ;;  %v9758_v45 = vld [vmem:[%s9915_s9 + $0x20] sm:$0xff] }
0x25a1   :  { %v5307_v51 = vpop.permute.xlu1 %5306 }
0x25a2   :  { %v5309_v20 = vmul.f32 %v8086_v56, %v5307_v51  ;;  %v9764_v51 = vld [vmem:[%s9918_s8 + $0x18] sm:$0xff] }
0x25a4   :  { %5386 = vrot.lane.b32.xlu1 %v5309_v20, %s8176_s13  ;;  %v9774_v20 = vld [vmem:[%s9918_s8 + $0x10] sm:$0xff] }
0x2611   :  { %v9664_v57 = vpop.permute.xlu0 %5311 }
0x2612   :  { %7774 = vmatmul.mubr.msk.f32.vlgmr.msra.gmra.mxu1 %vm621_vm2, %v9664_v57 }
0x2613   :  { %7788 = vmatpush3.msra.mxu1 %v9598_v22  ;;  %7795 = vmatprep.mubr.msk.f32.mxu1 %vm8174_vm4, %v8173_v2 }
0x2614   :  { %7789 = vmatprep.subr.mxu1 %v8173_v2 }
0x2615   :  { %7790 = vmatpush3.msra.mxu1 %v9607_v18 }
0x2616   :  { %7791 = vmatprep.subr.mxu1 %v8173_v2  ;;  %v5387_v1 = vpop.permute.xlu1 %5386 }
0x2617   :  { %7792 = vmatpush3.msra.mxu1 %v9616_v63  ;;  %7785 = vmatmul.mubr.msk.f32.vlgmr.msra.gmra.mxu0 %vm621_vm2, %v5387_v1 }
0x2618   :  { %7793 = vmatprep.subr.mxu1 %v8173_v2  ;;  %7799 = vmatpush3.msra.mxu0 %v9291_v3 }
0x2619   :  { %7794 = vmatpush3.msra.mxu1 %v9625_v62  ;;  %7800 = vmatprep.subr.mxu0 %v8173_v2 }
0x261a   :  { %7796 = vmatmul.mubr.msk.f32.vlgmr.msra.gmra.mxu1 %vm621_vm2, %v5387_v1  ;;  %7809 = vmatprep.subr.mxu1 %v8173_v2  ;;  %v9783_v1 = vld [vmem:[%s9918_s8 + $0x8] sm:$0xff] }
0x261b   :  { %7810 = vmatpush3.msra.mxu1 %v9301_v26  ;;  %7801 = vmatpush3.msra.mxu0 %v9307_v7 }
0x261c   :  { %7811 = vmatprep.subr.mxu1 %v8173_v2  ;;  %7802 = vmatprep.subr.mxu0 %v8173_v2 }
0x261d   :  { %7812 = vmatpush3.msra.mxu1 %v9315_v31  ;;  %7803 = vmatpush3.msra.mxu0 %v9321_v0 }
0x261e   :  { %7813 = vmatprep.subr.mxu1 %v8173_v2  ;;  %7804 = vmatprep.subr.mxu0 %v8173_v2 }
0x261f   :  { %7814 = vmatpush3.msra.mxu1 %v9329_v32  ;;  %7805 = vmatpush3.msra.mxu0 %v9335_v29 }
0x2620   :  { %7815 = vmatprep.subr.mxu1 %v8173_v2  ;;  %7806 = vmatprep.mubr.msk.f32.mxu0 %vm8174_vm4, %v8173_v2 }
0x2621   :  { %7816 = vmatpush3.msra.mxu1 %v9344_v10  ;;  %7817 = vmatprep.mubr.msk.f32.mxu1 %vm8174_vm4, %v8173_v2 }
0x2622   :  { %7820 = vmatprep.subr.mxu0 %v8173_v2  ;;  %7831 = vmatprep.subr.mxu1 %v8173_v2 }
0x26d2   :  { %v5381_v3 = vpop.f32.mrf.mxu1 }
0x26d4   :  { %v7775_v26 = vpop.f32.mrf.mxu1 }
0x26d7   :  { %v5456_v7 = vpop.f32.mrf.mxu0 }
0x26d8   :  { %v5457_v31 = vadd.f32 %v5456_v7, %v5381_v3  ;;  %v9790_v3 = vld [vmem:[%s9918_s8] sm:$0xff] }
0x26d9   :  { %v7786_v0 = vpop.f32.mrf.mxu0 }
0x26da   :  { %v5460_v32 = vadd.f32 %v9408_v34, %v5457_v31  ;;  %v5552_v29 = vpop.f32.mrf.mxu1 }
0x26db   :  { %v5556_v11 = vadd.f32 %v5552_v29, %v8834_v41 }
0x26dc   :  { %8091 = vtanh.f32 %v5460_v32  ;;  %v7797_v27 = vpop.f32.mrf.mxu1  ;;  %v6579_v23 = vmul.f32 -1.442695, %v5460_v32 }
0x26dd   :  { %8093 = vtanh.f32 %v5556_v11  ;;  %v6581_v35 = vmul.f32 -1.442695, %v5556_v11 }
0x26de   :  { %8095 = vpow2.f32 %v6579_v23 }
0x26df   :  { %8097 = vpow2.f32 %v6581_v35 }
0x26e9   :  { %v8092_v10 = vpop.eup %8091 }
0x26ea   :  { %v8094_v24 = vpop.eup %8093  ;;  %5470 = vrot.lane.b32.xlu0 %v8092_v10, %s8175_s12 }
0x26eb   :  { %5566 = vrot.lane.b32.xlu1 %v8094_v24, %s8175_s12  ;;  %v8096_v36 = vpop.eup %8095 }
0x26ec   :  { %v8098_v5 = vpop.eup %8097  ;;  %v5464_v38 = vadd.f32 1.0, %v8096_v36 }
0x26ed   :  { %v5560_v25 = vadd.f32 1.0, %v8098_v5 }
0x26ee   :  { %8099 = vrcp.f32 %v5464_v38 }
0x26ef   :  { %8101 = vrcp.f32 %v5560_v25 }
0x26fb   :  { %v8100_v41 = vpop.eup %8099 }
0x26fc   :  { %v8102_v42 = vpop.eup %8101  ;;  %v5468_v33 = vmul.f32 %v8100_v41, %v9653_v8 }
0x26fd   :  { %v5564_v55 = vmul.f32 %v8102_v42, %v9657_v59 }
0x275c   :  { %v5471_v40 = vpop.permute.xlu0 %5470 }
0x275d   :  { %v5473_v44 = vmul.f32 %v8100_v41, %v5471_v40  ;;  %v5567_v49 = vpop.permute.xlu1 %5566 }
0x275e   :  { %v5569_v54 = vmul.f32 %v8102_v42, %v5567_v49 }
0x275f   :  { %5475 = vrot.lane.b32.xlu0 %v5473_v44, %s8176_s13 }
0x2760   :  { %5571 = vrot.lane.b32.xlu1 %v5569_v54, %s8176_s13 }
0x27d1   :  { %v5476_v46 = vpop.permute.xlu0 %5475 }
0x27d2   :  { %v9708_v39 = vadd.f32 %v5476_v46, %v5468_v33  ;;  %v5572_v61 = vpop.permute.xlu1 %5571 }
0x27d3   :  { %v9710_v56 = vadd.f32 %v5572_v61, %v5564_v55 }
0x27d4   :  { %8103 = vtanh.f32 %v9708_v39 }
0x27d5   :  { %8105 = vtanh.f32 %v9710_v56 }
0x27e1   :  { %v8104_v52 = vpop.eup %8103 }
0x27e2   :  { %v8106_v43 = vpop.eup %8105  ;;  %5481 = vrot.lane.b32.xlu0 %v8104_v52, %s8175_s12 }
0x27e3   :  { %5577 = vrot.lane.b32.xlu1 %v8106_v43, %s8175_s12 }
0x2854   :  { %v5482_v4 = vpop.permute.xlu0 %5481 }
0x2855   :  { %v9716_v48 = vmul.f32 %v8100_v41, %v5482_v4  ;;  %v5578_v8 = vpop.permute.xlu1 %5577 }
0x2856   :  { %v5580_v9 = vmul.f32 %v8102_v42, %v5578_v8 }
0x2857   :  { %5582 = vrot.lane.b32.xlu0 %v9716_v48, %s8176_s13 }
0x2858   :  { %5657 = vrot.lane.b32.xlu1 %v5580_v9, %s8176_s13 }
0x28c9   :  { %v5583_v17 = vpop.permute.xlu0 %5582 }
0x28ca   :  { %v5658_v59 = vpop.permute.xlu1 %5657  ;;  %7807 = vmatmul.mubr.msk.f32.vlgmr.msra.gmra.mxu0 %vm621_vm2, %v5583_v17 }
0x28cb   :  { %7818 = vmatmul.mubr.msk.f32.vlgmr.msra.gmra.mxu1 %vm621_vm2, %v5658_v59  ;;  %7821 = vmatpush3.msra.mxu0 %v9598_v22 }
0x28cc   :  { %7822 = vmatprep.subr.mxu0 %v8173_v2  ;;  %7828 = vmatprep.mubr.msk.f32.mxu0 %vm8174_vm4, %v8173_v2 }
0x28cd   :  { %7823 = vmatpush3.msra.mxu0 %v9607_v18  ;;  %7832 = vmatpush3.msra.mxu1 %v9731_v21 }
0x28ce   :  { %7824 = vmatprep.subr.mxu0 %v8173_v2  ;;  %7833 = vmatprep.subr.mxu1 %v8173_v2 }
0x28cf   :  { %7825 = vmatpush3.msra.mxu0 %v9616_v63  ;;  %7834 = vmatpush3.msra.mxu1 %v9740_v28 }
0x28d0   :  { %7826 = vmatprep.subr.mxu0 %v8173_v2  ;;  %7835 = vmatprep.subr.mxu1 %v8173_v2 }
0x28d1   :  { %7827 = vmatpush3.msra.mxu0 %v9625_v62  ;;  %7836 = vmatpush3.msra.mxu1 %v9749_v60 }
0x28d2   :  { %7829 = vmatmul.mubr.msk.f32.vlgmr.msra.gmra.mxu0 %vm621_vm2, %v5658_v59  ;;  %7837 = vmatprep.subr.mxu1 %v8173_v2 }
0x28d3   :  { %7842 = vmatprep.subr.mxu0 %v8173_v2  ;;  %7838 = vmatpush3.msra.mxu1 %v9758_v45 }
0x28d4   :  { %7843 = vmatpush3.msra.mxu0 %v9764_v51  ;;  %7839 = vmatprep.mubr.msk.f32.mxu1 %vm8174_vm4, %v8173_v2 }
0x28d5   :  { %7844 = vmatprep.subr.mxu0 %v8173_v2  ;;  %7853 = vmatprep.subr.mxu1 %v8173_v2 }
0x28d6   :  { %7845 = vmatpush3.msra.mxu0 %v9774_v20  ;;  %7850 = vmatprep.mubr.msk.f32.mxu0 %vm8174_vm4, %v8173_v2 }
0x28d7   :  { %7846 = vmatprep.subr.mxu0 %v8173_v2 }
0x28d8   :  { %7847 = vmatpush3.msra.mxu0 %v9783_v1 }
0x28d9   :  { %7848 = vmatprep.subr.mxu0 %v8173_v2 }
0x28da   :  { %7849 = vmatpush3.msra.mxu0 %v9790_v3 }
0x28db   :  { %7864 = vmatprep.subr.mxu0 %v8173_v2 }
0x298a   :  { %v5652_v26 = vpop.f32.mrf.mxu0 }
0x298b   :  { %v5727_v7 = vpop.f32.mrf.mxu1 }
0x298c   :  { %v5728_v31 = vadd.f32 %v5727_v7, %v5652_v26  ;;  %v7808_v0 = vpop.f32.mrf.mxu0 }
0x298d   :  { %v7819_v32 = vpop.f32.mrf.mxu1 }
0x298e   :  { %v5731_v29 = vadd.f32 %v9408_v34, %v5728_v31 }
0x2990   :  { %8107 = vtanh.f32 %v5731_v29  ;;  %v6584_v35 = vmul.f32 -1.442695, %v5731_v29 }
0x2992   :  { %v5823_v11 = vpop.f32.mrf.mxu0 }
0x2993   :  { %v5827_v27 = vadd.f32 %v5823_v11, %v8825_v53 }
0x2994   :  { %v7830_v10 = vpop.f32.mrf.mxu0 }
0x2995   :  { %8109 = vtanh.f32 %v5827_v27  ;;  %v6586_v36 = vmul.f32 -1.442695, %v5827_v27 }
0x2996   :  { %8111 = vpow2.f32 %v6584_v35 }
0x2997   :  { %8113 = vpow2.f32 %v6586_v36 }
0x299d   :  { %v8108_v24 = vpop.eup %8107 }
0x299e   :  { %5741 = vrot.lane.b32.xlu0 %v8108_v24, %s8175_s12 }
0x29a2   :  { %v8110_v23 = vpop.eup %8109 }
0x29a3   :  { %5837 = vrot.lane.b32.xlu1 %v8110_v23, %s8175_s12  ;;  %v8112_v5 = vpop.eup %8111 }
0x29a4   :  { %v5735_v38 = vadd.f32 1.0, %v8112_v5  ;;  %v8114_v25 = vpop.eup %8113 }
0x29a5   :  { %v5831_v34 = vadd.f32 1.0, %v8114_v25 }
0x29a6   :  { %8115 = vrcp.f32 %v5735_v38 }
0x29a7   :  { %8117 = vrcp.f32 %v5831_v34 }
0x29b3   :  { %v8116_v41 = vpop.eup %8115 }
0x29b4   :  { %v8118_v42 = vpop.eup %8117  ;;  %v5739_v54 = vmul.f32 %v8116_v41, %v9708_v39 }
0x29b5   :  { %v5835_v55 = vmul.f32 %v8118_v42, %v9710_v56 }
0x2a10   :  { %v5742_v53 = vpop.permute.xlu0 %5741 }
0x2a11   :  { %v5744_v40 = vmul.f32 %v8116_v41, %v5742_v53 }
0x2a13   :  { %5746 = vrot.lane.b32.xlu0 %v5744_v40, %s8176_s13 }
0x2a15   :  { %v5838_v44 = vpop.permute.xlu1 %5837 }
0x2a16   :  { %v5840_v49 = vmul.f32 %v8118_v42, %v5838_v44 }
0x2a18   :  { %5842 = vrot.lane.b32.xlu1 %v5840_v49, %s8176_s13 }
0x2a85   :  { %v5747_v33 = vpop.permute.xlu0 %5746 }
0x2a86   :  { %v9801_v46 = vadd.f32 %v5747_v33, %v5739_v54 }
0x2a88   :  { %8119 = vtanh.f32 %v9801_v46 }
0x2a8a   :  { %v5843_v61 = vpop.permute.xlu1 %5842 }
0x2a8b   :  { %v9805_v52 = vadd.f32 %v5843_v61, %v5835_v55 }
0x2a8d   :  { %8121 = vtanh.f32 %v9805_v52 }
0x2a95   :  { %v8120_v43 = vpop.eup %8119 }
0x2a96   :  { %5752 = vrot.lane.b32.xlu0 %v8120_v43, %s8175_s12 }
0x2a9a   :  { %v8122_v4 = vpop.eup %8121 }
0x2a9b   :  { %5848 = vrot.lane.b32.xlu1 %v8122_v4, %s8175_s12 }
0x2b08   :  { %v5753_v8 = vpop.permute.xlu0 %5752 }
0x2b09   :  { %v9810_v39 = vmul.f32 %v8116_v41, %v5753_v8 }
0x2b0b   :  { %5853 = vrot.lane.b32.xlu0 %v9810_v39, %s8176_s13 }
0x2b0d   :  { %v5849_v9 = vpop.permute.xlu1 %5848 }
0x2b0e   :  { %v5851_v17 = vmul.f32 %v8118_v42, %v5849_v9 }
0x2b10   :  { %5928 = vrot.lane.b32.xlu1 %v5851_v17, %s8176_s13 }
0x2b7d   :  { %v5854_v56 = vpop.permute.xlu0 %5853 }
0x2b7e   :  { %7840 = vmatmul.mubr.msk.f32.vlgmr.msra.gmra.mxu1 %vm621_vm2, %v5854_v56 }
0x2b7f   :  { %7854 = vmatpush3.msra.mxu1 %v9598_v22  ;;  %7861 = vmatprep.mubr.msk.f32.mxu1 %vm8174_vm4, %v8173_v2 }
0x2b80   :  { %7855 = vmatprep.subr.mxu1 %v8173_v2 }
0x2b81   :  { %7856 = vmatpush3.msra.mxu1 %v9607_v18 }
0x2b82   :  { %7857 = vmatprep.subr.mxu1 %v8173_v2  ;;  %v5929_v59 = vpop.permute.xlu1 %5928 }
0x2b83   :  { %7858 = vmatpush3.msra.mxu1 %v9616_v63  ;;  %7851 = vmatmul.mubr.msk.f32.vlgmr.msra.gmra.mxu0 %vm621_vm2, %v5929_v59 }
0x2b84   :  { %7859 = vmatprep.subr.mxu1 %v8173_v2  ;;  %7865 = vmatpush3.msra.mxu0 %v9731_v21 }
0x2b85   :  { %7860 = vmatpush3.msra.mxu1 %v9625_v62  ;;  %7866 = vmatprep.subr.mxu0 %v8173_v2 }
0x2b86   :  { %7862 = vmatmul.mubr.msk.f32.vlgmr.msra.gmra.mxu1 %vm621_vm2, %v5929_v59  ;;  %7875 = vmatprep.subr.mxu1 %v8173_v2 }
0x2b87   :  { %7876 = vmatpush3.msra.mxu1 %v9764_v51  ;;  %7867 = vmatpush3.msra.mxu0 %v9740_v28  ;;  %v8172_v28 = vld [vmem:[%s9917_s10 + $0x1] ss:$0 sm:$0xff]  ;;  %s8177_s10 = smov 96  }
0x2b88   :  { %7877 = vmatprep.subr.mxu1 %v8173_v2  ;;  %7868 = vmatprep.subr.mxu0 %v8173_v2 }
0x2b89   :  { %7878 = vmatpush3.msra.mxu1 %v9774_v20  ;;  %7869 = vmatpush3.msra.mxu0 %v9749_v60 }
0x2b8a   :  { %7879 = vmatprep.subr.mxu1 %v8173_v2  ;;  %7870 = vmatprep.subr.mxu0 %v8173_v2 }
0x2b8b   :  { %7880 = vmatpush3.msra.mxu1 %v9783_v1  ;;  %7871 = vmatpush3.msra.mxu0 %v9758_v45 }
0x2b8c   :  { %7881 = vmatprep.subr.mxu1 %v8173_v2  ;;  %7872 = vmatprep.mubr.msk.f32.mxu0 %vm8174_vm4, %v8173_v2 }
0x2b8d   :  { %7882 = vmatpush3.msra.mxu1 %v9790_v3  ;;  %7883 = vmatprep.mubr.msk.f32.mxu1 %vm8174_vm4, %v8173_v2 }
0x2c3e   :  { %v5923_v22 = vpop.f32.mrf.mxu1 }
0x2c40   :  { %v7841_v18 = vpop.f32.mrf.mxu1 }
0x2c43   :  { %v5998_v63 = vpop.f32.mrf.mxu0 }
0x2c44   :  { %v5999_v62 = vadd.f32 %v5998_v63, %v5923_v22 }
0x2c45   :  { %v7852_v21 = vpop.f32.mrf.mxu0 }
0x2c46   :  { %v6002_v60 = vadd.f32 %v8172_v28, %v5999_v62  ;;  %v6094_v45 = vpop.f32.mrf.mxu1 }
0x2c47   :  { %v6098_v51 = vadd.f32 %v6094_v45, %v8828_v37 }
0x2c48   :  { %8123 = vtanh.f32 %v6002_v60  ;;  %v7863_v20 = vpop.f32.mrf.mxu1  ;;  %v6589_v2 = vmul.f32 -1.442695, %v6002_v60 }
0x2c49   :  { %8125 = vtanh.f32 %v6098_v51  ;;  %v6591_v26 = vmul.f32 -1.442695, %v6098_v51 }
0x2c4a   :  { %8127 = vpow2.f32 %v6589_v2 }
0x2c4b   :  { %8129 = vpow2.f32 %v6591_v26 }
0x2c55   :  { %v8124_v1 = vpop.eup %8123 }
0x2c56   :  { %v8126_v3 = vpop.eup %8125  ;;  %6012 = vrot.lane.b32.xlu0 %v8124_v1, %s8175_s12 }
0x2c57   :  { %6108 = vrot.lane.b32.xlu1 %v8126_v3, %s8175_s12  ;;  %v8128_v7 = vpop.eup %8127 }
0x2c58   :  { %v8130_v31 = vpop.eup %8129  ;;  %v6006_v0 = vadd.f32 1.0, %v8128_v7 }
0x2c59   :  { %v6102_v32 = vadd.f32 1.0, %v8130_v31 }
0x2c5a   :  { %8131 = vrcp.f32 %v6006_v0 }
0x2c5b   :  { %8133 = vrcp.f32 %v6102_v32 }
0x2c67   :  { %v8132_v37 = vpop.eup %8131 }
0x2c68   :  { %v8134_v11 = vpop.eup %8133  ;;  %v6010_v23 = vmul.f32 %v8132_v37, %v9801_v46 }
0x2c69   :  { %v6106_v36 = vmul.f32 %v8134_v11, %v9805_v52 }
0x2cc8   :  { %v6013_v29 = vpop.permute.xlu0 %6012 }
0x2cc9   :  { %v6015_v27 = vmul.f32 %v8132_v37, %v6013_v29  ;;  %v6109_v10 = vpop.permute.xlu1 %6108 }
0x2cca   :  { %v6111_v24 = vmul.f32 %v8134_v11, %v6109_v10 }
0x2ccb   :  { %6017 = vrot.lane.b32.xlu0 %v6015_v27, %s8176_s13 }
0x2ccc   :  { %6113 = vrot.lane.b32.xlu1 %v6111_v24, %s8176_s13 }
0x2d3d   :  { %v6018_v35 = vpop.permute.xlu0 %6017 }
0x2d3e   :  { %v6020_v5 = vadd.f32 %v6018_v35, %v6010_v23  ;;  %v6114_v38 = vpop.permute.xlu1 %6113 }
0x2d3f   :  { %v6116_v25 = vadd.f32 %v6114_v38, %v6106_v36 }
0x2d40   :  { %8135 = vtanh.f32 %v6020_v5 }
0x2d41   :  { %8137 = vtanh.f32 %v6116_v25 }
0x2d4d   :  { %v8136_v34 = vpop.eup %8135 }
0x2d4e   :  { %v8138_v41 = vpop.eup %8137  ;;  %6023 = vrot.lane.b32.xlu0 %v8136_v34, %s8175_s12 }
0x2d4f   :  { %6119 = vrot.lane.b32.xlu1 %v8138_v41, %s8175_s12 }
0x2dc0   :  { %v6024_v53 = vpop.permute.xlu0 %6023 }
0x2dc1   :  { %v6026_v40 = vmul.f32 %v8132_v37, %v6024_v53  ;;  %v6120_v42 = vpop.permute.xlu1 %6119 }
0x2dc2   :  { %v6122_v44 = vmul.f32 %v8134_v11, %v6120_v42 }
0x2dc3   :  { %6124 = vrot.lane.b32.xlu0 %v6026_v40, %s8176_s13 }
0x2dc4   :  { %6199 = vrot.lane.b32.xlu1 %v6122_v44, %s8176_s13 }
0x2e35   :  { %v6125_v49 = vpop.permute.xlu0 %6124 }
0x2e36   :  { %v6200_v54 = vpop.permute.xlu1 %6199  ;;  %7873 = vmatmul.mubr.msk.f32.vlgmr.msra.gmra.mxu0 %vm621_vm2, %v6125_v49 }
0x2e37   :  { %7884 = vmatmul.mubr.msk.f32.vlgmr.msra.gmra.mxu1 %vm621_vm2, %v6200_v54 }
0x2ef6   :  { %v6194_v33 = vpop.f32.mrf.mxu0 }
0x2ef7   :  { %v6269_v46 = vpop.f32.mrf.mxu1 }
0x2ef8   :  { %v6270_v55 = vadd.f32 %v6269_v46, %v6194_v33  ;;  %v7874_v61 = vpop.f32.mrf.mxu0 }
0x2ef9   :  { %v7885_v52 = vpop.f32.mrf.mxu1 }
0x2efa   :  { %v6273_v43 = vadd.f32 %v8172_v28, %v6270_v55 }
0x2efc   :  { %8139 = vtanh.f32 %v6273_v43  ;;  %v6594_v8 = vmul.f32 -1.442695, %v6273_v43 }
0x2efe   :  { %8141 = vpow2.f32 %v6594_v8 }
0x2f09   :  { %v8140_v4 = vpop.eup %8139 }
0x2f0a   :  { %6283 = vrot.lane.b32.xlu0 %v8140_v4, %s8175_s12 }
0x2f0b   :  { %v8142_v9 = vpop.eup %8141 }
0x2f0c   :  { %v6277_v17 = vadd.f32 1.0, %v8142_v9 }
0x2f0e   :  { %8143 = vrcp.f32 %v6277_v17 }
0x2f1b   :  { %v8144_v56 = vpop.eup %8143 }
0x2f1c   :  { %v6281_v18 = vmul.f32 %v8144_v56, %v6020_v5 }
0x2f7c   :  { %v6284_v59 = vpop.permute.xlu0 %6283 }
0x2f7d   :  { %v6286_v22 = vmul.f32 %v8144_v56, %v6284_v59 }
0x2f7f   :  { %6288 = vrot.lane.b32.xlu1 %v6286_v22, %s8176_s13 }
0x2f83   :  { %6309 = vrot.lane.b32.xlu1 %v9588_v15, %s8175_s12 }
0x2f87   :  { %6323 = vrot.lane.b32.xlu1 %v9091_v19, %s8175_s12 }
0x2f8b   :  { %6312 = vrot.lane.b32.xlu1 %v9534_v12, %s8177_s10 }
0x2ff1   :  { %v6289_v63 = vpop.permute.xlu1 %6288 }
0x2ff2   :  { %v6291_v62 = vadd.f32 %v6289_v63, %v6281_v18 }
0x2ff4   :  { %8145 = vtanh.f32 %v6291_v62 }
0x2ff5   :  { %v6310_v21 = vpop.permute.xlu1 %6309 }
0x2ff6   :  { %v6333_v60 = vsel %vm621_vm2, %v9664_v57, %v6310_v21 }
0x2ff9   :  { %v6324_v28 = vpop.permute.xlu1 %6323 }
0x2ffd   :  { %v6313_v45 = vpop.permute.xlu1 %6312 }
0x2ffe   :  { %v6334_v51 = vsel %vm1186_vm3, %v6333_v60, %v6313_v45 }
0x2fff   :  { %v6335_v15 = vsel %vm6331_vm6, %v6334_v51, %v9480_v13 }
0x3000   :  { %6343 = vst [vmem:[%s9919_s11 + $0x8] sm:$0xff] %v6335_v15 }
0x3001   :  { %v8146_v19 = vpop.eup %8145 }
0x3002   :  { %6294 = vrot.lane.b32.xlu0 %v8146_v19, %s8175_s12 }
0x3006   :  { %6302 = vrot.lane.b32.xlu0 %v6026_v40, %s8175_s12 }
0x300a   :  { %6316 = vrot.lane.b32.xlu0 %v9367_v50, %s8175_s12 }
0x300e   :  { %6305 = vrot.lane.b32.xlu0 %v9810_v39, %s8177_s10 }
0x3012   :  { %6319 = vrot.lane.b32.xlu0 %v9273_v47, %s8177_s10 }
0x3074   :  { %v6295_v12 = vpop.permute.xlu0 %6294 }
0x3075   :  { %v6297_v57 = vmul.f32 %v8144_v56, %v6295_v12 }
0x3077   :  { %6299 = vrot.lane.b32.xlu1 %v6297_v57, %s8176_s13 }
0x3078   :  { %v6303_v13 = vpop.permute.xlu0 %6302 }
0x307b   :  { %6326 = vrot.lane.b32.xlu1 %v9037_v58, %s8177_s10 }
0x307c   :  { %v6317_v20 = vpop.permute.xlu0 %6316 }
0x307d   :  { %v6336_v3 = vsel %vm621_vm2, %v9428_v14, %v6317_v20  ;;  %v6339_v14 = vsel %vm621_vm2, %v9147_v6, %v6324_v28 }
0x3080   :  { %v6306_v1 = vpop.permute.xlu0 %6305 }
0x3084   :  { %v6320_v2 = vpop.permute.xlu0 %6319 }
0x3085   :  { %v6337_v26 = vsel %vm1186_vm3, %v6336_v3, %v6320_v2 }
0x3086   :  { %v6338_v50 = vsel %vm6331_vm6, %v6337_v26, %v9219_v16 }
0x3087   :  { %6344 = vst [vmem:[%s9919_s11 + $0x10] sm:$0xff] %v6338_v50 }
0x30e9   :  { %v6300_v47 = vpop.permute.xlu1 %6299 }
0x30ea   :  { %v6329_v39 = vsel %vm621_vm2, %v6300_v47, %v6303_v13 }
0x30eb   :  { %v6330_v58 = vsel %vm1186_vm3, %v6329_v39, %v6306_v1 }
0x30ec   :  { %v6332_v7 = vsel %vm6331_vm6, %v6330_v58, %v9716_v48 }
0x30ed   :  { %6342 = vst [vmem:[%s9919_s11] sm:$0xff] %v6332_v7  ;;  %v6327_v16 = vpop.permute.xlu1 %6326 }
0x30ee   :  { %v6340_v31 = vsel %vm1186_vm3, %v6339_v14, %v6327_v16 }
0x30ef   :  { %v6341_v0 = vsel %vm6331_vm6, %v6340_v31, %v8983_v30 }
0x30f0   :  { %6345 = vst [vmem:[%s9919_s11 + $0x18] sm:$0xff] %v6341_v0 }

</bundles_post_ra>
